<compile_context>
chip_gen: v6e
topology: v6e:2x2x1
jax: 0.10.0
libtpu: 0.0.40
codegen_flags: <defaults>
</compile_context>

<pallas_src>
import functools
import math

import jax
import jax.numpy as jnp
from jax.experimental import pallas as pl
from jax.experimental.pallas import tpu as pltpu


# ------------------------------ kernel helpers ------------------------------

def _mm(a, b):
    # bf16 operands on the MXU, f32 accumulation.
    return jnp.dot(a.astype(jnp.bfloat16), b.astype(jnp.bfloat16),
                   preferred_element_type=jnp.float32)


def _layernorm(y, w, b, eps):
    # PyTorch LayerNorm: biased variance over the last dim, f32 statistics.
    mu = jnp.mean(y, axis=-1, keepdims=True)
    var = jnp.mean((y - mu) ** 2, axis=-1, keepdims=True)
    return (y - mu) * jax.lax.rsqrt(var + eps) * w + b


# --------------------------------- kernel -----------------------------------

def kg_forward_kernel(x_ref,
                      ipw_ref, ipb_ref, opw_ref, opb_ref,
                      ln1w_ref, ln1b_ref,
                      ffw1_ref, ffb1_ref, ffw2_ref, ffb2_ref,
                      ln2w_ref, ln2b_ref,
                      cw1_ref, cb1_ref, a_ref, cw2_ref, cb2_ref,
                      o_ref,
                      *, num_layers, num_head, eps=1e-5):
    # One batch element per grid step: x_ref block is (1, S, E).
    x = x_ref[0]                                   # (S, E) f32
    S, E = x.shape
    D = E // num_head
    scale = 1.0 / math.sqrt(D)

    for l in range(num_layers):                    # static unroll over layers
        # ---------------- self-attention ----------------
        qkv = _mm(x, ipw_ref[l]) + ipb_ref[l]      # (S, 3E) f32
        q = qkv[:, 0 * E:1 * E] * scale
        k = qkv[:, 1 * E:2 * E]
        v = qkv[:, 2 * E:3 * E]

        w_out = opw_ref[l]                         # (E, E) bf16
        attn = jnp.zeros((S, E), jnp.float32)
        for h in range(num_head):                  # static unroll over heads
            qh = q[:, h * D:(h + 1) * D]           # (S, D)
            kh = k[:, h * D:(h + 1) * D]
            vh = v[:, h * D:(h + 1) * D]
            s = jnp.einsum("id,jd->ij", qh, kh,
                           preferred_element_type=jnp.float32)   # (S, S)
            m = jnp.max(s, axis=-1, keepdims=True)
            p = jnp.exp(s - m)
            p = p * pl.reciprocal(jnp.sum(p, axis=-1, keepdims=True),
                                  approx=True)
            oh = jnp.einsum("ij,jd->id", p, vh,
                            preferred_element_type=jnp.float32)  # (S, D)
            # concat-over-heads folded into the output projection:
            attn = attn + _mm(oh, w_out[h * D:(h + 1) * D, :])
        attn = attn + opb_ref[l]

        # residual + LN1 (post-norm, like nn.TransformerEncoderLayer default)
        y = _layernorm(x + attn, ln1w_ref[l], ln1b_ref[l], eps)

        # ---------------- FFN + residual + LN2 (fused) ----------------
        hmid = jnp.maximum(_mm(y, ffw1_ref[l]) + ffb1_ref[l], 0.0)   # (S, dff)
        ff = _mm(hmid, ffw2_ref[l]) + ffb2_ref[l]                    # (S, E)
        x = _layernorm(y + ff, ln2w_ref[l], ln2b_ref[l], eps)

    # ---------------- classifier on output[0] ----------------
    c_in = x[0:1, :]                                # (1, E)
    hcls = _mm(c_in, cw1_ref[...]) + cb1_ref[...]   # (1, 128)
    a = a_ref[0]                                    # PReLU slope (SMEM scalar)
    hcls = jnp.where(hcls > 0, hcls, a * hcls)
    o_ref[0] = _mm(hcls, cw2_ref[...]) + cb2_ref[...]    # (1, 2)


# --------------------------------- wrapper -----------------------------------

def kg_encoder_forward(input_embedding, params, num_head, eps=1e-5):
    S, B, E = input_embedding.shape
    L = params["in_proj_w"].shape[0]
    xb = jnp.transpose(input_embedding, (1, 0, 2)).astype(jnp.float32)  # (B,S,E)

    def _full(a):
        n = a.ndim
        # whole-array block, constant index -> stays VMEM-resident across grid
        return pl.BlockSpec(a.shape, lambda b, n=n: (0,) * n)

    ordered = [
        params["in_proj_w"], params["in_proj_b"],
        params["out_proj_w"], params["out_proj_b"],
        params["ln1_w"], params["ln1_b"],
        params["ff_w1"], params["ff_b1"],
        params["ff_w2"], params["ff_b2"],
        params["ln2_w"], params["ln2_b"],
        params["clf_w1"], params["clf_b1"],
    ]
    tail = [params["clf_w2"], params["clf_b2"]]

    in_specs = (
        [pl.BlockSpec((1, S, E), lambda b: (b, 0, 0))]          # x: one batch row
        + [_full(a) for a in ordered]
        + [pl.BlockSpec(memory_space=pltpu.MemorySpace.SMEM)]   # PReLU scalar
        + [_full(a) for a in tail]
    )

    kernel = functools.partial(kg_forward_kernel,
                               num_layers=L, num_head=num_head, eps=eps)

    out = pl.pallas_call(
        kernel,
        out_shape=jax.ShapeDtypeStruct((B, 1, 2), jnp.float32),
        grid=(B,),
        in_specs=in_specs,
        out_specs=pl.BlockSpec((1, 1, 2), lambda b: (b, 0, 0)),
        compiler_params=pltpu.CompilerParams(
            dimension_semantics=("parallel",),      # megacore on v7x
            vmem_limit_bytes=32 * 1024 * 1024),
    )(xb, *ordered, params["prelu_a"], *tail)

    return out.reshape(B, 2)


# -------------------------------- parameters ---------------------------------

def init_params(key, num_head, num_layers, E, dff=2048):
    # deterministic synthetic init; weights stored pre-transposed as (in, out),
    # matrices in bf16 (halves weight HBM traffic), biases / LN params in f32.
    keys = iter(jax.random.split(key, 16))          # >= number of random draws

    def u(shape, dtype=jnp.float32, scale=0.1):
        w = jax.random.uniform(next(keys), shape, jnp.float32, -scale, scale)
        return w.astype(dtype)

    L = num_layers
    return dict(
        in_proj_w=u((L, E, 3 * E), jnp.bfloat16),
        in_proj_b=u((L, 1, 3 * E)),
        out_proj_w=u((L, E, E), jnp.bfloat16),
        out_proj_b=u((L, 1, E)),
        ln1_w=jnp.ones((L, 1, E), jnp.float32),
        ln1_b=jnp.zeros((L, 1, E), jnp.float32),
        ff_w1=u((L, E, dff), jnp.bfloat16),
        ff_b1=u((L, 1, dff)),
        ff_w2=u((L, dff, E), jnp.bfloat16),
        ff_b2=u((L, 1, E)),
        ln2_w=jnp.ones((L, 1, E), jnp.float32),
        ln2_b=jnp.zeros((L, 1, E), jnp.float32),
        clf_w1=u((E, 128), jnp.bfloat16),
        clf_b1=u((1, 128)),
        prelu_a=jnp.full((1,), 0.25, jnp.float32),   # PReLU(num_parameters=1)
        clf_w2=u((128, 2), jnp.bfloat16),
        clf_b2=u((1, 2)),
    )


# TODO(synk): embed()/train_step()/CrossEntropyLoss are not part of forward();
# only the forward pass (encoder + classifier) is implemented here.

if __name__ == "__main__":
    num_head, num_layers, embedding_size, seq_length = 4, 2, 32, 8
    batch = 2

    key = jax.random.PRNGKey(0)
    pkey, xkey = jax.random.split(key)
    params = init_params(pkey, num_head, num_layers, embedding_size)
    # input_embedding: (seq, batch, embed) — what self.embed() would produce
    x = jax.random.normal(xkey, (seq_length, batch, embedding_size), jnp.float32)

    scores = kg_encoder_forward(x, params, num_head)
    scores = jax.block_until_ready(scores)
    assert scores.shape == (batch, 2) and scores.dtype == jnp.float32
    print("KERNEL_OK")
</pallas_src>

<mosaic_0001>
module attributes {stable_mosaic.version = 11 : i64} {
  func.func @kg_forward_kernel(%arg0: i32, %arg1: memref<1x8x32xf32, #tpu.memory_space<vmem>>, %arg2: memref<2x32x96xbf16, #tpu.memory_space<vmem>>, %arg3: memref<2x1x96xf32, #tpu.memory_space<vmem>>, %arg4: memref<2x32x32xbf16, #tpu.memory_space<vmem>>, %arg5: memref<2x1x32xf32, #tpu.memory_space<vmem>>, %arg6: memref<2x1x32xf32, #tpu.memory_space<vmem>>, %arg7: memref<2x1x32xf32, #tpu.memory_space<vmem>>, %arg8: memref<2x32x2048xbf16, #tpu.memory_space<vmem>>, %arg9: memref<2x1x2048xf32, #tpu.memory_space<vmem>>, %arg10: memref<2x2048x32xbf16, #tpu.memory_space<vmem>>, %arg11: memref<2x1x32xf32, #tpu.memory_space<vmem>>, %arg12: memref<2x1x32xf32, #tpu.memory_space<vmem>>, %arg13: memref<2x1x32xf32, #tpu.memory_space<vmem>>, %arg14: memref<32x128xbf16, #tpu.memory_space<vmem>>, %arg15: memref<1x128xf32, #tpu.memory_space<vmem>>, %arg16: memref<1xf32, #tpu.memory_space<smem>>, %arg17: memref<128x2xbf16, #tpu.memory_space<vmem>>, %arg18: memref<1x2xf32, #tpu.memory_space<vmem>>, %arg19: memref<1x1x2xf32, #tpu.memory_space<vmem>>) attributes {dimension_semantics = [#tpu.dimension_semantics<parallel>], iteration_bounds = array<i64: 2>, scalar_prefetch = 0 : i64, scratch_operands = 0 : i64, tpu.core_type = #tpu.core_type<tc>, window_params = [{transform_indices = @transform_0, window_bounds = array<i64: 1, 8, 32>}, {pipeline_mode = #tpu.pipeline_mode<synchronous>, transform_indices = @transform_1, window_bounds = array<i64: 2, 32, 96>}, {pipeline_mode = #tpu.pipeline_mode<synchronous>, transform_indices = @transform_2, window_bounds = array<i64: 2, 1, 96>}, {pipeline_mode = #tpu.pipeline_mode<synchronous>, transform_indices = @transform_3, window_bounds = array<i64: 2, 32, 32>}, {pipeline_mode = #tpu.pipeline_mode<synchronous>, transform_indices = @transform_4, window_bounds = array<i64: 2, 1, 32>}, {pipeline_mode = #tpu.pipeline_mode<synchronous>, transform_indices = @transform_5, window_bounds = array<i64: 2, 1, 32>}, {pipeline_mode = #tpu.pipeline_mode<synchronous>, transform_indices = @transform_6, window_bounds = array<i64: 2, 1, 32>}, {pipeline_mode = #tpu.pipeline_mode<synchronous>, transform_indices = @transform_7, window_bounds = array<i64: 2, 32, 2048>}, {pipeline_mode = #tpu.pipeline_mode<synchronous>, transform_indices = @transform_8, window_bounds = array<i64: 2, 1, 2048>}, {pipeline_mode = #tpu.pipeline_mode<synchronous>, transform_indices = @transform_9, window_bounds = array<i64: 2, 2048, 32>}, {pipeline_mode = #tpu.pipeline_mode<synchronous>, transform_indices = @transform_10, window_bounds = array<i64: 2, 1, 32>}, {pipeline_mode = #tpu.pipeline_mode<synchronous>, transform_indices = @transform_11, window_bounds = array<i64: 2, 1, 32>}, {pipeline_mode = #tpu.pipeline_mode<synchronous>, transform_indices = @transform_12, window_bounds = array<i64: 2, 1, 32>}, {pipeline_mode = #tpu.pipeline_mode<synchronous>, transform_indices = @transform_13, window_bounds = array<i64: 32, 128>}, {pipeline_mode = #tpu.pipeline_mode<synchronous>, transform_indices = @transform_14, window_bounds = array<i64: 1, 128>}, {transform_indices = @transform_15, window_bounds = array<i64: 1>}, {pipeline_mode = #tpu.pipeline_mode<synchronous>, transform_indices = @transform_16, window_bounds = array<i64: 128, 2>}, {pipeline_mode = #tpu.pipeline_mode<synchronous>, transform_indices = @transform_17, window_bounds = array<i64: 1, 2>}, {transform_indices = @transform_18, window_bounds = array<i64: 1, 1, 2>}]} {
    %c0 = arith.constant 0 : index
    %c0_0 = arith.constant 0 : index
    %c0_1 = arith.constant 0 : index
    %0 = vector.load %arg1[%c0, %c0_0, %c0_1] : memref<1x8x32xf32, #tpu.memory_space<vmem>>, vector<1x8x32xf32>
    %1 = vector.shape_cast %0 : vector<1x8x32xf32> to vector<8x32xf32>
    %c0_2 = arith.constant 0 : index
    %c0_3 = arith.constant 0 : index
    %c0_4 = arith.constant 0 : index
    %2 = vector.load %arg2[%c0_2, %c0_3, %c0_4] : memref<2x32x96xbf16, #tpu.memory_space<vmem>>, vector<1x32x96xbf16>
    %3 = vector.shape_cast %2 : vector<1x32x96xbf16> to vector<32x96xbf16>
    %4 = arith.truncf %1 : vector<8x32xf32> to vector<8x32xbf16>
    %cst = arith.constant dense<0.000000e+00> : vector<8x96xf32>
    %5 = tpu.matmul %4, %3, %cst {dimension_numbers = #tpu.dot_dimension_numbers<[1], [0], [0], [1], [0, 0, 1, 1], [], []>} : vector<8x32xbf16>, vector<32x96xbf16>, vector<8x96xf32> -> vector<8x96xf32>
    %c0_5 = arith.constant 0 : index
    %c0_6 = arith.constant 0 : index
    %c0_7 = arith.constant 0 : index
    %6 = vector.load %arg3[%c0_5, %c0_6, %c0_7] : memref<2x1x96xf32, #tpu.memory_space<vmem>>, vector<1x1x96xf32>
    %7 = vector.shape_cast %6 : vector<1x1x96xf32> to vector<1x96xf32>
    %8 = vector.broadcast %7 : vector<1x96xf32> to vector<8x96xf32>
    %9 = arith.addf %5, %8 : vector<8x96xf32>
    %10 = vector.extract_strided_slice %9 {offsets = [0, 0], sizes = [8, 32], strides = [1, 1]} : vector<8x96xf32> to vector<8x32xf32>
    %cst_8 = arith.constant 0.353553385 : f32
    %11 = vector.broadcast %cst_8 : f32 to vector<8x32xf32>
    %12 = arith.mulf %10, %11 : vector<8x32xf32>
    %13 = vector.extract_strided_slice %9 {offsets = [0, 32], sizes = [8, 32], strides = [1, 1]} : vector<8x96xf32> to vector<8x32xf32>
    %14 = vector.extract_strided_slice %9 {offsets = [0, 64], sizes = [8, 32], strides = [1, 1]} : vector<8x96xf32> to vector<8x32xf32>
    %c0_9 = arith.constant 0 : index
    %c0_10 = arith.constant 0 : index
    %c0_11 = arith.constant 0 : index
    %15 = vector.load %arg4[%c0_9, %c0_10, %c0_11] : memref<2x32x32xbf16, #tpu.memory_space<vmem>>, vector<1x32x32xbf16>
    %16 = vector.shape_cast %15 : vector<1x32x32xbf16> to vector<32x32xbf16>
    %cst_12 = arith.constant 0.000000e+00 : f32
    %17 = vector.broadcast %cst_12 : f32 to vector<8x32xf32>
    %18 = vector.extract_strided_slice %12 {offsets = [0, 0], sizes = [8, 8], strides = [1, 1]} : vector<8x32xf32> to vector<8x8xf32>
    %19 = vector.extract_strided_slice %13 {offsets = [0, 0], sizes = [8, 8], strides = [1, 1]} : vector<8x32xf32> to vector<8x8xf32>
    %20 = vector.extract_strided_slice %14 {offsets = [0, 0], sizes = [8, 8], strides = [1, 1]} : vector<8x32xf32> to vector<8x8xf32>
    "tpu.trace_start"() <{level = 10 : i32, message = "id,jd->ij"}> : () -> ()
    %cst_13 = arith.constant dense<0.000000e+00> : vector<8x8xf32>
    %21 = tpu.matmul %18, %19, %cst_13 {dimension_numbers = #tpu.dot_dimension_numbers<[1], [1], [0], [0], [0, 0, 1, 0], [], []>} : vector<8x8xf32>, vector<8x8xf32>, vector<8x8xf32> -> vector<8x8xf32>
    "tpu.trace_stop"() : () -> ()
    %cst_14 = arith.constant dense<0xFF800000> : vector<8xf32>
    %22 = vector.multi_reduction <maximumf>, %21, %cst_14 [1] : vector<8x8xf32> to vector<8xf32>
    %23 = vector.shape_cast %22 : vector<8xf32> to vector<8x1xf32>
    %24 = vector.broadcast %23 : vector<8x1xf32> to vector<8x8xf32>
    %25 = arith.subf %21, %24 : vector<8x8xf32>
    %26 = math.exp %25 : vector<8x8xf32>
    %cst_15 = arith.constant dense<0.000000e+00> : vector<8xf32>
    %27 = vector.multi_reduction <add>, %26, %cst_15 [1] : vector<8x8xf32> to vector<8xf32>
    %28 = vector.shape_cast %27 : vector<8xf32> to vector<8x1xf32>
    %29 = tpu.reciprocal %28 {approx = true} : vector<8x1xf32> -> vector<8x1xf32>
    %30 = vector.broadcast %29 : vector<8x1xf32> to vector<8x8xf32>
    %31 = arith.mulf %26, %30 : vector<8x8xf32>
    "tpu.trace_start"() <{level = 10 : i32, message = "ij,jd->id"}> : () -> ()
    %cst_16 = arith.constant dense<0.000000e+00> : vector<8x8xf32>
    %32 = tpu.matmul %31, %20, %cst_16 {dimension_numbers = #tpu.dot_dimension_numbers<[1], [0], [0], [1], [0, 0, 1, 1], [], []>} : vector<8x8xf32>, vector<8x8xf32>, vector<8x8xf32> -> vector<8x8xf32>
    "tpu.trace_stop"() : () -> ()
    %33 = vector.extract_strided_slice %16 {offsets = [0, 0], sizes = [8, 32], strides = [1, 1]} : vector<32x32xbf16> to vector<8x32xbf16>
    %34 = arith.truncf %32 : vector<8x8xf32> to vector<8x8xbf16>
    %cst_17 = arith.constant dense<0.000000e+00> : vector<8x32xf32>
    %35 = tpu.matmul %34, %33, %cst_17 {dimension_numbers = #tpu.dot_dimension_numbers<[1], [0], [0], [1], [0, 0, 1, 1], [], []>} : vector<8x8xbf16>, vector<8x32xbf16>, vector<8x32xf32> -> vector<8x32xf32>
    %36 = arith.addf %17, %35 : vector<8x32xf32>
    %37 = vector.extract_strided_slice %12 {offsets = [0, 8], sizes = [8, 8], strides = [1, 1]} : vector<8x32xf32> to vector<8x8xf32>
    %38 = vector.extract_strided_slice %13 {offsets = [0, 8], sizes = [8, 8], strides = [1, 1]} : vector<8x32xf32> to vector<8x8xf32>
    %39 = vector.extract_strided_slice %14 {offsets = [0, 8], sizes = [8, 8], strides = [1, 1]} : vector<8x32xf32> to vector<8x8xf32>
    "tpu.trace_start"() <{level = 10 : i32, message = "id,jd->ij"}> : () -> ()
    %cst_18 = arith.constant dense<0.000000e+00> : vector<8x8xf32>
    %40 = tpu.matmul %37, %38, %cst_18 {dimension_numbers = #tpu.dot_dimension_numbers<[1], [1], [0], [0], [0, 0, 1, 0], [], []>} : vector<8x8xf32>, vector<8x8xf32>, vector<8x8xf32> -> vector<8x8xf32>
    "tpu.trace_stop"() : () -> ()
    %cst_19 = arith.constant dense<0xFF800000> : vector<8xf32>
    %41 = vector.multi_reduction <maximumf>, %40, %cst_19 [1] : vector<8x8xf32> to vector<8xf32>
    %42 = vector.shape_cast %41 : vector<8xf32> to vector<8x1xf32>
    %43 = vector.broadcast %42 : vector<8x1xf32> to vector<8x8xf32>
    %44 = arith.subf %40, %43 : vector<8x8xf32>
    %45 = math.exp %44 : vector<8x8xf32>
    %cst_20 = arith.constant dense<0.000000e+00> : vector<8xf32>
    %46 = vector.multi_reduction <add>, %45, %cst_20 [1] : vector<8x8xf32> to vector<8xf32>
    %47 = vector.shape_cast %46 : vector<8xf32> to vector<8x1xf32>
    %48 = tpu.reciprocal %47 {approx = true} : vector<8x1xf32> -> vector<8x1xf32>
    %49 = vector.broadcast %48 : vector<8x1xf32> to vector<8x8xf32>
    %50 = arith.mulf %45, %49 : vector<8x8xf32>
    "tpu.trace_start"() <{level = 10 : i32, message = "ij,jd->id"}> : () -> ()
    %cst_21 = arith.constant dense<0.000000e+00> : vector<8x8xf32>
    %51 = tpu.matmul %50, %39, %cst_21 {dimension_numbers = #tpu.dot_dimension_numbers<[1], [0], [0], [1], [0, 0, 1, 1], [], []>} : vector<8x8xf32>, vector<8x8xf32>, vector<8x8xf32> -> vector<8x8xf32>
    "tpu.trace_stop"() : () -> ()
    %52 = vector.extract_strided_slice %16 {offsets = [8, 0], sizes = [8, 32], strides = [1, 1]} : vector<32x32xbf16> to vector<8x32xbf16>
    %53 = arith.truncf %51 : vector<8x8xf32> to vector<8x8xbf16>
    %cst_22 = arith.constant dense<0.000000e+00> : vector<8x32xf32>
    %54 = tpu.matmul %53, %52, %cst_22 {dimension_numbers = #tpu.dot_dimension_numbers<[1], [0], [0], [1], [0, 0, 1, 1], [], []>} : vector<8x8xbf16>, vector<8x32xbf16>, vector<8x32xf32> -> vector<8x32xf32>
    %55 = arith.addf %36, %54 : vector<8x32xf32>
    %56 = vector.extract_strided_slice %12 {offsets = [0, 16], sizes = [8, 8], strides = [1, 1]} : vector<8x32xf32> to vector<8x8xf32>
    %57 = vector.extract_strided_slice %13 {offsets = [0, 16], sizes = [8, 8], strides = [1, 1]} : vector<8x32xf32> to vector<8x8xf32>
    %58 = vector.extract_strided_slice %14 {offsets = [0, 16], sizes = [8, 8], strides = [1, 1]} : vector<8x32xf32> to vector<8x8xf32>
    "tpu.trace_start"() <{level = 10 : i32, message = "id,jd->ij"}> : () -> ()
    %cst_23 = arith.constant dense<0.000000e+00> : vector<8x8xf32>
    %59 = tpu.matmul %56, %57, %cst_23 {dimension_numbers = #tpu.dot_dimension_numbers<[1], [1], [0], [0], [0, 0, 1, 0], [], []>} : vector<8x8xf32>, vector<8x8xf32>, vector<8x8xf32> -> vector<8x8xf32>
    "tpu.trace_stop"() : () -> ()
    %cst_24 = arith.constant dense<0xFF800000> : vector<8xf32>
    %60 = vector.multi_reduction <maximumf>, %59, %cst_24 [1] : vector<8x8xf32> to vector<8xf32>
    %61 = vector.shape_cast %60 : vector<8xf32> to vector<8x1xf32>
    %62 = vector.broadcast %61 : vector<8x1xf32> to vector<8x8xf32>
    %63 = arith.subf %59, %62 : vector<8x8xf32>
    %64 = math.exp %63 : vector<8x8xf32>
    %cst_25 = arith.constant dense<0.000000e+00> : vector<8xf32>
    %65 = vector.multi_reduction <add>, %64, %cst_25 [1] : vector<8x8xf32> to vector<8xf32>
    %66 = vector.shape_cast %65 : vector<8xf32> to vector<8x1xf32>
    %67 = tpu.reciprocal %66 {approx = true} : vector<8x1xf32> -> vector<8x1xf32>
    %68 = vector.broadcast %67 : vector<8x1xf32> to vector<8x8xf32>
    %69 = arith.mulf %64, %68 : vector<8x8xf32>
    "tpu.trace_start"() <{level = 10 : i32, message = "ij,jd->id"}> : () -> ()
    %cst_26 = arith.constant dense<0.000000e+00> : vector<8x8xf32>
    %70 = tpu.matmul %69, %58, %cst_26 {dimension_numbers = #tpu.dot_dimension_numbers<[1], [0], [0], [1], [0, 0, 1, 1], [], []>} : vector<8x8xf32>, vector<8x8xf32>, vector<8x8xf32> -> vector<8x8xf32>
    "tpu.trace_stop"() : () -> ()
    %71 = vector.extract_strided_slice %16 {offsets = [16, 0], sizes = [8, 32], strides = [1, 1]} : vector<32x32xbf16> to vector<8x32xbf16>
    %72 = arith.truncf %70 : vector<8x8xf32> to vector<8x8xbf16>
    %cst_27 = arith.constant dense<0.000000e+00> : vector<8x32xf32>
    %73 = tpu.matmul %72, %71, %cst_27 {dimension_numbers = #tpu.dot_dimension_numbers<[1], [0], [0], [1], [0, 0, 1, 1], [], []>} : vector<8x8xbf16>, vector<8x32xbf16>, vector<8x32xf32> -> vector<8x32xf32>
    %74 = arith.addf %55, %73 : vector<8x32xf32>
    %75 = vector.extract_strided_slice %12 {offsets = [0, 24], sizes = [8, 8], strides = [1, 1]} : vector<8x32xf32> to vector<8x8xf32>
    %76 = vector.extract_strided_slice %13 {offsets = [0, 24], sizes = [8, 8], strides = [1, 1]} : vector<8x32xf32> to vector<8x8xf32>
    %77 = vector.extract_strided_slice %14 {offsets = [0, 24], sizes = [8, 8], strides = [1, 1]} : vector<8x32xf32> to vector<8x8xf32>
    "tpu.trace_start"() <{level = 10 : i32, message = "id,jd->ij"}> : () -> ()
    %cst_28 = arith.constant dense<0.000000e+00> : vector<8x8xf32>
    %78 = tpu.matmul %75, %76, %cst_28 {dimension_numbers = #tpu.dot_dimension_numbers<[1], [1], [0], [0], [0, 0, 1, 0], [], []>} : vector<8x8xf32>, vector<8x8xf32>, vector<8x8xf32> -> vector<8x8xf32>
    "tpu.trace_stop"() : () -> ()
    %cst_29 = arith.constant dense<0xFF800000> : vector<8xf32>
    %79 = vector.multi_reduction <maximumf>, %78, %cst_29 [1] : vector<8x8xf32> to vector<8xf32>
    %80 = vector.shape_cast %79 : vector<8xf32> to vector<8x1xf32>
    %81 = vector.broadcast %80 : vector<8x1xf32> to vector<8x8xf32>
    %82 = arith.subf %78, %81 : vector<8x8xf32>
    %83 = math.exp %82 : vector<8x8xf32>
    %cst_30 = arith.constant dense<0.000000e+00> : vector<8xf32>
    %84 = vector.multi_reduction <add>, %83, %cst_30 [1] : vector<8x8xf32> to vector<8xf32>
    %85 = vector.shape_cast %84 : vector<8xf32> to vector<8x1xf32>
    %86 = tpu.reciprocal %85 {approx = true} : vector<8x1xf32> -> vector<8x1xf32>
    %87 = vector.broadcast %86 : vector<8x1xf32> to vector<8x8xf32>
    %88 = arith.mulf %83, %87 : vector<8x8xf32>
    "tpu.trace_start"() <{level = 10 : i32, message = "ij,jd->id"}> : () -> ()
    %cst_31 = arith.constant dense<0.000000e+00> : vector<8x8xf32>
    %89 = tpu.matmul %88, %77, %cst_31 {dimension_numbers = #tpu.dot_dimension_numbers<[1], [0], [0], [1], [0, 0, 1, 1], [], []>} : vector<8x8xf32>, vector<8x8xf32>, vector<8x8xf32> -> vector<8x8xf32>
    "tpu.trace_stop"() : () -> ()
    %90 = vector.extract_strided_slice %16 {offsets = [24, 0], sizes = [8, 32], strides = [1, 1]} : vector<32x32xbf16> to vector<8x32xbf16>
    %91 = arith.truncf %89 : vector<8x8xf32> to vector<8x8xbf16>
    %cst_32 = arith.constant dense<0.000000e+00> : vector<8x32xf32>
    %92 = tpu.matmul %91, %90, %cst_32 {dimension_numbers = #tpu.dot_dimension_numbers<[1], [0], [0], [1], [0, 0, 1, 1], [], []>} : vector<8x8xbf16>, vector<8x32xbf16>, vector<8x32xf32> -> vector<8x32xf32>
    %93 = arith.addf %74, %92 : vector<8x32xf32>
    %c0_33 = arith.constant 0 : index
    %c0_34 = arith.constant 0 : index
    %c0_35 = arith.constant 0 : index
    %94 = vector.load %arg5[%c0_33, %c0_34, %c0_35] : memref<2x1x32xf32, #tpu.memory_space<vmem>>, vector<1x1x32xf32>
    %95 = vector.shape_cast %94 : vector<1x1x32xf32> to vector<1x32xf32>
    %96 = vector.broadcast %95 : vector<1x32xf32> to vector<8x32xf32>
    %97 = arith.addf %93, %96 : vector<8x32xf32>
    %98 = arith.addf %1, %97 : vector<8x32xf32>
    %c0_36 = arith.constant 0 : index
    %c0_37 = arith.constant 0 : index
    %c0_38 = arith.constant 0 : index
    %99 = vector.load %arg6[%c0_36, %c0_37, %c0_38] : memref<2x1x32xf32, #tpu.memory_space<vmem>>, vector<1x1x32xf32>
    %100 = vector.shape_cast %99 : vector<1x1x32xf32> to vector<1x32xf32>
    %c0_39 = arith.constant 0 : index
    %c0_40 = arith.constant 0 : index
    %c0_41 = arith.constant 0 : index
    %101 = vector.load %arg7[%c0_39, %c0_40, %c0_41] : memref<2x1x32xf32, #tpu.memory_space<vmem>>, vector<1x1x32xf32>
    %102 = vector.shape_cast %101 : vector<1x1x32xf32> to vector<1x32xf32>
    %cst_42 = arith.constant dense<0.000000e+00> : vector<8xf32>
    %103 = vector.multi_reduction <add>, %98, %cst_42 [1] : vector<8x32xf32> to vector<8xf32>
    %104 = vector.shape_cast %103 : vector<8xf32> to vector<8x1xf32>
    %cst_43 = arith.constant 3.200000e+01 : f32
    %105 = vector.broadcast %cst_43 : f32 to vector<8x1xf32>
    %106 = arith.divf %104, %105 : vector<8x1xf32>
    %107 = vector.broadcast %106 : vector<8x1xf32> to vector<8x32xf32>
    %108 = arith.subf %98, %107 : vector<8x32xf32>
    %109 = arith.mulf %108, %108 : vector<8x32xf32>
    %cst_44 = arith.constant dense<0.000000e+00> : vector<8xf32>
    %110 = vector.multi_reduction <add>, %109, %cst_44 [1] : vector<8x32xf32> to vector<8xf32>
    %111 = vector.shape_cast %110 : vector<8xf32> to vector<8x1xf32>
    %cst_45 = arith.constant 3.200000e+01 : f32
    %112 = vector.broadcast %cst_45 : f32 to vector<8x1xf32>
    %113 = arith.divf %111, %112 : vector<8x1xf32>
    %114 = vector.broadcast %106 : vector<8x1xf32> to vector<8x32xf32>
    %115 = arith.subf %98, %114 : vector<8x32xf32>
    %cst_46 = arith.constant 9.99999974E-6 : f32
    %116 = vector.broadcast %cst_46 : f32 to vector<8x1xf32>
    %117 = arith.addf %113, %116 : vector<8x1xf32>
    %118 = math.rsqrt %117 : vector<8x1xf32>
    %119 = vector.broadcast %118 : vector<8x1xf32> to vector<8x32xf32>
    %120 = arith.mulf %115, %119 : vector<8x32xf32>
    %121 = vector.broadcast %100 : vector<1x32xf32> to vector<8x32xf32>
    %122 = arith.mulf %120, %121 : vector<8x32xf32>
    %123 = vector.broadcast %102 : vector<1x32xf32> to vector<8x32xf32>
    %124 = arith.addf %122, %123 : vector<8x32xf32>
    %c0_47 = arith.constant 0 : index
    %c0_48 = arith.constant 0 : index
    %c0_49 = arith.constant 0 : index
    %125 = vector.load %arg8[%c0_47, %c0_48, %c0_49] : memref<2x32x2048xbf16, #tpu.memory_space<vmem>>, vector<1x32x2048xbf16>
    %126 = vector.shape_cast %125 : vector<1x32x2048xbf16> to vector<32x2048xbf16>
    %127 = arith.truncf %124 : vector<8x32xf32> to vector<8x32xbf16>
    %cst_50 = arith.constant dense<0.000000e+00> : vector<8x2048xf32>
    %128 = tpu.matmul %127, %126, %cst_50 {dimension_numbers = #tpu.dot_dimension_numbers<[1], [0], [0], [1], [0, 0, 1, 1], [], []>} : vector<8x32xbf16>, vector<32x2048xbf16>, vector<8x2048xf32> -> vector<8x2048xf32>
    %c0_51 = arith.constant 0 : index
    %c0_52 = arith.constant 0 : index
    %c0_53 = arith.constant 0 : index
    %129 = vector.load %arg9[%c0_51, %c0_52, %c0_53] : memref<2x1x2048xf32, #tpu.memory_space<vmem>>, vector<1x1x2048xf32>
    %130 = vector.shape_cast %129 : vector<1x1x2048xf32> to vector<1x2048xf32>
    %131 = vector.broadcast %130 : vector<1x2048xf32> to vector<8x2048xf32>
    %132 = arith.addf %128, %131 : vector<8x2048xf32>
    %cst_54 = arith.constant 0.000000e+00 : f32
    %133 = vector.broadcast %cst_54 : f32 to vector<8x2048xf32>
    %134 = arith.maximumf %132, %133 : vector<8x2048xf32>
    %c0_55 = arith.constant 0 : index
    %c0_56 = arith.constant 0 : index
    %c0_57 = arith.constant 0 : index
    %135 = vector.load %arg10[%c0_55, %c0_56, %c0_57] : memref<2x2048x32xbf16, #tpu.memory_space<vmem>>, vector<1x2048x32xbf16>
    %136 = vector.shape_cast %135 : vector<1x2048x32xbf16> to vector<2048x32xbf16>
    %137 = arith.truncf %134 : vector<8x2048xf32> to vector<8x2048xbf16>
    %cst_58 = arith.constant dense<0.000000e+00> : vector<8x32xf32>
    %138 = tpu.matmul %137, %136, %cst_58 {dimension_numbers = #tpu.dot_dimension_numbers<[1], [0], [0], [1], [0, 0, 1, 1], [], []>} : vector<8x2048xbf16>, vector<2048x32xbf16>, vector<8x32xf32> -> vector<8x32xf32>
    %c0_59 = arith.constant 0 : index
    %c0_60 = arith.constant 0 : index
    %c0_61 = arith.constant 0 : index
    %139 = vector.load %arg11[%c0_59, %c0_60, %c0_61] : memref<2x1x32xf32, #tpu.memory_space<vmem>>, vector<1x1x32xf32>
    %140 = vector.shape_cast %139 : vector<1x1x32xf32> to vector<1x32xf32>
    %141 = vector.broadcast %140 : vector<1x32xf32> to vector<8x32xf32>
    %142 = arith.addf %138, %141 : vector<8x32xf32>
    %143 = arith.addf %124, %142 : vector<8x32xf32>
    %c0_62 = arith.constant 0 : index
    %c0_63 = arith.constant 0 : index
    %c0_64 = arith.constant 0 : index
    %144 = vector.load %arg12[%c0_62, %c0_63, %c0_64] : memref<2x1x32xf32, #tpu.memory_space<vmem>>, vector<1x1x32xf32>
    %145 = vector.shape_cast %144 : vector<1x1x32xf32> to vector<1x32xf32>
    %c0_65 = arith.constant 0 : index
    %c0_66 = arith.constant 0 : index
    %c0_67 = arith.constant 0 : index
    %146 = vector.load %arg13[%c0_65, %c0_66, %c0_67] : memref<2x1x32xf32, #tpu.memory_space<vmem>>, vector<1x1x32xf32>
    %147 = vector.shape_cast %146 : vector<1x1x32xf32> to vector<1x32xf32>
    %cst_68 = arith.constant dense<0.000000e+00> : vector<8xf32>
    %148 = vector.multi_reduction <add>, %143, %cst_68 [1] : vector<8x32xf32> to vector<8xf32>
    %149 = vector.shape_cast %148 : vector<8xf32> to vector<8x1xf32>
    %cst_69 = arith.constant 3.200000e+01 : f32
    %150 = vector.broadcast %cst_69 : f32 to vector<8x1xf32>
    %151 = arith.divf %149, %150 : vector<8x1xf32>
    %152 = vector.broadcast %151 : vector<8x1xf32> to vector<8x32xf32>
    %153 = arith.subf %143, %152 : vector<8x32xf32>
    %154 = arith.mulf %153, %153 : vector<8x32xf32>
    %cst_70 = arith.constant dense<0.000000e+00> : vector<8xf32>
    %155 = vector.multi_reduction <add>, %154, %cst_70 [1] : vector<8x32xf32> to vector<8xf32>
    %156 = vector.shape_cast %155 : vector<8xf32> to vector<8x1xf32>
    %cst_71 = arith.constant 3.200000e+01 : f32
    %157 = vector.broadcast %cst_71 : f32 to vector<8x1xf32>
    %158 = arith.divf %156, %157 : vector<8x1xf32>
    %159 = vector.broadcast %151 : vector<8x1xf32> to vector<8x32xf32>
    %160 = arith.subf %143, %159 : vector<8x32xf32>
    %cst_72 = arith.constant 9.99999974E-6 : f32
    %161 = vector.broadcast %cst_72 : f32 to vector<8x1xf32>
    %162 = arith.addf %158, %161 : vector<8x1xf32>
    %163 = math.rsqrt %162 : vector<8x1xf32>
    %164 = vector.broadcast %163 : vector<8x1xf32> to vector<8x32xf32>
    %165 = arith.mulf %160, %164 : vector<8x32xf32>
    %166 = vector.broadcast %145 : vector<1x32xf32> to vector<8x32xf32>
    %167 = arith.mulf %165, %166 : vector<8x32xf32>
    %168 = vector.broadcast %147 : vector<1x32xf32> to vector<8x32xf32>
    %169 = arith.addf %167, %168 : vector<8x32xf32>
    %c1 = arith.constant 1 : index
    %c0_73 = arith.constant 0 : index
    %c0_74 = arith.constant 0 : index
    %170 = vector.load %arg2[%c1, %c0_73, %c0_74] : memref<2x32x96xbf16, #tpu.memory_space<vmem>>, vector<1x32x96xbf16>
    %171 = vector.shape_cast %170 : vector<1x32x96xbf16> to vector<32x96xbf16>
    %172 = arith.truncf %169 : vector<8x32xf32> to vector<8x32xbf16>
    %cst_75 = arith.constant dense<0.000000e+00> : vector<8x96xf32>
    %173 = tpu.matmul %172, %171, %cst_75 {dimension_numbers = #tpu.dot_dimension_numbers<[1], [0], [0], [1], [0, 0, 1, 1], [], []>} : vector<8x32xbf16>, vector<32x96xbf16>, vector<8x96xf32> -> vector<8x96xf32>
    %c1_76 = arith.constant 1 : index
    %c0_77 = arith.constant 0 : index
    %c0_78 = arith.constant 0 : index
    %174 = vector.load %arg3[%c1_76, %c0_77, %c0_78] : memref<2x1x96xf32, #tpu.memory_space<vmem>>, vector<1x1x96xf32>
    %175 = vector.shape_cast %174 : vector<1x1x96xf32> to vector<1x96xf32>
    %176 = vector.broadcast %175 : vector<1x96xf32> to vector<8x96xf32>
    %177 = arith.addf %173, %176 : vector<8x96xf32>
    %178 = vector.extract_strided_slice %177 {offsets = [0, 0], sizes = [8, 32], strides = [1, 1]} : vector<8x96xf32> to vector<8x32xf32>
    %cst_79 = arith.constant 0.353553385 : f32
    %179 = vector.broadcast %cst_79 : f32 to vector<8x32xf32>
    %180 = arith.mulf %178, %179 : vector<8x32xf32>
    %181 = vector.extract_strided_slice %177 {offsets = [0, 32], sizes = [8, 32], strides = [1, 1]} : vector<8x96xf32> to vector<8x32xf32>
    %182 = vector.extract_strided_slice %177 {offsets = [0, 64], sizes = [8, 32], strides = [1, 1]} : vector<8x96xf32> to vector<8x32xf32>
    %c1_80 = arith.constant 1 : index
    %c0_81 = arith.constant 0 : index
    %c0_82 = arith.constant 0 : index
    %183 = vector.load %arg4[%c1_80, %c0_81, %c0_82] : memref<2x32x32xbf16, #tpu.memory_space<vmem>>, vector<1x32x32xbf16>
    %184 = vector.shape_cast %183 : vector<1x32x32xbf16> to vector<32x32xbf16>
    %cst_83 = arith.constant 0.000000e+00 : f32
    %185 = vector.broadcast %cst_83 : f32 to vector<8x32xf32>
    %186 = vector.extract_strided_slice %180 {offsets = [0, 0], sizes = [8, 8], strides = [1, 1]} : vector<8x32xf32> to vector<8x8xf32>
    %187 = vector.extract_strided_slice %181 {offsets = [0, 0], sizes = [8, 8], strides = [1, 1]} : vector<8x32xf32> to vector<8x8xf32>
    %188 = vector.extract_strided_slice %182 {offsets = [0, 0], sizes = [8, 8], strides = [1, 1]} : vector<8x32xf32> to vector<8x8xf32>
    "tpu.trace_start"() <{level = 10 : i32, message = "id,jd->ij"}> : () -> ()
    %cst_84 = arith.constant dense<0.000000e+00> : vector<8x8xf32>
    %189 = tpu.matmul %186, %187, %cst_84 {dimension_numbers = #tpu.dot_dimension_numbers<[1], [1], [0], [0], [0, 0, 1, 0], [], []>} : vector<8x8xf32>, vector<8x8xf32>, vector<8x8xf32> -> vector<8x8xf32>
    "tpu.trace_stop"() : () -> ()
    %cst_85 = arith.constant dense<0xFF800000> : vector<8xf32>
    %190 = vector.multi_reduction <maximumf>, %189, %cst_85 [1] : vector<8x8xf32> to vector<8xf32>
    %191 = vector.shape_cast %190 : vector<8xf32> to vector<8x1xf32>
    %192 = vector.broadcast %191 : vector<8x1xf32> to vector<8x8xf32>
    %193 = arith.subf %189, %192 : vector<8x8xf32>
    %194 = math.exp %193 : vector<8x8xf32>
    %cst_86 = arith.constant dense<0.000000e+00> : vector<8xf32>
    %195 = vector.multi_reduction <add>, %194, %cst_86 [1] : vector<8x8xf32> to vector<8xf32>
    %196 = vector.shape_cast %195 : vector<8xf32> to vector<8x1xf32>
    %197 = tpu.reciprocal %196 {approx = true} : vector<8x1xf32> -> vector<8x1xf32>
    %198 = vector.broadcast %197 : vector<8x1xf32> to vector<8x8xf32>
    %199 = arith.mulf %194, %198 : vector<8x8xf32>
    "tpu.trace_start"() <{level = 10 : i32, message = "ij,jd->id"}> : () -> ()
    %cst_87 = arith.constant dense<0.000000e+00> : vector<8x8xf32>
    %200 = tpu.matmul %199, %188, %cst_87 {dimension_numbers = #tpu.dot_dimension_numbers<[1], [0], [0], [1], [0, 0, 1, 1], [], []>} : vector<8x8xf32>, vector<8x8xf32>, vector<8x8xf32> -> vector<8x8xf32>
    "tpu.trace_stop"() : () -> ()
    %201 = vector.extract_strided_slice %184 {offsets = [0, 0], sizes = [8, 32], strides = [1, 1]} : vector<32x32xbf16> to vector<8x32xbf16>
    %202 = arith.truncf %200 : vector<8x8xf32> to vector<8x8xbf16>
    %cst_88 = arith.constant dense<0.000000e+00> : vector<8x32xf32>
    %203 = tpu.matmul %202, %201, %cst_88 {dimension_numbers = #tpu.dot_dimension_numbers<[1], [0], [0], [1], [0, 0, 1, 1], [], []>} : vector<8x8xbf16>, vector<8x32xbf16>, vector<8x32xf32> -> vector<8x32xf32>
    %204 = arith.addf %185, %203 : vector<8x32xf32>
    %205 = vector.extract_strided_slice %180 {offsets = [0, 8], sizes = [8, 8], strides = [1, 1]} : vector<8x32xf32> to vector<8x8xf32>
    %206 = vector.extract_strided_slice %181 {offsets = [0, 8], sizes = [8, 8], strides = [1, 1]} : vector<8x32xf32> to vector<8x8xf32>
    %207 = vector.extract_strided_slice %182 {offsets = [0, 8], sizes = [8, 8], strides = [1, 1]} : vector<8x32xf32> to vector<8x8xf32>
    "tpu.trace_start"() <{level = 10 : i32, message = "id,jd->ij"}> : () -> ()
    %cst_89 = arith.constant dense<0.000000e+00> : vector<8x8xf32>
    %208 = tpu.matmul %205, %206, %cst_89 {dimension_numbers = #tpu.dot_dimension_numbers<[1], [1], [0], [0], [0, 0, 1, 0], [], []>} : vector<8x8xf32>, vector<8x8xf32>, vector<8x8xf32> -> vector<8x8xf32>
    "tpu.trace_stop"() : () -> ()
    %cst_90 = arith.constant dense<0xFF800000> : vector<8xf32>
    %209 = vector.multi_reduction <maximumf>, %208, %cst_90 [1] : vector<8x8xf32> to vector<8xf32>
    %210 = vector.shape_cast %209 : vector<8xf32> to vector<8x1xf32>
    %211 = vector.broadcast %210 : vector<8x1xf32> to vector<8x8xf32>
    %212 = arith.subf %208, %211 : vector<8x8xf32>
    %213 = math.exp %212 : vector<8x8xf32>
    %cst_91 = arith.constant dense<0.000000e+00> : vector<8xf32>
    %214 = vector.multi_reduction <add>, %213, %cst_91 [1] : vector<8x8xf32> to vector<8xf32>
    %215 = vector.shape_cast %214 : vector<8xf32> to vector<8x1xf32>
    %216 = tpu.reciprocal %215 {approx = true} : vector<8x1xf32> -> vector<8x1xf32>
    %217 = vector.broadcast %216 : vector<8x1xf32> to vector<8x8xf32>
    %218 = arith.mulf %213, %217 : vector<8x8xf32>
    "tpu.trace_start"() <{level = 10 : i32, message = "ij,jd->id"}> : () -> ()
    %cst_92 = arith.constant dense<0.000000e+00> : vector<8x8xf32>
    %219 = tpu.matmul %218, %207, %cst_92 {dimension_numbers = #tpu.dot_dimension_numbers<[1], [0], [0], [1], [0, 0, 1, 1], [], []>} : vector<8x8xf32>, vector<8x8xf32>, vector<8x8xf32> -> vector<8x8xf32>
    "tpu.trace_stop"() : () -> ()
    %220 = vector.extract_strided_slice %184 {offsets = [8, 0], sizes = [8, 32], strides = [1, 1]} : vector<32x32xbf16> to vector<8x32xbf16>
    %221 = arith.truncf %219 : vector<8x8xf32> to vector<8x8xbf16>
    %cst_93 = arith.constant dense<0.000000e+00> : vector<8x32xf32>
    %222 = tpu.matmul %221, %220, %cst_93 {dimension_numbers = #tpu.dot_dimension_numbers<[1], [0], [0], [1], [0, 0, 1, 1], [], []>} : vector<8x8xbf16>, vector<8x32xbf16>, vector<8x32xf32> -> vector<8x32xf32>
    %223 = arith.addf %204, %222 : vector<8x32xf32>
    %224 = vector.extract_strided_slice %180 {offsets = [0, 16], sizes = [8, 8], strides = [1, 1]} : vector<8x32xf32> to vector<8x8xf32>
    %225 = vector.extract_strided_slice %181 {offsets = [0, 16], sizes = [8, 8], strides = [1, 1]} : vector<8x32xf32> to vector<8x8xf32>
    %226 = vector.extract_strided_slice %182 {offsets = [0, 16], sizes = [8, 8], strides = [1, 1]} : vector<8x32xf32> to vector<8x8xf32>
    "tpu.trace_start"() <{level = 10 : i32, message = "id,jd->ij"}> : () -> ()
    %cst_94 = arith.constant dense<0.000000e+00> : vector<8x8xf32>
    %227 = tpu.matmul %224, %225, %cst_94 {dimension_numbers = #tpu.dot_dimension_numbers<[1], [1], [0], [0], [0, 0, 1, 0], [], []>} : vector<8x8xf32>, vector<8x8xf32>, vector<8x8xf32> -> vector<8x8xf32>
    "tpu.trace_stop"() : () -> ()
    %cst_95 = arith.constant dense<0xFF800000> : vector<8xf32>
    %228 = vector.multi_reduction <maximumf>, %227, %cst_95 [1] : vector<8x8xf32> to vector<8xf32>
    %229 = vector.shape_cast %228 : vector<8xf32> to vector<8x1xf32>
    %230 = vector.broadcast %229 : vector<8x1xf32> to vector<8x8xf32>
    %231 = arith.subf %227, %230 : vector<8x8xf32>
    %232 = math.exp %231 : vector<8x8xf32>
    %cst_96 = arith.constant dense<0.000000e+00> : vector<8xf32>
    %233 = vector.multi_reduction <add>, %232, %cst_96 [1] : vector<8x8xf32> to vector<8xf32>
    %234 = vector.shape_cast %233 : vector<8xf32> to vector<8x1xf32>
    %235 = tpu.reciprocal %234 {approx = true} : vector<8x1xf32> -> vector<8x1xf32>
    %236 = vector.broadcast %235 : vector<8x1xf32> to vector<8x8xf32>
    %237 = arith.mulf %232, %236 : vector<8x8xf32>
    "tpu.trace_start"() <{level = 10 : i32, message = "ij,jd->id"}> : () -> ()
    %cst_97 = arith.constant dense<0.000000e+00> : vector<8x8xf32>
    %238 = tpu.matmul %237, %226, %cst_97 {dimension_numbers = #tpu.dot_dimension_numbers<[1], [0], [0], [1], [0, 0, 1, 1], [], []>} : vector<8x8xf32>, vector<8x8xf32>, vector<8x8xf32> -> vector<8x8xf32>
    "tpu.trace_stop"() : () -> ()
    %239 = vector.extract_strided_slice %184 {offsets = [16, 0], sizes = [8, 32], strides = [1, 1]} : vector<32x32xbf16> to vector<8x32xbf16>
    %240 = arith.truncf %238 : vector<8x8xf32> to vector<8x8xbf16>
    %cst_98 = arith.constant dense<0.000000e+00> : vector<8x32xf32>
    %241 = tpu.matmul %240, %239, %cst_98 {dimension_numbers = #tpu.dot_dimension_numbers<[1], [0], [0], [1], [0, 0, 1, 1], [], []>} : vector<8x8xbf16>, vector<8x32xbf16>, vector<8x32xf32> -> vector<8x32xf32>
    %242 = arith.addf %223, %241 : vector<8x32xf32>
    %243 = vector.extract_strided_slice %180 {offsets = [0, 24], sizes = [8, 8], strides = [1, 1]} : vector<8x32xf32> to vector<8x8xf32>
    %244 = vector.extract_strided_slice %181 {offsets = [0, 24], sizes = [8, 8], strides = [1, 1]} : vector<8x32xf32> to vector<8x8xf32>
    %245 = vector.extract_strided_slice %182 {offsets = [0, 24], sizes = [8, 8], strides = [1, 1]} : vector<8x32xf32> to vector<8x8xf32>
    "tpu.trace_start"() <{level = 10 : i32, message = "id,jd->ij"}> : () -> ()
    %cst_99 = arith.constant dense<0.000000e+00> : vector<8x8xf32>
    %246 = tpu.matmul %243, %244, %cst_99 {dimension_numbers = #tpu.dot_dimension_numbers<[1], [1], [0], [0], [0, 0, 1, 0], [], []>} : vector<8x8xf32>, vector<8x8xf32>, vector<8x8xf32> -> vector<8x8xf32>
    "tpu.trace_stop"() : () -> ()
    %cst_100 = arith.constant dense<0xFF800000> : vector<8xf32>
    %247 = vector.multi_reduction <maximumf>, %246, %cst_100 [1] : vector<8x8xf32> to vector<8xf32>
    %248 = vector.shape_cast %247 : vector<8xf32> to vector<8x1xf32>
    %249 = vector.broadcast %248 : vector<8x1xf32> to vector<8x8xf32>
    %250 = arith.subf %246, %249 : vector<8x8xf32>
    %251 = math.exp %250 : vector<8x8xf32>
    %cst_101 = arith.constant dense<0.000000e+00> : vector<8xf32>
    %252 = vector.multi_reduction <add>, %251, %cst_101 [1] : vector<8x8xf32> to vector<8xf32>
    %253 = vector.shape_cast %252 : vector<8xf32> to vector<8x1xf32>
    %254 = tpu.reciprocal %253 {approx = true} : vector<8x1xf32> -> vector<8x1xf32>
    %255 = vector.broadcast %254 : vector<8x1xf32> to vector<8x8xf32>
    %256 = arith.mulf %251, %255 : vector<8x8xf32>
    "tpu.trace_start"() <{level = 10 : i32, message = "ij,jd->id"}> : () -> ()
    %cst_102 = arith.constant dense<0.000000e+00> : vector<8x8xf32>
    %257 = tpu.matmul %256, %245, %cst_102 {dimension_numbers = #tpu.dot_dimension_numbers<[1], [0], [0], [1], [0, 0, 1, 1], [], []>} : vector<8x8xf32>, vector<8x8xf32>, vector<8x8xf32> -> vector<8x8xf32>
    "tpu.trace_stop"() : () -> ()
    %258 = vector.extract_strided_slice %184 {offsets = [24, 0], sizes = [8, 32], strides = [1, 1]} : vector<32x32xbf16> to vector<8x32xbf16>
    %259 = arith.truncf %257 : vector<8x8xf32> to vector<8x8xbf16>
    %cst_103 = arith.constant dense<0.000000e+00> : vector<8x32xf32>
    %260 = tpu.matmul %259, %258, %cst_103 {dimension_numbers = #tpu.dot_dimension_numbers<[1], [0], [0], [1], [0, 0, 1, 1], [], []>} : vector<8x8xbf16>, vector<8x32xbf16>, vector<8x32xf32> -> vector<8x32xf32>
    %261 = arith.addf %242, %260 : vector<8x32xf32>
    %c1_104 = arith.constant 1 : index
    %c0_105 = arith.constant 0 : index
    %c0_106 = arith.constant 0 : index
    %262 = vector.load %arg5[%c1_104, %c0_105, %c0_106] : memref<2x1x32xf32, #tpu.memory_space<vmem>>, vector<1x1x32xf32>
    %263 = vector.shape_cast %262 : vector<1x1x32xf32> to vector<1x32xf32>
    %264 = vector.broadcast %263 : vector<1x32xf32> to vector<8x32xf32>
    %265 = arith.addf %261, %264 : vector<8x32xf32>
    %266 = arith.addf %169, %265 : vector<8x32xf32>
    %c1_107 = arith.constant 1 : index
    %c0_108 = arith.constant 0 : index
    %c0_109 = arith.constant 0 : index
    %267 = vector.load %arg6[%c1_107, %c0_108, %c0_109] : memref<2x1x32xf32, #tpu.memory_space<vmem>>, vector<1x1x32xf32>
    %268 = vector.shape_cast %267 : vector<1x1x32xf32> to vector<1x32xf32>
    %c1_110 = arith.constant 1 : index
    %c0_111 = arith.constant 0 : index
    %c0_112 = arith.constant 0 : index
    %269 = vector.load %arg7[%c1_110, %c0_111, %c0_112] : memref<2x1x32xf32, #tpu.memory_space<vmem>>, vector<1x1x32xf32>
    %270 = vector.shape_cast %269 : vector<1x1x32xf32> to vector<1x32xf32>
    %cst_113 = arith.constant dense<0.000000e+00> : vector<8xf32>
    %271 = vector.multi_reduction <add>, %266, %cst_113 [1] : vector<8x32xf32> to vector<8xf32>
    %272 = vector.shape_cast %271 : vector<8xf32> to vector<8x1xf32>
    %cst_114 = arith.constant 3.200000e+01 : f32
    %273 = vector.broadcast %cst_114 : f32 to vector<8x1xf32>
    %274 = arith.divf %272, %273 : vector<8x1xf32>
    %275 = vector.broadcast %274 : vector<8x1xf32> to vector<8x32xf32>
    %276 = arith.subf %266, %275 : vector<8x32xf32>
    %277 = arith.mulf %276, %276 : vector<8x32xf32>
    %cst_115 = arith.constant dense<0.000000e+00> : vector<8xf32>
    %278 = vector.multi_reduction <add>, %277, %cst_115 [1] : vector<8x32xf32> to vector<8xf32>
    %279 = vector.shape_cast %278 : vector<8xf32> to vector<8x1xf32>
    %cst_116 = arith.constant 3.200000e+01 : f32
    %280 = vector.broadcast %cst_116 : f32 to vector<8x1xf32>
    %281 = arith.divf %279, %280 : vector<8x1xf32>
    %282 = vector.broadcast %274 : vector<8x1xf32> to vector<8x32xf32>
    %283 = arith.subf %266, %282 : vector<8x32xf32>
    %cst_117 = arith.constant 9.99999974E-6 : f32
    %284 = vector.broadcast %cst_117 : f32 to vector<8x1xf32>
    %285 = arith.addf %281, %284 : vector<8x1xf32>
    %286 = math.rsqrt %285 : vector<8x1xf32>
    %287 = vector.broadcast %286 : vector<8x1xf32> to vector<8x32xf32>
    %288 = arith.mulf %283, %287 : vector<8x32xf32>
    %289 = vector.broadcast %268 : vector<1x32xf32> to vector<8x32xf32>
    %290 = arith.mulf %288, %289 : vector<8x32xf32>
    %291 = vector.broadcast %270 : vector<1x32xf32> to vector<8x32xf32>
    %292 = arith.addf %290, %291 : vector<8x32xf32>
    %c1_118 = arith.constant 1 : index
    %c0_119 = arith.constant 0 : index
    %c0_120 = arith.constant 0 : index
    %293 = vector.load %arg8[%c1_118, %c0_119, %c0_120] : memref<2x32x2048xbf16, #tpu.memory_space<vmem>>, vector<1x32x2048xbf16>
    %294 = vector.shape_cast %293 : vector<1x32x2048xbf16> to vector<32x2048xbf16>
    %295 = arith.truncf %292 : vector<8x32xf32> to vector<8x32xbf16>
    %cst_121 = arith.constant dense<0.000000e+00> : vector<8x2048xf32>
    %296 = tpu.matmul %295, %294, %cst_121 {dimension_numbers = #tpu.dot_dimension_numbers<[1], [0], [0], [1], [0, 0, 1, 1], [], []>} : vector<8x32xbf16>, vector<32x2048xbf16>, vector<8x2048xf32> -> vector<8x2048xf32>
    %c1_122 = arith.constant 1 : index
    %c0_123 = arith.constant 0 : index
    %c0_124 = arith.constant 0 : index
    %297 = vector.load %arg9[%c1_122, %c0_123, %c0_124] : memref<2x1x2048xf32, #tpu.memory_space<vmem>>, vector<1x1x2048xf32>
    %298 = vector.shape_cast %297 : vector<1x1x2048xf32> to vector<1x2048xf32>
    %299 = vector.broadcast %298 : vector<1x2048xf32> to vector<8x2048xf32>
    %300 = arith.addf %296, %299 : vector<8x2048xf32>
    %cst_125 = arith.constant 0.000000e+00 : f32
    %301 = vector.broadcast %cst_125 : f32 to vector<8x2048xf32>
    %302 = arith.maximumf %300, %301 : vector<8x2048xf32>
    %c1_126 = arith.constant 1 : index
    %c0_127 = arith.constant 0 : index
    %c0_128 = arith.constant 0 : index
    %303 = vector.load %arg10[%c1_126, %c0_127, %c0_128] : memref<2x2048x32xbf16, #tpu.memory_space<vmem>>, vector<1x2048x32xbf16>
    %304 = vector.shape_cast %303 : vector<1x2048x32xbf16> to vector<2048x32xbf16>
    %305 = arith.truncf %302 : vector<8x2048xf32> to vector<8x2048xbf16>
    %cst_129 = arith.constant dense<0.000000e+00> : vector<8x32xf32>
    %306 = tpu.matmul %305, %304, %cst_129 {dimension_numbers = #tpu.dot_dimension_numbers<[1], [0], [0], [1], [0, 0, 1, 1], [], []>} : vector<8x2048xbf16>, vector<2048x32xbf16>, vector<8x32xf32> -> vector<8x32xf32>
    %c1_130 = arith.constant 1 : index
    %c0_131 = arith.constant 0 : index
    %c0_132 = arith.constant 0 : index
    %307 = vector.load %arg11[%c1_130, %c0_131, %c0_132] : memref<2x1x32xf32, #tpu.memory_space<vmem>>, vector<1x1x32xf32>
    %308 = vector.shape_cast %307 : vector<1x1x32xf32> to vector<1x32xf32>
    %309 = vector.broadcast %308 : vector<1x32xf32> to vector<8x32xf32>
    %310 = arith.addf %306, %309 : vector<8x32xf32>
    %311 = arith.addf %292, %310 : vector<8x32xf32>
    %c1_133 = arith.constant 1 : index
    %c0_134 = arith.constant 0 : index
    %c0_135 = arith.constant 0 : index
    %312 = vector.load %arg12[%c1_133, %c0_134, %c0_135] : memref<2x1x32xf32, #tpu.memory_space<vmem>>, vector<1x1x32xf32>
    %313 = vector.shape_cast %312 : vector<1x1x32xf32> to vector<1x32xf32>
    %c1_136 = arith.constant 1 : index
    %c0_137 = arith.constant 0 : index
    %c0_138 = arith.constant 0 : index
    %314 = vector.load %arg13[%c1_136, %c0_137, %c0_138] : memref<2x1x32xf32, #tpu.memory_space<vmem>>, vector<1x1x32xf32>
    %315 = vector.shape_cast %314 : vector<1x1x32xf32> to vector<1x32xf32>
    %cst_139 = arith.constant dense<0.000000e+00> : vector<8xf32>
    %316 = vector.multi_reduction <add>, %311, %cst_139 [1] : vector<8x32xf32> to vector<8xf32>
    %317 = vector.shape_cast %316 : vector<8xf32> to vector<8x1xf32>
    %cst_140 = arith.constant 3.200000e+01 : f32
    %318 = vector.broadcast %cst_140 : f32 to vector<8x1xf32>
    %319 = arith.divf %317, %318 : vector<8x1xf32>
    %320 = vector.broadcast %319 : vector<8x1xf32> to vector<8x32xf32>
    %321 = arith.subf %311, %320 : vector<8x32xf32>
    %322 = arith.mulf %321, %321 : vector<8x32xf32>
    %cst_141 = arith.constant dense<0.000000e+00> : vector<8xf32>
    %323 = vector.multi_reduction <add>, %322, %cst_141 [1] : vector<8x32xf32> to vector<8xf32>
    %324 = vector.shape_cast %323 : vector<8xf32> to vector<8x1xf32>
    %cst_142 = arith.constant 3.200000e+01 : f32
    %325 = vector.broadcast %cst_142 : f32 to vector<8x1xf32>
    %326 = arith.divf %324, %325 : vector<8x1xf32>
    %327 = vector.broadcast %319 : vector<8x1xf32> to vector<8x32xf32>
    %328 = arith.subf %311, %327 : vector<8x32xf32>
    %cst_143 = arith.constant 9.99999974E-6 : f32
    %329 = vector.broadcast %cst_143 : f32 to vector<8x1xf32>
    %330 = arith.addf %326, %329 : vector<8x1xf32>
    %331 = math.rsqrt %330 : vector<8x1xf32>
    %332 = vector.broadcast %331 : vector<8x1xf32> to vector<8x32xf32>
    %333 = arith.mulf %328, %332 : vector<8x32xf32>
    %334 = vector.broadcast %313 : vector<1x32xf32> to vector<8x32xf32>
    %335 = arith.mulf %333, %334 : vector<8x32xf32>
    %336 = vector.broadcast %315 : vector<1x32xf32> to vector<8x32xf32>
    %337 = arith.addf %335, %336 : vector<8x32xf32>
    %338 = vector.extract_strided_slice %337 {offsets = [0, 0], sizes = [1, 32], strides = [1, 1]} : vector<8x32xf32> to vector<1x32xf32>
    %c0_144 = arith.constant 0 : index
    %c0_145 = arith.constant 0 : index
    %339 = vector.load %arg14[%c0_144, %c0_145] : memref<32x128xbf16, #tpu.memory_space<vmem>>, vector<32x128xbf16>
    %340 = arith.truncf %338 : vector<1x32xf32> to vector<1x32xbf16>
    %cst_146 = arith.constant dense<0.000000e+00> : vector<1x128xf32>
    %341 = tpu.matmul %340, %339, %cst_146 {dimension_numbers = #tpu.dot_dimension_numbers<[1], [0], [0], [1], [0, 0, 1, 1], [], []>} : vector<1x32xbf16>, vector<32x128xbf16>, vector<1x128xf32> -> vector<1x128xf32>
    %c0_147 = arith.constant 0 : index
    %c0_148 = arith.constant 0 : index
    %342 = vector.load %arg15[%c0_147, %c0_148] : memref<1x128xf32, #tpu.memory_space<vmem>>, vector<1x128xf32>
    %343 = arith.addf %341, %342 : vector<1x128xf32>
    %c0_149 = arith.constant 0 : index
    %344 = memref.load %arg16[%c0_149] : memref<1xf32, #tpu.memory_space<smem>>
    %cst_150 = arith.constant 0.000000e+00 : f32
    %345 = vector.broadcast %cst_150 : f32 to vector<1x128xf32>
    %346 = arith.cmpf ogt, %343, %345 : vector<1x128xf32>
    %347 = vector.broadcast %344 : f32 to vector<1x128xf32>
    %348 = arith.mulf %347, %343 : vector<1x128xf32>
    %349 = arith.select %346, %343, %348 : vector<1x128xi1>, vector<1x128xf32>
    %c0_151 = arith.constant 0 : index
    %c0_152 = arith.constant 0 : index
    %350 = vector.load %arg17[%c0_151, %c0_152] : memref<128x2xbf16, #tpu.memory_space<vmem>>, vector<128x2xbf16>
    %351 = arith.truncf %349 : vector<1x128xf32> to vector<1x128xbf16>
    %cst_153 = arith.constant dense<0.000000e+00> : vector<1x2xf32>
    %352 = tpu.matmul %351, %350, %cst_153 {dimension_numbers = #tpu.dot_dimension_numbers<[1], [0], [0], [1], [0, 0, 1, 1], [], []>} : vector<1x128xbf16>, vector<128x2xbf16>, vector<1x2xf32> -> vector<1x2xf32>
    %c0_154 = arith.constant 0 : index
    %c0_155 = arith.constant 0 : index
    %353 = vector.load %arg18[%c0_154, %c0_155] : memref<1x2xf32, #tpu.memory_space<vmem>>, vector<1x2xf32>
    %354 = arith.addf %352, %353 : vector<1x2xf32>
    %c0_156 = arith.constant 0 : index
    %c0_157 = arith.constant 0 : index
    %c0_158 = arith.constant 0 : index
    %355 = vector.load %arg19[%c0_156, %c0_157, %c0_158] : memref<1x1x2xf32, #tpu.memory_space<vmem>>, vector<1x1x2xf32>
    %356 = vector.shape_cast %355 : vector<1x1x2xf32> to vector<1x2xf32>
    %357 = vector.shape_cast %354 : vector<1x2xf32> to vector<1x1x2xf32>
    tpu.vector_store %arg19[%c0_156, %c0_157, %c0_158], %357 {strides = array<i32>} : memref<1x1x2xf32, #tpu.memory_space<vmem>>, vector<1x1x2xf32>,
    return
  }
  func.func @transform_0(%arg0: i32) -> (i32, i32, i32) {
    %c0_i32 = arith.constant 0 : i32
    %c0_i32_0 = arith.constant 0 : i32
    %c0_i32_1 = arith.constant 0 : i32
    return %arg0, %c0_i32, %c0_i32_0 : i32, i32, i32
  }
  func.func @transform_1(%arg0: i32) -> (i32, i32, i32) {
    %c0_i32 = arith.constant 0 : i32
    %c0_i32_0 = arith.constant 0 : i32
    %c0_i32_1 = arith.constant 0 : i32
    %c0_i32_2 = arith.constant 0 : i32
    return %c0_i32, %c0_i32_0, %c0_i32_1 : i32, i32, i32
  }
  func.func @transform_2(%arg0: i32) -> (i32, i32, i32) {
    %c0_i32 = arith.constant 0 : i32
    %c0_i32_0 = arith.constant 0 : i32
    %c0_i32_1 = arith.constant 0 : i32
    %c0_i32_2 = arith.constant 0 : i32
    return %c0_i32, %c0_i32_0, %c0_i32_1 : i32, i32, i32
  }
  func.func @transform_3(%arg0: i32) -> (i32, i32, i32) {
    %c0_i32 = arith.constant 0 : i32
    %c0_i32_0 = arith.constant 0 : i32
    %c0_i32_1 = arith.constant 0 : i32
    %c0_i32_2 = arith.constant 0 : i32
    return %c0_i32, %c0_i32_0, %c0_i32_1 : i32, i32, i32
  }
  func.func @transform_4(%arg0: i32) -> (i32, i32, i32) {
    %c0_i32 = arith.constant 0 : i32
    %c0_i32_0 = arith.constant 0 : i32
    %c0_i32_1 = arith.constant 0 : i32
    %c0_i32_2 = arith.constant 0 : i32
    return %c0_i32, %c0_i32_0, %c0_i32_1 : i32, i32, i32
  }
  func.func @transform_5(%arg0: i32) -> (i32, i32, i32) {
    %c0_i32 = arith.constant 0 : i32
    %c0_i32_0 = arith.constant 0 : i32
    %c0_i32_1 = arith.constant 0 : i32
    %c0_i32_2 = arith.constant 0 : i32
    return %c0_i32, %c0_i32_0, %c0_i32_1 : i32, i32, i32
  }
  func.func @transform_6(%arg0: i32) -> (i32, i32, i32) {
    %c0_i32 = arith.constant 0 : i32
    %c0_i32_0 = arith.constant 0 : i32
    %c0_i32_1 = arith.constant 0 : i32
    %c0_i32_2 = arith.constant 0 : i32
    return %c0_i32, %c0_i32_0, %c0_i32_1 : i32, i32, i32
  }
  func.func @transform_7(%arg0: i32) -> (i32, i32, i32) {
    %c0_i32 = arith.constant 0 : i32
    %c0_i32_0 = arith.constant 0 : i32
    %c0_i32_1 = arith.constant 0 : i32
    %c0_i32_2 = arith.constant 0 : i32
    return %c0_i32, %c0_i32_0, %c0_i32_1 : i32, i32, i32
  }
  func.func @transform_8(%arg0: i32) -> (i32, i32, i32) {
    %c0_i32 = arith.constant 0 : i32
    %c0_i32_0 = arith.constant 0 : i32
    %c0_i32_1 = arith.constant 0 : i32
    %c0_i32_2 = arith.constant 0 : i32
    return %c0_i32, %c0_i32_0, %c0_i32_1 : i32, i32, i32
  }
  func.func @transform_9(%arg0: i32) -> (i32, i32, i32) {
    %c0_i32 = arith.constant 0 : i32
    %c0_i32_0 = arith.constant 0 : i32
    %c0_i32_1 = arith.constant 0 : i32
    %c0_i32_2 = arith.constant 0 : i32
    return %c0_i32, %c0_i32_0, %c0_i32_1 : i32, i32, i32
  }
  func.func @transform_10(%arg0: i32) -> (i32, i32, i32) {
    %c0_i32 = arith.constant 0 : i32
    %c0_i32_0 = arith.constant 0 : i32
    %c0_i32_1 = arith.constant 0 : i32
    %c0_i32_2 = arith.constant 0 : i32
    return %c0_i32, %c0_i32_0, %c0_i32_1 : i32, i32, i32
  }
  func.func @transform_11(%arg0: i32) -> (i32, i32, i32) {
    %c0_i32 = arith.constant 0 : i32
    %c0_i32_0 = arith.constant 0 : i32
    %c0_i32_1 = arith.constant 0 : i32
    %c0_i32_2 = arith.constant 0 : i32
    return %c0_i32, %c0_i32_0, %c0_i32_1 : i32, i32, i32
  }
  func.func @transform_12(%arg0: i32) -> (i32, i32, i32) {
    %c0_i32 = arith.constant 0 : i32
    %c0_i32_0 = arith.constant 0 : i32
    %c0_i32_1 = arith.constant 0 : i32
    %c0_i32_2 = arith.constant 0 : i32
    return %c0_i32, %c0_i32_0, %c0_i32_1 : i32, i32, i32
  }
  func.func @transform_13(%arg0: i32) -> (i32, i32) {
    %c0_i32 = arith.constant 0 : i32
    %c0_i32_0 = arith.constant 0 : i32
    %c0_i32_1 = arith.constant 0 : i32
    return %c0_i32, %c0_i32_0 : i32, i32
  }
  func.func @transform_14(%arg0: i32) -> (i32, i32) {
    %c0_i32 = arith.constant 0 : i32
    %c0_i32_0 = arith.constant 0 : i32
    %c0_i32_1 = arith.constant 0 : i32
    return %c0_i32, %c0_i32_0 : i32, i32
  }
  func.func @transform_15(%arg0: i32) -> i32 {
    %c0_i32 = arith.constant 0 : i32
    %c0_i32_0 = arith.constant 0 : i32
    return %c0_i32 : i32
  }
  func.func @transform_16(%arg0: i32) -> (i32, i32) {
    %c0_i32 = arith.constant 0 : i32
    %c0_i32_0 = arith.constant 0 : i32
    %c0_i32_1 = arith.constant 0 : i32
    return %c0_i32, %c0_i32_0 : i32, i32
  }
  func.func @transform_17(%arg0: i32) -> (i32, i32) {
    %c0_i32 = arith.constant 0 : i32
    %c0_i32_0 = arith.constant 0 : i32
    %c0_i32_1 = arith.constant 0 : i32
    return %c0_i32, %c0_i32_0 : i32, i32
  }
  func.func @transform_18(%arg0: i32) -> (i32, i32, i32) {
    %c0_i32 = arith.constant 0 : i32
    %c0_i32_0 = arith.constant 0 : i32
    %c0_i32_1 = arith.constant 0 : i32
    return %arg0, %c0_i32, %c0_i32_0 : i32, i32, i32
  }
}

</mosaic_0001>

<bundles_post_ra>
// kernel: tpu_custom_call.1
= control target key start
LH: loop header
LB: loop body
LE: loop exit
PB: predicated region body
PF: predicated region fallthrough
CT: control target
= control target key end

     0   :  { %s10256_s0 = inlined_call_operand.vmem [shape: f32[2,8,32], index: 0, kind: input, shape index: {}]   ;;  %s10257_s1 = inlined_call_operand.vmem [shape: bf16[2,32,96], index: 1, kind: input, shape index: {}]   ;;  %s10258_s2 = inlined_call_operand.vmem [shape: f32[2,1,96], index: 2, kind: input, shape index: {}]   ;;  %s10259_s3 = inlined_call_operand.vmem [shape: bf16[2,32,32], index: 3, kind: input, shape index: {}]   ;;  %s10260_s4 = inlined_call_operand.vmem [shape: f32[2,1,32], index: 4, kind: input, shape index: {}]   ;;  %s10261_s5 = inlined_call_operand.vmem [shape: f32[2,1,32], index: 5, kind: input, shape index: {}]   ;;  %s10262_s6 = inlined_call_operand.vmem [shape: f32[2,1,32], index: 6, kind: input, shape index: {}]   ;;  %s10263_s7 = inlined_call_operand.vmem [shape: bf16[2,32,2048], index: 7, kind: input, shape index: {}]   ;;  %s10264_s8 = inlined_call_operand.vmem [shape: f32[2,1,2048], index: 8, kind: input, shape index: {}]   ;;  %s10265_s9 = inlined_call_operand.vmem [shape: bf16[2,2048,32], index: 9, kind: input, shape index: {}]   ;;  %s10266_s10 = inlined_call_operand.vmem [shape: f32[2,1,32], index: 10, kind: input, shape index: {}]   ;;  %s10267_s11 = inlined_call_operand.vmem [shape: f32[2,1,32], index: 11, kind: input, shape index: {}]   ;;  %s10268_s12 = inlined_call_operand.vmem [shape: f32[2,1,32], index: 12, kind: input, shape index: {}]   ;;  %s10269_s13 = inlined_call_operand.vmem [shape: bf16[32,128], index: 13, kind: input, shape index: {}]   ;;  %s10270_s14 = inlined_call_operand.vmem [shape: f32[1,128], index: 14, kind: input, shape index: {}]   ;;  %s10271_s15 = inlined_call_operand.<no memory space> [shape: f32[1], index: 15, kind: input, shape index: {}]   ;;  %s10272_s16 = inlined_call_operand.vmem [shape: bf16[128,2], index: 16, kind: input, shape index: {}]   ;;  %s10273_s17 = inlined_call_operand.vmem [shape: f32[1,2], index: 17, kind: input, shape index: {}]   ;;  %s10274_s18 = inlined_call_operand.hbm [shape: f32[2,1,2], index: 18, kind: output, shape index: {}]  }
   0x1   :  { %10293 = sst [smem:[#allocation11_spill]] %s10256_s0 }
   0x2   :  { %10294 = sst [smem:[#allocation12_spill]] %s10257_s1 }
   0x3   :  { %10295 = sst [smem:[#allocation13_spill]] %s10258_s2 }
   0x4   :  { %10296 = sst [smem:[#allocation14_spill]] %s10259_s3 }
   0x5   :  { %23 = sst [smem:[#allocation2]] %s10271_s15 }
   0x6   :  { %24 = vsyncpa [#allocation4], 0 }
   0x7   :  { %26 = vsyncpa [#allocation4 + $0x1], 0  ;;  %s8634_s29 = smov 0   ;;  %s8636_s30 = smov 0  }
   0x8   :  { %s8638_s0 = smov 0   ;;  %s8640_s19 = smov 0  }
   0x9 LB: > { %10297 = sst [smem:[#allocation6_spill]] %s8507_s29  ;;  %s8655_s15 = sadd.s32 4294967295, %s8519_s19   ;;  %s8519_s19 = sphi %s8640_s19, %s10321_s19   ;;  %s8515_s0 = sphi %s8638_s0, %s10323_s0   ;;  %s8511_s30 = sphi %s8636_s30, %s10325_s30   ;;  %s8507_s29 = sphi %s8634_s29, %s10324_s29  }
   0xa   : > { %10298 = sst [smem:[#allocation7_spill]] %s8515_s0  ;;  %s6793_s1 = sadd.s32 4294967294, %s8519_s19  }
   0xb   : > { %s8659_s20 = sadd.s32 1, %s8519_s19   ;;  %s422_s21 = sadd.s32 1, %s8515_s0 }
   0xc   : > { %10299 = sst [smem:[#allocation8_spill]] %s8659_s20  ;;  %s419_s22 = ssub.s32 %s8519_s19, %s8659_s20 }
   0xd   : > { %p432_p0 = scmp.ne.s32.totalorder %s8515_s0, %s8511_s30  ;;  %p420_p1 = scmp.eq.s32.totalorder %s419_s22, 0 }
   0xe   : > { %p433_p2 = scmp.eq.s32.totalorder %s8655_s15, 1  ;;  %p438_p3 = scmp.ne.s32.totalorder %s8511_s30, %s8507_s29 }
   0xf   : > { %p439_p4 = scmp.eq.s32.totalorder %s6793_s1, 1  ;;  %p6796_p7 = scmp.ge.s32.totalorder %s8519_s19, 1 }
  0x10   : > { %s8670_s2 = scalar_select %p420_p1, %s8515_s0, %s422_s21  }
  0x11   : > { %p8672_p5 = por %p433_p2, %p432_p0  ;;  %p8676_p6 = por %p439_p4, %p438_p3 }
  0x12   : > { %10300 = sst [smem:[#allocation9_spill]] %s8670_s2  ;;  %p515_p8 = scmp.lt.s32.totalorder %s8519_s19, 3 }
  0x13   : > { %s10302_s24 = scalar_select %p8676_p6, 1, 0 }
  0x14   : > { %p516_p9 = pnand %p6796_p7, %p515_p8 }
  0x15   : > { %10303 = sst [smem:[#allocation10_spill]] %s10302_s24  ;;  %p567_p10 = scmp.lt.s32.totalorder (!%p516_p9), %s8655_s15, 1 }
  0x16   : > { %519 = sbr.rel (%p516_p9) target bundleno = 8058 (0x1f7a), region = 92  ;;  %s10304_s27 = sld [smem:[#allocation12_spill]] (!%p516_p9) }
  0x17   : > { %s10305_s2 = sld [smem:[#allocation11_spill]] (!%p516_p9)  ;;  %s10281_s25 = smov (!%p516_p9), 120  }
  0x18   : > { %s10306_s20 = sld [smem:[#allocation13_spill]] (!%p516_p9)  ;;  %s10283_s26 = smov (!%p516_p9), 56  }
  0x19   : > { %s10282_s28 = smov (!%p516_p9), 80   ;;  %s10288_s1 = smov (!%p516_p9), 112  }
  0x1a   : > { %s10307_s3 = sld [smem:[#allocation14_spill]] (!%p516_p9)  ;;  %s10308_s29 = smov (!%p516_p9), 88  }
  0x1b   : > { %v8521_v1 = vmov 0.0   ;;  %vm8522_vm0 = vmmov 0   ;;  %s568_s21 = scalar_select %p567_p10, %s8655_s15, 1  ;;  %vm597_vm1 = vcmask 261120   ;;  %vm649_vm2 = vcmask 64512  }
  0x1c   : > { %v8148_v0 = vld [vmem:[%s10304_s27 + $0x8] sm:$0xff]   ;;  %7923 = vmatprep.subr.bf16.mxu1 %v8521_v1  ;;  %7946 = vmatprep.subr.mxu0 %v8521_v1  ;;  %v8149_v2 = vld [vmem:[%s10304_s27] sm:$0xff]   ;;  %vm982_vm3 = vcmask 1043456   ;;  %s10309_s24 = smov 96   ;;  %vm6723_vm5 = vcmask 8192  }
  0x1d   : > { %7924 = vmatpush3.bf16.msra.mxu1 %v8148_v0  ;;  %7927 = vmatprep.mubr.msk.bf16.mxu1 %vm8522_vm0, %v8521_v1  ;;  %s6797_s22 = sshll.u32 %s568_s21, 3  ;;  %s10289_s21 = smov 96  }
  0x1e   : > { %7925 = vmatprep.subr.bf16.mxu1 %v8521_v1  ;;  %7948 = vmatprep.mubr.msk.f32.mxu0 %vm8522_vm0, %v8521_v1  ;;  %s8700_s0 = scalar_lea.vmem %s10305_s2, %s6797_s22  ;;  %v6798_v5 = vld [vmem:[%s10306_s20] ss:$0 sm:$0xff]  ;;  %s10280_s2 = smov 64  }
  0x1f   : > { %v572_v3 = vld [vmem:[%s8700_s0] sm:$0xff]  ;;  %s10290_s22 = smov 88  }
  0x20   : > { %v577_v4 = vpack.c.bf16 %v572_v3, %v572_v3  ;;  %v643_v37 = vld [vmem:[%s10307_s3 + $0x4] sm:$0xf]  ;;  %v642_v41 = vld [vmem:[%s10307_s3] sm:$0xf] }
  0x21   : > { %7926 = vmatpush3.bf16.msra.mxu1 %v8149_v2  ;;  %v984_v38 = vsel %vm982_vm3, %v643_v37, 0  ;;  %v1030_v44 = vsel %vm982_vm3, %v642_v41, 0 }
  0x22   : > { %7931 = vmatprep.subr.mxu1 %v8521_v1 }
  0x24   : > { %7928 = vmatmul.mubr.msk.bf16.vlgmr.msra.gmra.mxu1 %vm597_vm1, %v577_v4 }
  0x25   : > { %7933 = vmatprep.mubr.msk.f32.mxu1 %vm8522_vm0, %v8521_v1 }
  0xe4   : > { %v635_v6 = vpop.f32.mrf.mxu1 }
  0xe5   : > { %v8710_v7 = vadd.f32 %v6798_v5, %v635_v6 }
  0xe6   : > { %v7929_v8 = vpop.f32.mrf.mxu1 }
  0xe7   : > { %736 = vrot.lane.b32.xlu1 %v8710_v7, %s10280_s2  ;;  %647 = vrot.lane.b32.xlu0 %v8710_v7, %s10289_s21  ;;  %v8720_v12 = vmul.f32 0.35355338, %v8710_v7  ;;  %s10287_s2 = smov 48   ;;  %s10310_s21 = smov 120  }
  0xe8   : > { %v638_v9 = vpop.f32.mrf.mxu1 }
  0xea   : > { %v7930_v10 = vpop.f32.mrf.mxu1 }
  0xeb   : > { %815 = vrot.lane.b32.xlu1 %v8710_v7, %s10290_s22  ;;  %s10311_s22 = smov 56  }
 0x159   : > { %v648_v11 = vpop.permute.xlu0 %647  ;;  %v737_v13 = vpop.permute.xlu1 %736 }
 0x15a   : > { %7932 = vmatpush3.xpose.msk.msra.mxu1 %vm649_vm2, %v648_v11  ;;  %v644_v11 = vld [vmem:[%s10307_s3 + $0x8] sm:$0xf] }
 0x15b   : > { %7936 = vmatprep.subr.mxu1 %v8521_v1 }
 0x15d   : > { %7934 = vmatmul.mubr.msk.f32.vlgmr.msra.gmra.mxu1 %vm649_vm2, %v8720_v12  ;;  %v816_v22 = vpop.permute.xlu1 %815 }
 0x15e   : > { %7937 = vmatpush3.msra.mxu1 %v737_v13  ;;  %7938 = vmatprep.mubr.msk.f32.mxu1 %vm8522_vm0, %v8521_v1 }
 0x15f   : > { %7941 = vmatprep.subr.mxu1 %v8521_v1 }
 0x21d   : > { %v721_v14 = vpop.f32.mrf.mxu1 }
 0x21e   : > { %v725_v15 = vsel %vm649_vm2, %v721_v14, -inf }
 0x21f   : > { %726 = vmax.xlane.f32.xlu0 %v725_v15  ;;  %v7935_v16 = vpop.f32.mrf.mxu1 }
 0x2a8   : > { %v727_v17 = vpop.xlane.xlu0 %726 }
 0x2a9   : > { %v728_v18 = vsub.f32 %v721_v14, %v727_v17 }
 0x2ab   : > { %v729_v19 = vmul.f32 1.442695, %v728_v18 }
 0x2ad   : > { %8418 = vpow2.f32 %v729_v19 }
 0x2ba   : > { %v8419_v20 = vpop.eup %8418 }
 0x2bb   : > { %v731_v21 = vsel %vm649_vm2, %v8419_v20, 0.0 }
 0x2bc   : > { %732 = vadd.xlane.f32.xlu1 %v731_v21 }
 0x2cd   : > { %813 = vrot.lane.b32.xlu1 %v8720_v12, %s10281_s25  ;;  %s10284_s25 = smov 72  }
 0x345   : > { %v733_v23 = vpop.xlane.xlu1 %732 }
 0x346   : > { %8420 = vrcp.f32 %v733_v23 }
 0x349   : > { %v814_v26 = vpop.permute.xlu1 %813 }
 0x353   : > { %v8421_v24 = vpop.eup %8420 }
 0x354   : > { %v735_v25 = vmul.f32 %v8421_v24, %v8419_v20 }
 0x356   : > { %7939 = vmatmul.mubr.msk.f32.vlgmr.msra.gmra.mxu1 %vm649_vm2, %v735_v25 }
 0x357   : > { %7942 = vmatpush3.xpose.msk.msra.mxu1 %vm649_vm2, %v816_v22  ;;  %7943 = vmatprep.mubr.msk.f32.mxu1 %vm8522_vm0, %v8521_v1 }
 0x358   : > { %7951 = vmatprep.subr.bf16.mxu1 %v8521_v1 }
 0x35a   : > { %7944 = vmatmul.mubr.msk.f32.vlgmr.msra.gmra.mxu1 %vm649_vm2, %v814_v26 }
 0x35b   : > { %7953 = vmatprep.mubr.msk.bf16.mxu1 %vm8522_vm0, %v8521_v1  ;;  %7952 = vmatpush3.bf16.msra.mxu1 %v984_v38 }
 0x35c   : > { %7963 = vmatprep.subr.mxu1 %v8521_v1 }
 0x416   : > { %v808_v27 = vpop.f32.mrf.mxu1 }
 0x417   : > { %v812_v45 = vpack.c.bf16 %v808_v27, %v808_v27 }
 0x418   : > { %v7940_v28 = vpop.f32.mrf.mxu1 }
 0x41a   : > { %v887_v29 = vpop.f32.mrf.mxu1 }
 0x41b   : > { %v891_v30 = vsel %vm649_vm2, %v887_v29, -inf }
 0x41c   : > { %892 = vmax.xlane.f32.xlu1 %v891_v30  ;;  %v7945_v31 = vpop.f32.mrf.mxu1 }
 0x4a5   : > { %v893_v32 = vpop.xlane.xlu1 %892 }
 0x4a6   : > { %v894_v33 = vsub.f32 %v887_v29, %v893_v32 }
 0x4a8   : > { %v895_v34 = vmul.f32 1.442695, %v894_v33 }
 0x4aa   : > { %8422 = vpow2.f32 %v895_v34 }
 0x4b7   : > { %v8423_v35 = vpop.eup %8422 }
 0x4b8   : > { %v897_v36 = vsel %vm649_vm2, %v8423_v35, 0.0 }
 0x4b9   : > { %898 = vadd.xlane.f32.xlu0 %v897_v36 }
 0x4cf   : > { %902 = vrot.lane.b32.xlu0 %v8710_v7, %s10283_s26  ;;  %s10285_s26 = smov 104  }
 0x4d3   : > { %1074 = vrot.lane.b32.xlu0 %v8710_v7, %s10282_s28 }
 0x4d7   : > { %1072 = vrot.lane.b32.xlu0 %v8720_v12, %s10288_s1  ;;  %s565_s1 = sand.u32 1, %s8511_s30  }
 0x4d8   : > { %s6726_s28 = scalar_lea.sflag [#allocation4], %s565_s1 }
 0x542   : > { %v899_v39 = vpop.xlane.xlu0 %898 }
 0x543   : > { %8424 = vrcp.f32 %v899_v39  ;;  %v6818_v39 = vld [vmem:[%s10260_s4] ss:$0 sm:$0xff] }
 0x546   : > { %v903_v40 = vpop.permute.xlu0 %902 }
 0x547   : > { %7947 = vmatpush3.msra.mxu0 %v903_v40 }
 0x548   : > { %7957 = vmatprep.subr.bf16.mxu0 %v8521_v1 }
 0x54a   : > { %v1075_v49 = vpop.permute.xlu0 %1074 }
 0x54e   : > { %v1073_v53 = vpop.permute.xlu0 %1072 }
 0x550   : > { %v8425_v42 = vpop.eup %8424 }
 0x551   : > { %v901_v43 = vmul.f32 %v8425_v42, %v8423_v35 }
 0x553   : > { %7949 = vmatmul.mubr.msk.f32.vlgmr.msra.gmra.mxu0 %vm649_vm2, %v901_v43 }
 0x554   : > { %7958 = vmatpush3.bf16.msra.mxu0 %v1030_v44  ;;  %7959 = vmatprep.mubr.msk.bf16.mxu0 %vm8522_vm0, %v8521_v1  ;;  %v8458_v44 = vld [vmem:[%s8700_s0] sm:$0xff]  ;;  %s8535_s0 = smov [#allocation3]  }
 0x555   : > { %7968 = vmatprep.subr.mxu0 %v8521_v1 }
 0x557   : > { %7960 = vmatmul.mubr.msk.bf16.vlgmr.msra.gmra.mxu0 %vm649_vm2, %v812_v45 }
 0x558   : > { %7970 = vmatprep.mubr.msk.f32.mxu0 %vm8522_vm0, %v8521_v1 }
 0x613   : > { %v974_v46 = vpop.f32.mrf.mxu0 }
 0x614   : > { %v978_v47 = vpack.c.bf16 %v974_v46, %v974_v46 }
 0x615   : > { %v7950_v48 = vpop.f32.mrf.mxu0 }
 0x616   : > { %7954 = vmatmul.mubr.msk.bf16.vlgmr.msra.gmra.mxu1 %vm649_vm2, %v978_v47 }
 0x617   : > { %7964 = vmatpush3.xpose.msk.msra.mxu1 %vm649_vm2, %v1075_v49  ;;  %v8767_v50 = vpop.f32.mrf.mxu0  ;;  %7965 = vmatprep.mubr.msk.f32.mxu1 %vm8522_vm0, %v8521_v1 }
 0x618   : > { %7973 = vmatprep.subr.bf16.mxu1 %v8521_v1 }
 0x619   : > { %v7961_v51 = vpop.f32.mrf.mxu0 }
 0x61b   : > { %v1069_v52 = vpop.f32.mrf.mxu0 }
 0x61d   : > { %v7962_v54 = vpop.f32.mrf.mxu0 }
 0x61e   : > { %7966 = vmatmul.mubr.msk.f32.vlgmr.msra.gmra.mxu1 %vm649_vm2, %v1073_v53  ;;  %v1553_v53 = vld [vmem:[%s10263_s7 + $0x80] sm:$0xff] }
 0x61f   : > { %7975 = vmatprep.mubr.msk.bf16.mxu1 %vm8522_vm0, %v8521_v1  ;;  %v1561_v54 = vld [vmem:[%s10263_s7 + $0xc0] sm:$0xff] }
 0x6d6   : > { %v1020_v55 = vpop.f32.mrf.mxu1 }
 0x6d7   : > { %v1067_v24 = vadd.f32 %v8767_v50, %v1020_v55  ;;  %v1554_v55 = vld [vmem:[%s10263_s7 + $0x88] sm:$0xff] }
 0x6d8   : > { %v7955_v56 = vpop.f32.mrf.mxu1 }
 0x6d9   : > { %v6838_v56 = vcombine.high %v1553_v53, %v1561_v54 }
 0x6da   : > { %v1023_v57 = vpop.f32.mrf.mxu1 }
 0x6db   : > { %v1562_v57 = vld [vmem:[%s10263_s7 + $0xc8] sm:$0xff] }
 0x6dc   : > { %v7956_v58 = vpop.f32.mrf.mxu1 }
 0x6dd   : > { %v6837_v58 = vcombine.low %v1553_v53, %v1561_v54 }
 0x6de   : > { %v1146_v59 = vpop.f32.mrf.mxu1 }
 0x6df   : > { %v1150_v60 = vsel %vm649_vm2, %v1146_v59, -inf }
 0x6e0   : > { %1151 = vmax.xlane.f32.xlu1 %v1150_v60  ;;  %v7967_v61 = vpop.f32.mrf.mxu1  ;;  %v6840_v60 = vcombine.high %v1554_v55, %v1562_v57 }
 0x6e1   : > { %v1537_v61 = vld [vmem:[%s10263_s7] sm:$0xff] }
 0x6f1   : > { %1161 = vrot.lane.b32.xlu1 %v8710_v7, %s10287_s2  ;;  %s10313_s2 = smov 80  }
 0x6f5   : > { %1287 = vrot.lane.b32.xlu1 %v8710_v7, %s10284_s25  ;;  %s10286_s25 = smov 40  }
 0x6f9   : > { %1285 = vrot.lane.b32.xlu1 %v8720_v12, %s10285_s26  ;;  %v1242_v12 = vsel %vm982_vm3, %v644_v11, 0  ;;  %s10312_s26 = smov 64  }
 0x6fa   : > { %7974 = vmatpush3.bf16.msra.mxu1 %v1242_v12  ;;  %v1564_v12 = vld [vmem:[%s10263_s7 + $0xd8] sm:$0xff] }
 0x6fb   : > { %7989 = vmatprep.subr.bf16.mxu1 %v8521_v1 }
 0x769   : > { %v1152_v62 = vpop.xlane.xlu1 %1151 }
 0x76a   : > { %v1153_v63 = vsub.f32 %v1146_v59, %v1152_v62  ;;  %v6839_v59 = vcombine.low %v1554_v55, %v1562_v57  ;;  %v1545_v62 = vld [vmem:[%s10263_s7 + $0x40] sm:$0xff]  ;;  %v1543_v55 = vld [vmem:[%s10263_s7 + $0x30] sm:$0xff]  ;;  %v1544_v57 = vld [vmem:[%s10263_s7 + $0x38] sm:$0xff] }
 0x76c   : > { %v1154_v0 = vmul.f32 1.442695, %v1153_v63  ;;  %v1538_v63 = vld [vmem:[%s10263_s7 + $0x8] sm:$0xff] }
 0x76d   : > { %v1162_v2 = vpop.permute.xlu1 %1161 }
 0x76e   : > { %8426 = vpow2.f32 %v1154_v0  ;;  %7969 = vmatpush3.msra.mxu0 %v1162_v2  ;;  %v6822_v0 = vcombine.high %v1537_v61, %v1545_v62  ;;  %v1546_v2 = vld [vmem:[%s10263_s7 + $0x48] sm:$0xff] }
 0x76f   : > { %7979 = vmatprep.subr.mxu0 %v8521_v1 }
 0x771   : > { %v1288_v8 = vpop.permute.xlu1 %1287 }
 0x775   : > { %v1286_v10 = vpop.permute.xlu1 %1285 }
 0x77b   : > { %v8427_v3 = vpop.eup %8426 }
 0x77c   : > { %v1156_v4 = vsel %vm649_vm2, %v8427_v3, 0.0 }
 0x77d   : > { %1157 = vadd.xlane.f32.xlu0 %v1156_v4  ;;  %v6823_v4 = vcombine.low %v1538_v63, %v1546_v2 }
 0x806   : > { %v1158_v5 = vpop.xlane.xlu0 %1157 }
 0x807   : > { %8428 = vrcp.f32 %v1158_v5  ;;  %v6824_v5 = vcombine.high %v1538_v63, %v1546_v2  ;;  %v8150_v2 = vld [vmem:[%s10265_s9 + $0x78] sm:$0xff]  }
 0x814   : > { %v8429_v6 = vpop.eup %8428 }
 0x815   : > { %v1160_v9 = vmul.f32 %v8429_v6, %v8427_v3  ;;  %v6821_v3 = vcombine.low %v1537_v61, %v1545_v62  ;;  %v1555_v6 = vld [vmem:[%s10263_s7 + $0x90] sm:$0xff] }
 0x817   : > { %7971 = vmatmul.mubr.msk.f32.vlgmr.msra.gmra.mxu0 %vm649_vm2, %v1160_v9  ;;  %v1556_v9 = vld [vmem:[%s10263_s7 + $0x98] sm:$0xff] }
 0x818   : > { %7980 = vmatpush3.xpose.msk.msra.mxu0 %vm649_vm2, %v1288_v8  ;;  %7981 = vmatprep.mubr.msk.f32.mxu0 %vm8522_vm0, %v8521_v1  ;;  %v1563_v8 = vld [vmem:[%s10263_s7 + $0xd0] sm:$0xff] }
 0x819   : > { %7984 = vmatprep.subr.mxu0 %v8521_v1  ;;  %v6842_v11 = vcombine.high %v1555_v6, %v1563_v8 }
 0x81b   : > { %7982 = vmatmul.mubr.msk.f32.vlgmr.msra.gmra.mxu0 %vm649_vm2, %v1286_v10  ;;  %v8534_v10 = vmov 0  }
 0x81c   : > { %7986 = vmatprep.mubr.msk.f32.mxu0 %vm8522_vm0, %v8521_v1 }
 0x8d7   : > { %v1233_v13 = vpop.f32.mrf.mxu0 }
 0x8d8   : > { %v1237_v14 = vpack.c.bf16 %v1233_v13, %v1233_v13  ;;  %v6841_v13 = vcombine.low %v1555_v6, %v1563_v8  ;;  %v8154_v6 = vld [vmem:[%s10265_s9 + $0x70] sm:$0xff]  }
 0x8d9   : > { %v7972_v15 = vpop.f32.mrf.mxu0  ;;  %v8155_v8 = vld [vmem:[%s10265_s9 + $0xf0] sm:$0xff]  }
 0x8da   : > { %7976 = vmatmul.mubr.msk.bf16.vlgmr.msra.gmra.mxu1 %vm649_vm2, %v1237_v14  ;;  %v6843_v14 = vcombine.low %v1556_v9, %v1564_v12  ;;  %v6844_v15 = vcombine.high %v1556_v9, %v1564_v12  ;;  %v8156_v9 = vld [vmem:[%s10265_s9 + $0x30] sm:$0xff]   ;;  %v8158_v12 = vld [vmem:[%s10265_s9 + $0x68] sm:$0xff]  }
 0x8db   : > { %v1359_v16 = vpop.f32.mrf.mxu0  ;;  %7991 = vmatprep.mubr.msk.bf16.mxu1 %vm8522_vm0, %v8521_v1 }
 0x8dc   : > { %v1363_v17 = vsel %vm649_vm2, %v1359_v16, -inf }
 0x8dd   : > { %1364 = vmax.xlane.f32.xlu1 %v1363_v17  ;;  %v7983_v18 = vpop.f32.mrf.mxu0 }
 0x966   : > { %v1365_v19 = vpop.xlane.xlu1 %1364 }
 0x967   : > { %v1366_v20 = vsub.f32 %v1359_v16, %v1365_v19 }
 0x969   : > { %v1367_v21 = vmul.f32 1.442695, %v1366_v20  ;;  %v6819_v20 = vld [vmem:[%s10261_s5] ss:$0 sm:$0xff] }
 0x96b   : > { %8430 = vpow2.f32 %v1367_v21 }
 0x978   : > { %v8431_v22 = vpop.eup %8430 }
 0x979   : > { %v1369_v23 = vsel %vm649_vm2, %v8431_v22, 0.0 }
 0x97a   : > { %1370 = vadd.xlane.f32.xlu0 %v1369_v23 }
 0x990   : > { %1374 = vrot.lane.b32.xlu0 %v8710_v7, %s10286_s25  ;;  %v645_v7 = vld [vmem:[%s10307_s3 + $0xc] sm:$0xf]  ;;  %s10314_s25 = smov 112  }
 0x991   : > { %v1455_v34 = vsel %vm982_vm3, %v645_v7, 0  ;;  %v1558_v7 = vld [vmem:[%s10263_s7 + $0xa8] sm:$0xff] }
 0x992   : > { %7990 = vmatpush3.bf16.msra.mxu1 %v1455_v34  ;;  %v1566_v34 = vld [vmem:[%s10263_s7 + $0xe8] sm:$0xff] }
 0x993   : > { %1870 = vmatprep.subr.bf16.mxu1 %v6840_v60 }
 0x99a   : > { %v1278_v25 = vpop.f32.mrf.mxu1 }
 0x99b   : > { %v1284_v26 = vadd.f32 %v1278_v25, %v1067_v24  ;;  %v1539_v24 = vld [vmem:[%s10263_s7 + $0x10] sm:$0xff] }
 0x99c   : > { %v7977_v27 = vpop.f32.mrf.mxu1  ;;  %v1547_v25 = vld [vmem:[%s10263_s7 + $0x50] sm:$0xff] }
 0x99d   : > { %v1548_v27 = vld [vmem:[%s10263_s7 + $0x58] sm:$0xff] }
 0x99e   : > { %v1281_v28 = vpop.f32.mrf.mxu1 }
 0x9a0   : > { %v7978_v29 = vpop.f32.mrf.mxu1 }
 0xa03   : > { %v1371_v30 = vpop.xlane.xlu0 %1370 }
 0xa04   : > { %8432 = vrcp.f32 %v1371_v30  ;;  %v6826_v30 = vcombine.high %v1539_v24, %v1547_v25 }
 0xa07   : > { %v1375_v31 = vpop.permute.xlu0 %1374 }
 0xa08   : > { %7985 = vmatpush3.msra.mxu0 %v1375_v31 }
 0xa09   : > { %1829 = vmatprep.subr.bf16.mxu0 %v6838_v56  ;;  %v1551_v56 = vld [vmem:[%s10263_s7 + $0x70] sm:$0xff] }
 0xa0a   : > { %v6834_v61 = vcombine.high %v1543_v55, %v1551_v56  ;;  %v6833_v63 = vcombine.low %v1543_v55, %v1551_v56 }
 0xa11   : > { %v8433_v32 = vpop.eup %8432 }
 0xa12   : > { %v1373_v33 = vmul.f32 %v8433_v32, %v8431_v22  ;;  %v6820_v22 = vld [vmem:[%s10262_s6] ss:$0 sm:$0xff] }
 0xa13   : > { %v1557_v32 = vld [vmem:[%s10263_s7 + $0xa0] sm:$0xff] }
 0xa14   : > { %7987 = vmatmul.mubr.msk.f32.vlgmr.msra.gmra.mxu0 %vm649_vm2, %v1373_v33  ;;  %v1565_v33 = vld [vmem:[%s10263_s7 + $0xe0] sm:$0xff] }
 0xa15   : > { %1830 = vmatpush1.bf16.msra.mxu0 %v6837_v58  ;;  %1849 = vmatprep.mubr.bf16.mxu0 %v8534_v10  ;;  %v1552_v58 = vld [vmem:[%s10263_s7 + $0x78] sm:$0xff] }
 0xa16   : > { %1831 = vmatprep.subr.bf16.mxu0 %v6822_v0  ;;  %v6836_v62 = vcombine.high %v1544_v57, %v1552_v58  ;;  %v6835_v0 = vcombine.low %v1544_v57, %v1552_v58 }
 0xa19   : > { %1832 = vmatpush1.bf16.msra.mxu0 %v6821_v3  ;;  %v8151_v3 = vld [vmem:[%s10265_s9 + $0xf8] sm:$0xff]  }
 0xa1a   : > { %1911 = vmatprep.subr.bf16.mxu0 %v6842_v11  ;;  %v8157_v11 = vld [vmem:[%s10265_s9 + $0xb0] sm:$0xff]  }
 0xad4   : > { %v1446_v35 = vpop.f32.mrf.mxu0 }
 0xad5   : > { %v1450_v36 = vpack.c.bf16 %v1446_v35, %v1446_v35  ;;  %v6825_v35 = vcombine.low %v1539_v24, %v1547_v25  ;;  %v8170_v24 = vld [vmem:[%s10265_s9 + $0x50] sm:$0xff]  }
 0xad6   : > { %v7988_v37 = vpop.f32.mrf.mxu0  ;;  %v8171_v25 = vld [vmem:[%s10265_s9 + $0xd0] sm:$0xff]  }
 0xad7   : > { %7992 = vmatmul.mubr.msk.bf16.vlgmr.msra.gmra.mxu1 %vm649_vm2, %v1450_v36  ;;  %v6846_v37 = vcombine.high %v1557_v32, %v1565_v33 }
 0xad8   : > { %1871 = vmatpush1.bf16.msra.mxu1 %v6839_v59  ;;  %1890 = vmatprep.mubr.bf16.mxu1 %v8534_v10 }
 0xad9   : > { %1872 = vmatprep.subr.bf16.mxu1 %v6824_v5  ;;  %v8153_v5 = vld [vmem:[%s10265_s9 + $0xb8] sm:$0xff]  }
 0xadc   : > { %1873 = vmatpush1.bf16.msra.mxu1 %v6823_v4  ;;  %v8152_v4 = vld [vmem:[%s10265_s9 + $0x38] sm:$0xff]  }
 0xadd   : > { %1952 = vmatprep.subr.bf16.mxu1 %v6844_v15  ;;  %v8161_v15 = vld [vmem:[%s10265_s9 + $0xa8] sm:$0xff]  }
 0xb97   : > { %v1491_v38 = vpop.f32.mrf.mxu1 }
 0xb98   : > { %v1497_v40 = vadd.f32 %v1491_v38, %v1284_v26  ;;  %v1540_v26 = vld [vmem:[%s10263_s7 + $0x18] sm:$0xff]  ;;  %v6848_v38 = vcombine.high %v1558_v7, %v1566_v34 }
 0xb99   : > { %v7993_v41 = vpop.f32.mrf.mxu1  ;;  %v6828_v31 = vcombine.high %v1540_v26, %v1548_v27  ;;  %v6827_v36 = vcombine.low %v1540_v26, %v1548_v27  ;;  %v8172_v26 = vld [vmem:[%s10265_s9 + $0x10] sm:$0xff]  }
 0xb9a   : > { %v1505_v42 = vadd.f32 %v6818_v39, %v1497_v40  ;;  %v1541_v39 = vld [vmem:[%s10263_s7 + $0x20] sm:$0xff]  ;;  %v1542_v41 = vld [vmem:[%s10263_s7 + $0x28] sm:$0xff]  ;;  %v8173_v27 = vld [vmem:[%s10265_s9 + $0x90] sm:$0xff]  }
 0xb9b   : > { %v1494_v43 = vpop.f32.mrf.mxu1  ;;  %v1549_v40 = vld [vmem:[%s10263_s7 + $0x60] sm:$0xff] }
 0xb9c   : > { %v1506_v45 = vadd.f32 %v8458_v44, %v1505_v42  ;;  %v1550_v42 = vld [vmem:[%s10263_s7 + $0x68] sm:$0xff]  ;;  %v6845_v43 = vcombine.low %v1557_v32, %v1565_v33  ;;  %v6847_v44 = vcombine.low %v1558_v7, %v1566_v34  ;;  %v8178_v33 = vld [vmem:[%s10265_s9 + $0x40] sm:$0xff]  }
 0xb9d   : > { %v7994_v46 = vpop.f32.mrf.mxu1  ;;  %v8177_v32 = vld [vmem:[%s10265_s9 + $0x88] sm:$0xff]   ;;  %v8179_v7 = vld [vmem:[%s10265_s9 + $0xc0] sm:$0xff]  }
 0xb9e   : > { %v1509_v47 = vsel %vm597_vm1, %v1506_v45, 0.0  ;;  %v6832_v46 = vcombine.high %v1542_v41, %v1550_v42  ;;  %v8180_v34 = vld [vmem:[%s10265_s9] sm:$0xff]  }
 0xb9f   : > { %1510 = vadd.xlane.f32.xlu0 %v1509_v47  ;;  %v1559_v47 = vld [vmem:[%s10263_s7 + $0xb0] sm:$0xff] }
 0xc28   : > { %v1511_v48 = vpop.xlane.xlu0 %1510 }
 0xc29   : > { %v1513_v49 = vmul.f32 0.03125, %v1511_v48  ;;  %v1567_v48 = vld [vmem:[%s10263_s7 + $0xf0] sm:$0xff] }
 0xc2a   : > { %v6850_v53 = vcombine.high %v1559_v47, %v1567_v48  ;;  %v6849_v59 = vcombine.low %v1559_v47, %v1567_v48 }
 0xc2b   : > { %v1514_v50 = vsub.f32 %v1506_v45, %v1513_v49  ;;  %v6830_v45 = vcombine.high %v1541_v39, %v1549_v40  ;;  %v1560_v49 = vld [vmem:[%s10263_s7 + $0xb8] sm:$0xff] }
 0xc2d   : > { %v1515_v51 = vmul.f32 %v1514_v50, %v1514_v50 }
 0xc2f   : > { %v1516_v52 = vsel %vm597_vm1, %v1515_v51, 0.0  ;;  %v6829_v51 = vcombine.low %v1541_v39, %v1549_v40 }
 0xc30   : > { %1517 = vadd.xlane.f32.xlu1 %v1516_v52  ;;  %v6831_v52 = vcombine.low %v1542_v41, %v1550_v42  ;;  %v9062_v42 = vld [vmem:[%s10264_s8] sm:$0xff] }
 0xcb9   : > { %v1518_v16 = vpop.xlane.xlu1 %1517 }
 0xcba   : > { %v1519_v17 = vmul.f32 0.03125, %v1518_v16  ;;  %v8162_v16 = vld [vmem:[%s10265_s9 + $0x60] sm:$0xff]  }
 0xcbc   : > { %v1520_v18 = vadd.f32 1e-05, %v1519_v17  ;;  %v8163_v17 = vld [vmem:[%s10265_s9 + $0xe0] sm:$0xff]  }
 0xcbe   : > { %8434 = vrsqrt.f32 %v1520_v18  ;;  %v8164_v18 = vld [vmem:[%s10265_s9 + $0x20] sm:$0xff]  }
 0xccb   : > { %v8435_v19 = vpop.eup %8434 }
 0xccc   : > { %v1522_v21 = vmul.f32 %v8435_v19, %v1514_v50  ;;  %v1568_v50 = vld [vmem:[%s10263_s7 + $0xf8] sm:$0xff]  ;;  %v8165_v19 = vld [vmem:[%s10265_s9 + $0xa0] sm:$0xff]  }
 0xccd   : > { %v6852_v54 = vcombine.high %v1560_v49, %v1568_v50  ;;  %v6851_v60 = vcombine.low %v1560_v49, %v1568_v50 }
 0xcce   : > { %v1529_v23 = vmul.f32 %v6819_v20, %v1522_v21  ;;  %v8166_v20 = vld [vmem:[%s10265_s9 + $0x58] sm:$0xff]  }
 0xccf   : > { %v8167_v21 = vld [vmem:[%s10265_s9 + $0xd8] sm:$0xff]  }
 0xcd0   : > { %v8873_v28 = vadd.f32 %v6820_v22, %v1529_v23  ;;  %v8168_v22 = vld [vmem:[%s10265_s9 + $0x18] sm:$0xff]  }
 0xcd1   : > { %v8169_v23 = vld [vmem:[%s10265_s9 + $0x98] sm:$0xff]  }
 0xcd2   : > { %v8877_v29 = vpack.c.bf16 %v8873_v28, %v8873_v28 }
 0xcd4   : > { %6853 = vmatmul.mubr.msk.bf16.vlgmr.msra.gmra.mxu0 %vm597_vm1, %v8877_v29  ;;  %6854 = vmatmul.mubr.msk.bf16.vlgmr.msra.gmra.mxu1 %vm597_vm1, %v8877_v29 }
 0xcd5   : > { %1912 = vmatpush1.bf16.msra.mxu0 %v6841_v13  ;;  %1953 = vmatpush1.bf16.msra.mxu1 %v6843_v14  ;;  %v8159_v13 = vld [vmem:[%s10265_s9 + $0xe8] sm:$0xff]  }
 0xcd6   : > { %1913 = vmatprep.subr.bf16.mxu0 %v6826_v30  ;;  %1954 = vmatprep.subr.bf16.mxu1 %v6828_v31  ;;  %v8160_v14 = vld [vmem:[%s10265_s9 + $0x28] sm:$0xff]  }
 0xcd7   : > { %1931 = vmatprep.mubr.bf16.mxu0 %v8534_v10  ;;  %1972 = vmatprep.mubr.bf16.mxu1 %v8534_v10  ;;  %v8175_v30 = vld [vmem:[%s10265_s9 + $0xc8] sm:$0xff]  }
 0xcd8   : > { %v8176_v31 = vld [vmem:[%s10265_s9 + $0x8] sm:$0xff]  }
 0xcd9   : > { %1914 = vmatpush1.bf16.msra.mxu0 %v6825_v35  ;;  %1955 = vmatpush1.bf16.msra.mxu1 %v6827_v36  ;;  %v8181_v35 = vld [vmem:[%s10265_s9 + $0x80] sm:$0xff]   ;;  %v8182_v36 = vld [vmem:[%s10265_s9 + $0x178] sm:$0xff]  }
 0xcda   : > { %1993 = vmatprep.subr.bf16.mxu0 %v6846_v37  ;;  %2034 = vmatprep.subr.bf16.mxu1 %v6848_v38  ;;  %v8183_v37 = vld [vmem:[%s10265_s9 + $0x1f8] sm:$0xff]   ;;  %v1574_v38 = vlaneseq }
 0xcdc   : > { %6855 = vmatmul.mubr.msk.bf16.vlgmr.msra.gmra.mxu0 %vm597_vm1, %v8877_v29  ;;  %6856 = vmatmul.mubr.msk.bf16.vlgmr.msra.gmra.mxu1 %vm597_vm1, %v8877_v29  ;;  %v9051_v39 = vshrl.u32 %v1574_v38, 7  ;;  %v8194_v38 = vld [vmem:[%s10265_s9 + $0x160] sm:$0xff]  }
 0xcdd   : > { %1994 = vmatpush1.bf16.msra.mxu0 %v6845_v43  ;;  %2035 = vmatpush1.bf16.msra.mxu1 %v6847_v44 }
 0xcde   : > { %1995 = vmatprep.subr.bf16.mxu0 %v6830_v45  ;;  %2036 = vmatprep.subr.bf16.mxu1 %v6832_v46  ;;  %v9054_v40 = vsub.s32 0, %v9051_v39  ;;  %v9057_v41 = vsub.s32 2, %v9051_v39  ;;  %v9065_v43 = vsub.s32 1, %v9051_v39  ;;  %v9068_v44 = vsub.s32 3, %v9051_v39 }
 0xcdf   : > { %2013 = vmatprep.mubr.bf16.mxu0 %v8534_v10  ;;  %2054 = vmatprep.mubr.bf16.mxu1 %v8534_v10  ;;  %v9079_v57 = vsub.s32 5, %v9051_v39  ;;  %v9082_v58 = vsub.s32 7, %v9051_v39 }
 0xce0   : > { %v1577_v45 = vrot.slane %v9062_v42, %v9054_v40  ;;  %v1585_v46 = vrot.slane %v9062_v42, %v9057_v41  ;;  %v1581_v47 = vrot.slane %v9062_v42, %v9065_v43  ;;  %v1589_v48 = vrot.slane %v9062_v42, %v9068_v44 }
 0xce1   : > { %1996 = vmatpush1.bf16.msra.mxu0 %v6829_v51  ;;  %2037 = vmatpush1.bf16.msra.mxu1 %v6831_v52 }
 0xce2   : > { %2075 = vmatprep.subr.bf16.mxu0 %v6850_v53  ;;  %2116 = vmatprep.subr.bf16.mxu1 %v6852_v54 }
 0xce4   : > { %6857 = vmatmul.mubr.msk.bf16.vlgmr.msra.gmra.mxu0 %vm597_vm1, %v8877_v29  ;;  %6858 = vmatmul.mubr.msk.bf16.vlgmr.msra.gmra.mxu1 %vm597_vm1, %v8877_v29 }
 0xce5   : > { %2076 = vmatpush1.bf16.msra.mxu0 %v6849_v59  ;;  %2117 = vmatpush1.bf16.msra.mxu1 %v6851_v60 }
 0xce6   : > { %2077 = vmatprep.subr.bf16.mxu0 %v6834_v61  ;;  %2118 = vmatprep.subr.bf16.mxu1 %v6836_v62 }
 0xce7   : > { %2095 = vmatprep.mubr.bf16.mxu0 %v8534_v10  ;;  %2136 = vmatprep.mubr.bf16.mxu1 %v8534_v10 }
 0xce9   : > { %2078 = vmatpush1.bf16.msra.mxu0 %v6833_v63  ;;  %2119 = vmatpush1.bf16.msra.mxu1 %v6835_v0 }
 0xcea   : > { %7532 = vmatprep.subr.bf16.mxu0 %v8150_v2  ;;  %7554 = vmatprep.subr.bf16.mxu1 %v8151_v3 }
 0xcec   : > { %6859 = vmatmul.mubr.msk.bf16.vlgmr.msra.gmra.mxu0 %vm597_vm1, %v8877_v29  ;;  %6860 = vmatmul.mubr.msk.bf16.vlgmr.msra.gmra.mxu1 %vm597_vm1, %v8877_v29  ;;  %v8174_v29 = vld [vmem:[%s10265_s9 + $0x48] sm:$0xff]  }
 0xced   : > { %7533 = vmatpush3.bf16.msra.mxu0 %v8152_v4  ;;  %7555 = vmatpush3.bf16.msra.mxu1 %v8153_v5 }
 0xcee   : > { %7534 = vmatprep.subr.bf16.mxu0 %v8154_v6  ;;  %7556 = vmatprep.subr.bf16.mxu1 %v8155_v8  ;;  %v1597_v6 = vrot.slane %v9062_v42, %v9079_v57  ;;  %v1605_v8 = vrot.slane %v9062_v42, %v9082_v58 }
 0xcf1   : > { %7535 = vmatpush3.bf16.msra.mxu0 %v8156_v9  ;;  %7557 = vmatpush3.bf16.msra.mxu1 %v8157_v11  ;;  %v8184_v9 = vld [vmem:[%s10265_s9 + $0x138] sm:$0xff]  }
 0xcf2   : > { %7536 = vmatprep.subr.bf16.mxu0 %v8158_v12  ;;  %7558 = vmatprep.subr.bf16.mxu1 %v8159_v13  ;;  %v8185_v11 = vld [vmem:[%s10265_s9 + $0x1b8] sm:$0xff]  }
 0xcf5   : > { %7537 = vmatpush3.bf16.msra.mxu0 %v8160_v14  ;;  %7559 = vmatpush3.bf16.msra.mxu1 %v8161_v15 }
 0xcf6   : > { %7538 = vmatprep.subr.bf16.mxu0 %v8162_v16  ;;  %7560 = vmatprep.subr.bf16.mxu1 %v8163_v17  ;;  %v8186_v16 = vld [vmem:[%s10265_s9 + $0x170] sm:$0xff]  }
 0xcf7   : > { %v8187_v17 = vld [vmem:[%s10265_s9 + $0x1f0] sm:$0xff]  }
 0xcf9   : > { %7539 = vmatpush3.bf16.msra.mxu0 %v8164_v18  ;;  %7561 = vmatpush3.bf16.msra.mxu1 %v8165_v19 }
 0xcfa   : > { %7540 = vmatprep.subr.bf16.mxu0 %v8166_v20  ;;  %7562 = vmatprep.subr.bf16.mxu1 %v8167_v21 }
 0xcfd   : > { %7541 = vmatpush3.bf16.msra.mxu0 %v8168_v22  ;;  %7563 = vmatpush3.bf16.msra.mxu1 %v8169_v23  ;;  %v8188_v22 = vld [vmem:[%s10265_s9 + $0x130] sm:$0xff]  }
 0xcfe   : > { %7542 = vmatprep.subr.bf16.mxu0 %v8170_v24  ;;  %7564 = vmatprep.subr.bf16.mxu1 %v8171_v25  ;;  %v8189_v23 = vld [vmem:[%s10265_s9 + $0x1b0] sm:$0xff]  }
 0xd01   : > { %7543 = vmatpush3.bf16.msra.mxu0 %v8172_v26  ;;  %7565 = vmatpush3.bf16.msra.mxu1 %v8173_v27  ;;  %v8190_v26 = vld [vmem:[%s10265_s9 + $0x168] sm:$0xff]  }
 0xd02   : > { %7544 = vmatprep.subr.bf16.mxu0 %v8174_v29  ;;  %7566 = vmatprep.subr.bf16.mxu1 %v8175_v30  ;;  %v8191_v27 = vld [vmem:[%s10265_s9 + $0x1e8] sm:$0xff]  }
 0xd05   : > { %7545 = vmatpush3.bf16.msra.mxu0 %v8176_v31  ;;  %7567 = vmatpush3.bf16.msra.mxu1 %v8177_v32 }
 0xd06   : > { %7546 = vmatprep.subr.bf16.mxu0 %v8178_v33  ;;  %7568 = vmatprep.subr.bf16.mxu1 %v8179_v7 }
 0xd09   : > { %7547 = vmatpush3.bf16.msra.mxu0 %v8180_v34  ;;  %7569 = vmatpush3.bf16.msra.mxu1 %v8181_v35  ;;  %v8192_v34 = vld [vmem:[%s10265_s9 + $0x128] sm:$0xff]  }
 0xd0a   : > { %7576 = vmatprep.subr.bf16.mxu0 %v8182_v36  ;;  %7598 = vmatprep.subr.bf16.mxu1 %v8183_v37  ;;  %v8193_v35 = vld [vmem:[%s10265_s9 + $0x1a8] sm:$0xff]  }
 0xd94   : > { %v1851_v49 = vpop.f32.mrf.mxu0  ;;  %v1892_v50 = vpop.f32.mrf.mxu1 }
 0xd95   : > { %v1852_v51 = vadd.f32 %v1851_v49, %v1577_v45  ;;  %v1893_v52 = vadd.f32 %v1892_v50, %v1585_v46  ;;  %v8195_v45 = vld [vmem:[%s10265_s9 + $0x1e0] sm:$0xff]  }
 0xd96   : > { %v1853_v53 = vpop.f32.mrf.mxu0  ;;  %v1894_v54 = vpop.f32.mrf.mxu1  ;;  %v8196_v49 = vld [vmem:[%s10265_s9 + $0x120] sm:$0xff]  }
 0xd97   : > { %v1854_v55 = vadd.f32 %v1853_v53, %v1581_v47  ;;  %v1895_v56 = vadd.f32 %v1894_v54, %v1589_v48  ;;  %v2145_v59 = vmax.f32 %v1852_v51, 0.0  ;;  %v2147_v60 = vmax.f32 %v1893_v52, 0.0  ;;  %v8197_v50 = vld [vmem:[%s10265_s9 + $0x1a0] sm:$0xff]   ;;  %v9144_v51 = vld [vmem:[%s10264_s8 + $0x8] sm:$0xff]  ;;  %v8198_v54 = vld [vmem:[%s10265_s9 + $0x158] sm:$0xff]  }
 0xd98   : > { %v1855_v61 = vpop.f32.mrf.mxu0  ;;  %v1896_v62 = vpop.f32.mrf.mxu1  ;;  %v9133_v48 = vsub.s32 6, %v9051_v39 }
 0xd99   : > { %v2146_v63 = vmax.f32 %v1854_v55, 0.0  ;;  %v2148_v0 = vmax.f32 %v1895_v56, 0.0  ;;  %v2417_v12 = vpack.c.bf16 %v2145_v59, %v2145_v59  ;;  %v2419_v13 = vpack.c.bf16 %v2147_v60, %v2147_v60  ;;  %v8199_v55 = vld [vmem:[%s10265_s9 + $0x1d8] sm:$0xff]  }
 0xd9a   : > { %v1856_v2 = vpop.f32.mrf.mxu0  ;;  %v1897_v3 = vpop.f32.mrf.mxu1  ;;  %v1633_v56 = vrot.slane %v9144_v51, %v9133_v48  ;;  %v8200_v61 = vld [vmem:[%s10265_s9 + $0x118] sm:$0xff]  }
 0xd9b   : > { %v2418_v4 = vpack.c.bf16 %v2146_v63, %v2146_v63  ;;  %v2420_v5 = vpack.c.bf16 %v2148_v0, %v2148_v0  ;;  %v8201_v62 = vld [vmem:[%s10265_s9 + $0x198] sm:$0xff]   ;;  %v9161_v63 = vsub.s32 4, %v9051_v39  ;;  %v8202_v3 = vld [vmem:[%s10265_s9 + $0x150] sm:$0xff]  }
 0xd9c   : > { %v9094_v14 = vpop.f32.mrf.mxu0  ;;  %v9096_v15 = vpop.f32.mrf.mxu1  ;;  %v8204_v39 = vld [vmem:[%s10265_s9 + $0x110] sm:$0xff]  }
 0xd9d   : > { %3240 = vmatprep.mubr.bf16.mxu0 %v2418_v4  ;;  %3280 = vmatprep.mubr.bf16.mxu1 %v2420_v5  ;;  %v8203_v4 = vld [vmem:[%s10265_s9 + $0x1d0] sm:$0xff]  }
 0xd9e   : > { %v1935_v18 = vpop.f32.mrf.mxu0  ;;  %v1976_v19 = vpop.f32.mrf.mxu1  ;;  %3241 = vmatmul.mubr.bf16.vlgmr.msra.gmra.mxu0 %v2417_v12  ;;  %3281 = vmatmul.mubr.bf16.vlgmr.msra.gmra.mxu1 %v2419_v13  ;;  %v1601_v12 = vrot.slane %v9062_v42, %v9133_v48 }
 0xd9f   : > { %v1936_v20 = vadd.f32 %v1935_v18, %v1597_v6  ;;  %v1977_v21 = vadd.f32 %v1976_v19, %v1605_v8  ;;  %7577 = vmatpush3.bf16.msra.mxu0 %v8184_v9  ;;  %7599 = vmatpush3.bf16.msra.mxu1 %v8185_v11  ;;  %v8205_v9 = vld [vmem:[%s10265_s9 + $0x190] sm:$0xff]   ;;  %v1593_v11 = vrot.slane %v9062_v42, %v9161_v63  ;;  %v8207_v18 = vld [vmem:[%s10265_s9 + $0x1c8] sm:$0xff]  }
 0xda0   : > { %v1937_v24 = vpop.f32.mrf.mxu0  ;;  %v1978_v25 = vpop.f32.mrf.mxu1  ;;  %7578 = vmatprep.subr.bf16.mxu0 %v8186_v16  ;;  %7600 = vmatprep.subr.bf16.mxu1 %v8187_v17  ;;  %v8206_v17 = vld [vmem:[%s10265_s9 + $0x148] sm:$0xff]   ;;  %v1613_v19 = vrot.slane %v9144_v51, %v9065_v43 }
 0xda1   : > { %v2150_v29 = vmax.f32 %v1936_v20, 0.0  ;;  %v2152_v30 = vmax.f32 %v1977_v21, 0.0  ;;  %v1621_v20 = vrot.slane %v9144_v51, %v9068_v44  ;;  %v1934_v24 = vadd.f32 %v9094_v14, %v1593_v11  ;;  %v8212_v14 = vld [vmem:[%s10265_s9 + $0x100] sm:$0xff]   ;;  %v8232_v11 = vld [vmem:[%s10265_s9 + $0x218] sm:$0xff]  }
 0xda2   : > { %v1938_v31 = vpop.f32.mrf.mxu0  ;;  %v1979_v32 = vpop.f32.mrf.mxu1  ;;  %v1975_v25 = vadd.f32 %v9096_v15, %v1601_v12  ;;  %v8213_v15 = vld [vmem:[%s10265_s9 + $0x180] sm:$0xff]   ;;  %v8233_v12 = vld [vmem:[%s10265_s9 + $0x298] sm:$0xff]  }
 0xda3   : > { %v2422_v33 = vpack.c.bf16 %v2150_v29, %v2150_v29  ;;  %v2424_v7 = vpack.c.bf16 %v2152_v30, %v2152_v30  ;;  %7579 = vmatpush3.bf16.msra.mxu0 %v8188_v22  ;;  %7601 = vmatpush3.bf16.msra.mxu1 %v8189_v23  ;;  %v8208_v22 = vld [vmem:[%s10265_s9 + $0x108] sm:$0xff]   ;;  %v2149_v31 = vmax.f32 %v1934_v24, 0.0 }
 0xda4   : > { %v9122_v36 = vpop.f32.mrf.mxu0  ;;  %v9124_v37 = vpop.f32.mrf.mxu1  ;;  %7580 = vmatprep.subr.bf16.mxu0 %v8190_v26  ;;  %7602 = vmatprep.subr.bf16.mxu1 %v8191_v27  ;;  %v8209_v23 = vld [vmem:[%s10265_s9 + $0x188] sm:$0xff]   ;;  %v8210_v26 = vld [vmem:[%s10265_s9 + $0x140] sm:$0xff]   ;;  %v2151_v32 = vmax.f32 %v1975_v25, 0.0 }
 0xda5   : > { %3320 = vmatprep.mubr.bf16.mxu0 %v2422_v33  ;;  %3360 = vmatprep.mubr.bf16.mxu1 %v2424_v7  ;;  %v8211_v27 = vld [vmem:[%s10265_s9 + $0x1c0] sm:$0xff]   ;;  %v8214_v33 = vld [vmem:[%s10265_s9 + $0x278] sm:$0xff]   ;;  %v8240_v24 = vld [vmem:[%s10265_s9 + $0x208] sm:$0xff]  }
 0xda6   : > { %v2017_v46 = vpop.f32.mrf.mxu0  ;;  %v2058_v47 = vpop.f32.mrf.mxu1  ;;  %v8215_v7 = vld [vmem:[%s10265_s9 + $0x2f8] sm:$0xff]  }
 0xda7   : > { %7581 = vmatpush3.bf16.msra.mxu0 %v8192_v34  ;;  %7603 = vmatpush3.bf16.msra.mxu1 %v8193_v35  ;;  %v2018_v29 = vadd.f32 %v2017_v46, %v1613_v19  ;;  %v2059_v30 = vadd.f32 %v2058_v47, %v1621_v20  ;;  %v2423_v46 = vpack.c.bf16 %v2151_v32, %v2151_v32  ;;  %v8217_v47 = vld [vmem:[%s10265_s9 + $0x2b8] sm:$0xff]   ;;  %v8237_v19 = vld [vmem:[%s10265_s9 + $0x290] sm:$0xff]   ;;  %v8238_v20 = vld [vmem:[%s10265_s9 + $0x248] sm:$0xff]  }
 0xda8   : > { %v2019_v52 = vpop.f32.mrf.mxu0  ;;  %v2060_v53 = vpop.f32.mrf.mxu1  ;;  %7582 = vmatprep.subr.bf16.mxu0 %v8194_v38  ;;  %7604 = vmatprep.subr.bf16.mxu1 %v8195_v45  ;;  %v8216_v38 = vld [vmem:[%s10265_s9 + $0x238] sm:$0xff]   ;;  %v2421_v45 = vpack.c.bf16 %v2149_v31, %v2149_v31 }
 0xda9   : > { %v2154_v34 = vmax.f32 %v2018_v29, 0.0  ;;  %v2156_v35 = vmax.f32 %v2059_v30, 0.0  ;;  %v8219_v52 = vld [vmem:[%s10265_s9 + $0x2f0] sm:$0xff]   ;;  %v8243_v30 = vld [vmem:[%s10265_s9 + $0x2c0] sm:$0xff]   ;;  %v8246_v32 = vld [vmem:[%s10265_s9 + $0x378] sm:$0xff]  }
 0xdaa   : > { %v2020_v59 = vpop.f32.mrf.mxu0  ;;  %v2061_v60 = vpop.f32.mrf.mxu1 }
 0xdab   : > { %7583 = vmatpush3.bf16.msra.mxu0 %v8196_v49  ;;  %7605 = vmatpush3.bf16.msra.mxu1 %v8197_v50  ;;  %v2426_v49 = vpack.c.bf16 %v2154_v34, %v2154_v34  ;;  %v8218_v50 = vld [vmem:[%s10265_s9 + $0x270] sm:$0xff]   ;;  %v2428_v53 = vpack.c.bf16 %v2156_v35, %v2156_v35  ;;  %v8223_v59 = vld [vmem:[%s10265_s9 + $0x2e8] sm:$0xff]   ;;  %v8248_v34 = vld [vmem:[%s10265_s9 + $0x338] sm:$0xff]  }
 0xdac   : > { %v9163_v0 = vpop.f32.mrf.mxu0  ;;  %v2138_v2 = vpop.f32.mrf.mxu1  ;;  %7584 = vmatprep.subr.bf16.mxu0 %v8198_v54  ;;  %7606 = vmatprep.subr.bf16.mxu1 %v8199_v55  ;;  %v8220_v54 = vld [vmem:[%s10265_s9 + $0x230] sm:$0xff]   ;;  %v8224_v60 = vld [vmem:[%s10265_s9 + $0x228] sm:$0xff]  }
 0xdad   : > { %v9171_v5 = vadd.f32 %v2138_v2, %v1633_v56  ;;  %v8221_v55 = vld [vmem:[%s10265_s9 + $0x2b0] sm:$0xff]   ;;  %v8222_v56 = vld [vmem:[%s10265_s9 + $0x268] sm:$0xff]   ;;  %v8227_v2 = vld [vmem:[%s10265_s9 + $0x2e0] sm:$0xff]  }
 0xdae   : > { %v9173_v6 = vpop.f32.mrf.mxu0  ;;  %v9175_v8 = vpop.f32.mrf.mxu1 }
 0xdaf   : > { %7585 = vmatpush3.bf16.msra.mxu0 %v8200_v61  ;;  %7607 = vmatpush3.bf16.msra.mxu1 %v8201_v62  ;;  %v8225_v61 = vld [vmem:[%s10265_s9 + $0x2a8] sm:$0xff]   ;;  %v8226_v62 = vld [vmem:[%s10265_s9 + $0x260] sm:$0xff]  }
 0xdb0   : > { %v2101_v13 = vpop.f32.mrf.mxu0  ;;  %v2142_v16 = vpop.f32.mrf.mxu1  ;;  %7586 = vmatprep.subr.bf16.mxu0 %v8202_v3  ;;  %7608 = vmatprep.subr.bf16.mxu1 %v8203_v4  ;;  %v8228_v3 = vld [vmem:[%s10265_s9 + $0x220] sm:$0xff]  }
 0xdb1   : > { %v8229_v4 = vld [vmem:[%s10265_s9 + $0x2a0] sm:$0xff]   ;;  %v8234_v13 = vld [vmem:[%s10265_s9 + $0x250] sm:$0xff]  }
 0xdb2   : > { %v2102_v21 = vpop.f32.mrf.mxu0  ;;  %v2143_v42 = vpop.f32.mrf.mxu1  ;;  %v8235_v16 = vld [vmem:[%s10265_s9 + $0x2d0] sm:$0xff]  }
 0xdb3   : > { %7587 = vmatpush3.bf16.msra.mxu0 %v8204_v39  ;;  %7609 = vmatpush3.bf16.msra.mxu1 %v8205_v9  ;;  %v8230_v39 = vld [vmem:[%s10265_s9 + $0x258] sm:$0xff]   ;;  %v1617_v21 = vrot.slane %v9144_v51, %v9057_v41  ;;  %v8239_v42 = vld [vmem:[%s10265_s9 + $0x2c8] sm:$0xff]  }
 0xdb4   : > { %7588 = vmatprep.subr.bf16.mxu0 %v8206_v17  ;;  %7610 = vmatprep.subr.bf16.mxu1 %v8207_v18  ;;  %v8231_v9 = vld [vmem:[%s10265_s9 + $0x2d8] sm:$0xff]   ;;  %v8236_v17 = vld [vmem:[%s10265_s9 + $0x210] sm:$0xff]   ;;  %v1609_v18 = vrot.slane %v9144_v51, %v9054_v40 }
 0xdb5   : > { %v2057_v29 = vadd.f32 %v9124_v37, %v1617_v21  ;;  %v8245_v37 = vld [vmem:[%s10265_s9 + $0x280] sm:$0xff]   ;;  %v8273_v21 = vld [vmem:[%s10265_s9 + $0x388] sm:$0xff]  }
 0xdb6   : > { %v2016_v25 = vadd.f32 %v9122_v36, %v1609_v18  ;;  %v8270_v18 = vld [vmem:[%s10265_s9 + $0x348] sm:$0xff]  }
 0xdb7   : > { %7589 = vmatpush3.bf16.msra.mxu0 %v8208_v22  ;;  %7611 = vmatpush3.bf16.msra.mxu1 %v8209_v23  ;;  %v1629_v22 = vrot.slane %v9144_v51, %v9079_v57  ;;  %v1637_v23 = vrot.slane %v9144_v51, %v9082_v58 }
 0xdb8   : > { %7590 = vmatprep.subr.bf16.mxu0 %v8210_v26  ;;  %7612 = vmatprep.subr.bf16.mxu1 %v8211_v27  ;;  %v8241_v26 = vld [vmem:[%s10265_s9 + $0x288] sm:$0xff]   ;;  %v8242_v27 = vld [vmem:[%s10265_s9 + $0x240] sm:$0xff]   ;;  %v2153_v31 = vmax.f32 %v2016_v25, 0.0  ;;  %v2159_v25 = vmax.f32 %v9171_v5, 0.0 }
 0xdb9   : > { %v2141_v36 = vadd.f32 %v9175_v8, %v1637_v23  ;;  %v6861_v5 = vld [vmem:[%s10266_s10] ss:$0 sm:$0xff] }
 0xdba   : > { %v2425_v35 = vpack.c.bf16 %v2153_v31, %v2153_v31 }
 0xdbb   : > { %7591 = vmatpush3.bf16.msra.mxu0 %v8212_v14  ;;  %7613 = vmatpush3.bf16.msra.mxu1 %v8213_v15  ;;  %v2100_v14 = vadd.f32 %v9173_v6, %v1629_v22  ;;  %v8244_v15 = vld [vmem:[%s10265_s9 + $0x200] sm:$0xff]   ;;  %v8247_v6 = vld [vmem:[%s10265_s9 + $0x3f8] sm:$0xff]  }
 0xdbc   : > { %7620 = vmatprep.subr.bf16.mxu0 %v8214_v33  ;;  %7642 = vmatprep.subr.bf16.mxu1 %v8215_v7  ;;  %v2155_v33 = vmax.f32 %v2057_v29, 0.0  ;;  %v2160_v7 = vmax.f32 %v2141_v36, 0.0  ;;  %v8275_v22 = vld [vmem:[%s10265_s9 + $0x3c0] sm:$0xff]  }
 0xdbd   : > { %v2158_v8 = vmax.f32 %v2100_v14, 0.0 }
 0xdbe   : > { %3321 = vmatmul.mubr.bf16.vlgmr.msra.gmra.mxu0 %v2421_v45  ;;  %3361 = vmatmul.mubr.bf16.vlgmr.msra.gmra.mxu1 %v2423_v46  ;;  %v2427_v45 = vpack.c.bf16 %v2155_v33, %v2155_v33  ;;  %v8250_v46 = vld [vmem:[%s10265_s9 + $0x370] sm:$0xff]  }
 0xdbf   : > { %7621 = vmatpush3.bf16.msra.mxu0 %v8216_v38  ;;  %3400 = vmatprep.mubr.bf16.mxu0 %v2426_v49  ;;  %v8249_v38 = vld [vmem:[%s10265_s9 + $0x3b8] sm:$0xff]   ;;  %v8251_v49 = vld [vmem:[%s10265_s9 + $0x3f0] sm:$0xff]  }
 0xdc0   : > { %7643 = vmatpush3.bf16.msra.mxu1 %v8217_v47  ;;  %3440 = vmatprep.mubr.bf16.mxu1 %v2428_v53  ;;  %v2430_v47 = vpack.c.bf16 %v2158_v8, %v2158_v8  ;;  %v8253_v53 = vld [vmem:[%s10265_s9 + $0x3b0] sm:$0xff]  }
 0xdc1   : > { %7622 = vmatprep.subr.bf16.mxu0 %v8218_v50  ;;  %7644 = vmatprep.subr.bf16.mxu1 %v8219_v52  ;;  %v2432_v50 = vpack.c.bf16 %v2160_v7, %v2160_v7  ;;  %v8252_v52 = vld [vmem:[%s10265_s9 + $0x330] sm:$0xff]  }
 0xdc3   : > { %7623 = vmatpush3.bf16.msra.mxu0 %v8220_v54  ;;  %v8254_v54 = vld [vmem:[%s10265_s9 + $0x368] sm:$0xff]  }
 0xdc4   : > { %7645 = vmatpush3.bf16.msra.mxu1 %v8221_v55  ;;  %7624 = vmatprep.subr.bf16.mxu0 %v8222_v56  ;;  %v8255_v55 = vld [vmem:[%s10265_s9 + $0x3e8] sm:$0xff]  }
 0xdc5   : > { %7646 = vmatprep.subr.bf16.mxu1 %v8223_v59  ;;  %v8256_v56 = vld [vmem:[%s10265_s9 + $0x328] sm:$0xff]  }
 0xdc6   : > { %v8257_v59 = vld [vmem:[%s10265_s9 + $0x3a8] sm:$0xff]  }
 0xdc7   : > { %7625 = vmatpush3.bf16.msra.mxu0 %v8224_v60  ;;  %v8258_v60 = vld [vmem:[%s10265_s9 + $0x360] sm:$0xff]  }
 0xdc8   : > { %7647 = vmatpush3.bf16.msra.mxu1 %v8225_v61  ;;  %7626 = vmatprep.subr.bf16.mxu0 %v8226_v62  ;;  %v8259_v61 = vld [vmem:[%s10265_s9 + $0x3e0] sm:$0xff]  }
 0xdc9   : > { %7648 = vmatprep.subr.bf16.mxu1 %v8227_v2  ;;  %v8260_v62 = vld [vmem:[%s10265_s9 + $0x320] sm:$0xff]  }
 0xdca   : > { %v8261_v2 = vld [vmem:[%s10265_s9 + $0x3a0] sm:$0xff]  }
 0xdcb   : > { %7627 = vmatpush3.bf16.msra.mxu0 %v8228_v3  ;;  %v8262_v3 = vld [vmem:[%s10265_s9 + $0x358] sm:$0xff]  }
 0xdcc   : > { %7649 = vmatpush3.bf16.msra.mxu1 %v8229_v4  ;;  %7628 = vmatprep.subr.bf16.mxu0 %v8230_v39  ;;  %v8263_v4 = vld [vmem:[%s10265_s9 + $0x3d8] sm:$0xff]  }
 0xdcd   : > { %7650 = vmatprep.subr.bf16.mxu1 %v8231_v9  ;;  %v8264_v39 = vld [vmem:[%s10265_s9 + $0x318] sm:$0xff]  }
 0xdce   : > { %v8265_v9 = vld [vmem:[%s10265_s9 + $0x398] sm:$0xff]  }
 0xdcf   : > { %7629 = vmatpush3.bf16.msra.mxu0 %v8232_v11  ;;  %v8266_v11 = vld [vmem:[%s10265_s9 + $0x350] sm:$0xff]  }
 0xdd0   : > { %7651 = vmatpush3.bf16.msra.mxu1 %v8233_v12  ;;  %7630 = vmatprep.subr.bf16.mxu0 %v8234_v13  ;;  %v8267_v12 = vld [vmem:[%s10265_s9 + $0x3d0] sm:$0xff]  }
 0xdd1   : > { %7652 = vmatprep.subr.bf16.mxu1 %v8235_v16  ;;  %v8268_v13 = vld [vmem:[%s10265_s9 + $0x310] sm:$0xff]   ;;  %v1625_v16 = vrot.slane %v9144_v51, %v9161_v63  ;;  %v8272_v51 = vld [vmem:[%s10265_s9 + $0x308] sm:$0xff]  }
 0xdd3   : > { %7631 = vmatpush3.bf16.msra.mxu0 %v8236_v17  ;;  %v8269_v17 = vld [vmem:[%s10265_s9 + $0x390] sm:$0xff]  }
 0xdd4   : > { %7653 = vmatpush3.bf16.msra.mxu1 %v8237_v19  ;;  %7632 = vmatprep.subr.bf16.mxu0 %v8238_v20  ;;  %v8271_v19 = vld [vmem:[%s10265_s9 + $0x3c8] sm:$0xff]   ;;  %v2098_v20 = vadd.f32 %v9163_v0, %v1625_v16  ;;  %v8276_v0 = vld [vmem:[%s10265_s9 + $0x300] sm:$0xff]  }
 0xdd5   : > { %7654 = vmatprep.subr.bf16.mxu1 %v8239_v42  ;;  %v8274_v42 = vld [vmem:[%s10265_s9 + $0x340] sm:$0xff]  }
 0xdd6   : > { %v2157_v23 = vmax.f32 %v2098_v20, 0.0 }
 0xdd7   : > { %7633 = vmatpush3.bf16.msra.mxu0 %v8240_v24  ;;  %v8277_v24 = vld [vmem:[%s10265_s9 + $0x380] sm:$0xff]  }
 0xdd8   : > { %7655 = vmatpush3.bf16.msra.mxu1 %v8241_v26  ;;  %7634 = vmatprep.subr.bf16.mxu0 %v8242_v27  ;;  %v2429_v26 = vpack.c.bf16 %v2157_v23, %v2157_v23  ;;  %v2431_v27 = vpack.c.bf16 %v2159_v25, %v2159_v25 }
 0xdd9   : > { %7656 = vmatprep.subr.bf16.mxu1 %v8243_v30 }
 0xddb   : > { %7635 = vmatpush3.bf16.msra.mxu0 %v8244_v15 }
 0xddc   : > { %7657 = vmatpush3.bf16.msra.mxu1 %v8245_v37  ;;  %7664 = vmatprep.subr.bf16.mxu0 %v8246_v32 }
 0xddd   : > { %7686 = vmatprep.subr.bf16.mxu1 %v8247_v6 }
 0xdde   : > { %3401 = vmatmul.mubr.bf16.vlgmr.msra.gmra.mxu0 %v2425_v35 }
 0xddf   : > { %3441 = vmatmul.mubr.bf16.vlgmr.msra.gmra.mxu1 %v2427_v45  ;;  %7665 = vmatpush3.bf16.msra.mxu0 %v8248_v34 }
 0xde0   : > { %3480 = vmatprep.mubr.bf16.mxu0 %v2430_v47  ;;  %7687 = vmatpush3.bf16.msra.mxu1 %v8249_v38 }
 0xde1   : > { %3520 = vmatprep.mubr.bf16.mxu1 %v2432_v50  ;;  %7666 = vmatprep.subr.bf16.mxu0 %v8250_v46 }
 0xde2   : > { %7688 = vmatprep.subr.bf16.mxu1 %v8251_v49 }
 0xde3   : > { %7667 = vmatpush3.bf16.msra.mxu0 %v8252_v52 }
 0xde4   : > { %7689 = vmatpush3.bf16.msra.mxu1 %v8253_v53  ;;  %7668 = vmatprep.subr.bf16.mxu0 %v8254_v54 }
 0xde5   : > { %7690 = vmatprep.subr.bf16.mxu1 %v8255_v55 }
 0xde7   : > { %7669 = vmatpush3.bf16.msra.mxu0 %v8256_v56 }
 0xde8   : > { %7691 = vmatpush3.bf16.msra.mxu1 %v8257_v59  ;;  %7670 = vmatprep.subr.bf16.mxu0 %v8258_v60 }
 0xde9   : > { %7692 = vmatprep.subr.bf16.mxu1 %v8259_v61 }
 0xdeb   : > { %7671 = vmatpush3.bf16.msra.mxu0 %v8260_v62 }
 0xdec   : > { %7693 = vmatpush3.bf16.msra.mxu1 %v8261_v2  ;;  %7672 = vmatprep.subr.bf16.mxu0 %v8262_v3 }
 0xded   : > { %7694 = vmatprep.subr.bf16.mxu1 %v8263_v4 }
 0xdef   : > { %7673 = vmatpush3.bf16.msra.mxu0 %v8264_v39 }
 0xdf0   : > { %7695 = vmatpush3.bf16.msra.mxu1 %v8265_v9  ;;  %7674 = vmatprep.subr.bf16.mxu0 %v8266_v11 }
 0xdf1   : > { %7696 = vmatprep.subr.bf16.mxu1 %v8267_v12 }
 0xdf3   : > { %7675 = vmatpush3.bf16.msra.mxu0 %v8268_v13 }
 0xdf4   : > { %7697 = vmatpush3.bf16.msra.mxu1 %v8269_v17  ;;  %7676 = vmatprep.subr.bf16.mxu0 %v8270_v18 }
 0xdf5   : > { %7698 = vmatprep.subr.bf16.mxu1 %v8271_v19 }
 0xdf7   : > { %7677 = vmatpush3.bf16.msra.mxu0 %v8272_v51 }
 0xdf8   : > { %7699 = vmatpush3.bf16.msra.mxu1 %v8273_v21  ;;  %7678 = vmatprep.subr.bf16.mxu0 %v8274_v42 }
 0xdf9   : > { %7700 = vmatprep.subr.bf16.mxu1 %v8275_v22 }
 0xdfb   : > { %7679 = vmatpush3.bf16.msra.mxu0 %v8276_v0 }
 0xdfc   : > { %7701 = vmatpush3.bf16.msra.mxu1 %v8277_v24  ;;  %7995 = vmatprep.subr.bf16.mxu0 %v8521_v1 }
 0xdfd   : > { %8003 = vmatprep.subr.mxu1 %v8521_v1 }
 0xdfe   : > { %3481 = vmatmul.mubr.bf16.vlgmr.msra.gmra.mxu0 %v2429_v26 }
 0xdff   : > { %3521 = vmatmul.mubr.bf16.vlgmr.msra.gmra.mxu1 %v2431_v27  ;;  %7999 = vmatprep.mubr.msk.bf16.mxu0 %vm8522_vm0, %v8521_v1 }
 0xe00   : > { %8005 = vmatprep.mubr.msk.f32.mxu1 %vm8522_vm0, %v8521_v1 }
 0xe5e   : > { %v7548_v29 = vpop.f32.mrf.mxu0  ;;  %v7570_v30 = vpop.f32.mrf.mxu1 }
 0xe60   : > { %v7549_v14 = vpop.f32.mrf.mxu0  ;;  %v7571_v36 = vpop.f32.mrf.mxu1 }
 0xe61   : > { %v7550_v15 = vadd.f32 %v7549_v14, %v7548_v29  ;;  %v7572_v31 = vadd.f32 %v7571_v36, %v7570_v30  ;;  %v8278_v14 = vld [vmem:[%s10304_s27 + $0x18] sm:$0xff]   ;;  %v8279_v36 = vld [vmem:[%s10304_s27 + $0x10] sm:$0xff]  }
 0xe62   : > { %v7551_v37 = vpop.f32.mrf.mxu0  ;;  %v7573_v32 = vpop.f32.mrf.mxu1  ;;  %7996 = vmatpush3.bf16.msra.mxu0 %v8278_v14 }
 0xe63   : > { %v3243_v33 = vadd.f32 %v7550_v15, %v6861_v5  ;;  %7997 = vmatprep.subr.bf16.mxu0 %v8521_v1  ;;  %v6990_v32 = vld [vmem:[%s10267_s11] ss:$0 sm:$0xff] }
 0xe64   : > { %v7552_v6 = vpop.f32.mrf.mxu0  ;;  %v7574_v8 = vpop.f32.mrf.mxu1 }
 0xe65   : > { %v3283_v7 = vadd.f32 %v7572_v31, %v3243_v33  ;;  %v6991_v6 = vld [vmem:[%s10268_s12] ss:$0 sm:$0xff] }
 0xe66   : > { %7998 = vmatpush3.bf16.msra.mxu0 %v8279_v36 }
 0xe67   : > { %8013 = vmatprep.subr.mxu0 %v8521_v1 }
 0xe7e   : > { %v7592_v34 = vpop.f32.mrf.mxu0  ;;  %v7614_v35 = vpop.f32.mrf.mxu1 }
 0xe80   : > { %v7593_v38 = vpop.f32.mrf.mxu0  ;;  %v7615_v45 = vpop.f32.mrf.mxu1 }
 0xe81   : > { %v7594_v62 = vadd.f32 %v7593_v38, %v7592_v34  ;;  %v7616_v3 = vadd.f32 %v7615_v45, %v7614_v35  ;;  %v6997_v35 = vld [vmem:[%s10306_s20 + $0x1] ss:$0 sm:$0xff] }
 0xe82   : > { %v7595_v46 = vpop.f32.mrf.mxu0  ;;  %v7617_v47 = vpop.f32.mrf.mxu1 }
 0xe83   : > { %v3323_v2 = vadd.f32 %v7594_v62, %v3283_v7 }
 0xe84   : > { %v7596_v49 = vpop.f32.mrf.mxu0  ;;  %v7618_v50 = vpop.f32.mrf.mxu1 }
 0xe85   : > { %v3363_v39 = vadd.f32 %v7616_v3, %v3323_v2 }
 0xe9e   : > { %v7636_v52 = vpop.f32.mrf.mxu0 }
 0xe9f   : > { %v7658_v53 = vpop.f32.mrf.mxu1 }
 0xea0   : > { %v7637_v54 = vpop.f32.mrf.mxu0 }
 0xea1   : > { %v7659_v55 = vpop.f32.mrf.mxu1  ;;  %v7638_v4 = vadd.f32 %v7637_v54, %v7636_v52 }
 0xea2   : > { %v7639_v56 = vpop.f32.mrf.mxu0  ;;  %v7660_v12 = vadd.f32 %v7659_v55, %v7658_v53 }
 0xea3   : > { %v7661_v59 = vpop.f32.mrf.mxu1  ;;  %v3403_v9 = vadd.f32 %v7638_v4, %v3363_v39 }
 0xea4   : > { %v7640_v60 = vpop.f32.mrf.mxu0 }
 0xea5   : > { %v7662_v61 = vpop.f32.mrf.mxu1  ;;  %v3443_v17 = vadd.f32 %v7660_v12, %v3403_v9 }
 0xebe   : > { %v7680_v11 = vpop.f32.mrf.mxu0 }
 0xebf   : > { %v7702_v13 = vpop.f32.mrf.mxu1 }
 0xec0   : > { %v7681_v16 = vpop.f32.mrf.mxu0 }
 0xec1   : > { %v7682_v18 = vadd.f32 %v7681_v16, %v7680_v11  ;;  %v7703_v19 = vpop.f32.mrf.mxu1 }
 0xec2   : > { %v7683_v51 = vpop.f32.mrf.mxu0  ;;  %v7704_v21 = vadd.f32 %v7703_v19, %v7702_v13 }
 0xec3   : > { %v3483_v20 = vadd.f32 %v7682_v18, %v3443_v17  ;;  %v7705_v42 = vpop.f32.mrf.mxu1 }
 0xec4   : > { %v7684_v22 = vpop.f32.mrf.mxu0 }
 0xec5   : > { %v3523_v0 = vadd.f32 %v7704_v21, %v3483_v20  ;;  %v7706_v23 = vpop.f32.mrf.mxu1 }
 0xec6   : > { %v7001_v23 = vld [vmem:[%s10307_s3 + $0x10] sm:$0xf] }
 0xec7   : > { %v3528_v24 = vadd.f32 %v3523_v0, %v8873_v28 }
 0xec9   : > { %v3531_v25 = vsel %vm597_vm1, %v3528_v24, 0.0 }
 0xeca   : > { %3532 = vadd.xlane.f32.xlu1 %v3531_v25  ;;  %v7002_v25 = vld [vmem:[%s10307_s3 + $0x14] sm:$0xf] }
 0xf53   : > { %v3533_v26 = vpop.xlane.xlu1 %3532 }
 0xf54   : > { %v3534_v27 = vmul.f32 0.03125, %v3533_v26  ;;  %v3969_v26 = vsel %vm982_vm3, %v7002_v25, 0 }
 0xf56   : > { %v3535_v29 = vsub.f32 %v3528_v24, %v3534_v27  ;;  %v4015_v24 = vsel %vm982_vm3, %v7001_v23, 0 }
 0xf58   : > { %v3536_v30 = vmul.f32 %v3535_v29, %v3535_v29 }
 0xf5a   : > { %v3537_v5 = vsel %vm597_vm1, %v3536_v30, 0.0 }
 0xf5b   : > { %3538 = vadd.xlane.f32.xlu1 %v3537_v5 }
 0xfe4   : > { %v3539_v28 = vpop.xlane.xlu1 %3538 }
 0xfe5   : > { %v3540_v15 = vmul.f32 0.03125, %v3539_v28 }
 0xfe7   : > { %v3541_v31 = vadd.f32 1e-05, %v3540_v15 }
 0xfe9   : > { %8436 = vrsqrt.f32 %v3541_v31 }
 0xff6   : > { %v8437_v37 = vpop.eup %8436 }
 0xff7   : > { %v3543_v33 = vmul.f32 %v8437_v37, %v3535_v29 }
 0xff9   : > { %v3550_v8 = vmul.f32 %v6990_v32, %v3543_v33 }
 0xffb   : > { %v9451_v7 = vadd.f32 %v6991_v6, %v3550_v8 }
 0xffd   : > { %v3563_v34 = vpack.c.bf16 %v9451_v7, %v9451_v7 }
 0xfff   : > { %8000 = vmatmul.mubr.msk.bf16.vlgmr.msra.gmra.mxu0 %vm597_vm1, %v3563_v34 }
0x1000   : > { %8015 = vmatprep.mubr.msk.f32.mxu0 %vm8522_vm0, %v8521_v1 }
0x10bf   : > { %v3621_v38 = vpop.f32.mrf.mxu0 }
0x10c0   : > { %v9461_v45 = vadd.f32 %v6997_v35, %v3621_v38 }
0x10c1   : > { %v8001_v46 = vpop.f32.mrf.mxu0 }
0x10c2   : > { %3801 = vrot.lane.b32.xlu0 %v9461_v45, %s10308_s29  ;;  %3634 = vrot.lane.b32.xlu1 %v9461_v45, %s10309_s24  ;;  %v9468_v49 = vmul.f32 0.35355338, %v9461_v45  ;;  %s10315_s24 = smov 48   ;;  %s8463_s29 = sshll.u32 %s8535_s0, 4  ;;  %s8464_s29 = int_to_ptr.vmem [resolvable:$false] %s8463_s29 }
0x10c3   : > { %v3624_v47 = vpop.f32.mrf.mxu0 }
0x10c5   : > { %v8002_v50 = vpop.f32.mrf.mxu0 }
0x10c6   : > { %3799 = vrot.lane.b32.xlu1 %v9468_v49, %s10310_s21  ;;  %s10316_s21 = smov 104  }
0x1134   : > { %v3802_v52 = vpop.permute.xlu0 %3801  ;;  %v3635_v53 = vpop.permute.xlu1 %3634 }
0x1135   : > { %8004 = vmatpush3.xpose.msk.msra.mxu1 %vm649_vm2, %v3635_v53  ;;  %8014 = vmatpush3.xpose.msk.msra.mxu0 %vm649_vm2, %v3802_v52 }
0x1136   : > { %8008 = vmatprep.subr.mxu1 %v8521_v1  ;;  %8023 = vmatprep.subr.bf16.mxu0 %v8521_v1 }
0x1138   : > { %v3800_v54 = vpop.permute.xlu1 %3799  ;;  %8006 = vmatmul.mubr.msk.f32.vlgmr.msra.gmra.mxu1 %vm649_vm2, %v9468_v49 }
0x1139   : > { %8016 = vmatmul.mubr.msk.f32.vlgmr.msra.gmra.mxu0 %vm649_vm2, %v3800_v54  ;;  %8010 = vmatprep.mubr.msk.f32.mxu1 %vm8522_vm0, %v8521_v1 }
0x113a   : > { %8025 = vmatprep.mubr.msk.bf16.mxu0 %vm8522_vm0, %v8521_v1  ;;  %8024 = vmatpush3.bf16.msra.mxu0 %v3969_v26 }
0x113b   : > { %8035 = vmatprep.subr.mxu0 %v8521_v1 }
0x11f8   : > { %v3707_v55 = vpop.f32.mrf.mxu1 }
0x11f9   : > { %v3873_v56 = vpop.f32.mrf.mxu0  ;;  %v3711_v59 = vsel %vm649_vm2, %v3707_v55, -inf }
0x11fa   : > { %3712 = vmax.xlane.f32.xlu1 %v3711_v59  ;;  %v8007_v60 = vpop.f32.mrf.mxu1  ;;  %v3877_v61 = vsel %vm649_vm2, %v3873_v56, -inf }
0x11fb   : > { %3878 = vmax.xlane.f32.xlu0 %v3877_v61  ;;  %v8017_v62 = vpop.f32.mrf.mxu0 }
0x1211   : > { %3888 = vrot.lane.b32.xlu0 %v9461_v45, %s10311_s22  ;;  %s10317_s22 = smov 72  }
0x1283   : > { %v3713_v2 = vpop.xlane.xlu1 %3712 }
0x1284   : > { %v3714_v3 = vsub.f32 %v3707_v55, %v3713_v2  ;;  %v3879_v4 = vpop.xlane.xlu0 %3878 }
0x1285   : > { %v3880_v39 = vsub.f32 %v3873_v56, %v3879_v4 }
0x1286   : > { %v3715_v9 = vmul.f32 1.442695, %v3714_v3  ;;  %v7003_v3 = vld [vmem:[%s10307_s3 + $0x18] sm:$0xf] }
0x1287   : > { %v3881_v11 = vmul.f32 1.442695, %v3880_v39  ;;  %v4227_v4 = vsel %vm982_vm3, %v7003_v3, 0 }
0x1288   : > { %8438 = vpow2.f32 %v3715_v9  ;;  %v3889_v42 = vpop.permute.xlu0 %3888 }
0x1289   : > { %8440 = vpow2.f32 %v3881_v11 }
0x1295   : > { %v8439_v12 = vpop.eup %8438 }
0x1296   : > { %v3717_v13 = vsel %vm649_vm2, %v8439_v12, 0.0  ;;  %v8441_v16 = vpop.eup %8440 }
0x1297   : > { %3718 = vadd.xlane.f32.xlu1 %v3717_v13  ;;  %v3883_v17 = vsel %vm649_vm2, %v8441_v16, 0.0 }
0x129b   : > { %3884 = vadd.xlane.f32.xlu1 %v3883_v17 }
0x12ac   : > { %3722 = vrot.lane.b32.xlu1 %v9461_v45, %s10312_s26  ;;  %s8465_s26 = scalar_lea.vmem %s8464_s29, 32 }
0x12b0   : > { %4059 = vrot.lane.b32.xlu1 %v9461_v45, %s10313_s2  ;;  %s6612_s2 = sld [smem:[#allocation2]] }
0x12b4   : > { %4057 = vrot.lane.b32.xlu1 %v9468_v49, %s10314_s25  ;;  %s10318_s25 = smov 40  }
0x1320   : > { %v3719_v18 = vpop.xlane.xlu1 %3718 }
0x1321   : > { %8442 = vrcp.f32 %v3719_v18 }
0x1324   : > { %v3885_v19 = vpop.xlane.xlu1 %3884 }
0x1325   : > { %8444 = vrcp.f32 %v3885_v19 }
0x1328   : > { %v3723_v51 = vpop.permute.xlu1 %3722 }
0x1329   : > { %8009 = vmatpush3.msra.mxu1 %v3723_v51 }
0x132a   : > { %8018 = vmatprep.subr.mxu1 %v8521_v1 }
0x132c   : > { %v4060_v28 = vpop.permute.xlu1 %4059 }
0x132e   : > { %v8443_v20 = vpop.eup %8442 }
0x132f   : > { %v3721_v21 = vmul.f32 %v8443_v20, %v8439_v12 }
0x1330   : > { %v4058_v15 = vpop.permute.xlu1 %4057 }
0x1331   : > { %8011 = vmatmul.mubr.msk.f32.vlgmr.msra.gmra.mxu1 %vm649_vm2, %v3721_v21 }
0x1332   : > { %v8445_v22 = vpop.eup %8444  ;;  %8019 = vmatpush3.msra.mxu1 %v3889_v42  ;;  %8020 = vmatprep.mubr.msk.f32.mxu1 %vm8522_vm0, %v8521_v1 }
0x1333   : > { %v3887_v0 = vmul.f32 %v8445_v22, %v8441_v16  ;;  %8029 = vmatprep.subr.bf16.mxu1 %v8521_v1 }
0x1335   : > { %8021 = vmatmul.mubr.msk.f32.vlgmr.msra.gmra.mxu1 %vm649_vm2, %v3887_v0 }
0x1336   : > { %8031 = vmatprep.mubr.msk.bf16.mxu1 %vm8522_vm0, %v8521_v1  ;;  %8030 = vmatpush3.bf16.msra.mxu1 %v4015_v24 }
0x1337   : > { %8040 = vmatprep.subr.mxu1 %v8521_v1 }
0x13f1   : > { %v3794_v27 = vpop.f32.mrf.mxu1 }
0x13f2   : > { %v3798_v29 = vpack.c.bf16 %v3794_v27, %v3794_v27 }
0x13f3   : > { %v8012_v30 = vpop.f32.mrf.mxu1 }
0x13f4   : > { %8032 = vmatmul.mubr.msk.bf16.vlgmr.msra.gmra.mxu1 %vm649_vm2, %v3798_v29  ;;  %v7004_v29 = vld [vmem:[%s10307_s3 + $0x1c] sm:$0xf] }
0x13f5   : > { %v3960_v5 = vpop.f32.mrf.mxu1  ;;  %8042 = vmatprep.mubr.msk.f32.mxu1 %vm8522_vm0, %v8521_v1 }
0x13f6   : > { %v3964_v14 = vpack.c.bf16 %v3960_v5, %v3960_v5 }
0x13f7   : > { %v8022_v36 = vpop.f32.mrf.mxu1 }
0x13f8   : > { %8026 = vmatmul.mubr.msk.bf16.vlgmr.msra.gmra.mxu0 %vm649_vm2, %v3964_v14 }
0x13f9   : > { %8036 = vmatpush3.xpose.msk.msra.mxu0 %vm649_vm2, %v4060_v28  ;;  %8037 = vmatprep.mubr.msk.f32.mxu0 %vm8522_vm0, %v8521_v1  ;;  %v7022_v28 = vld [vmem:[%s10260_s4 + $0x1] ss:$0 sm:$0xff] }
0x13fa   : > { %8045 = vmatprep.subr.bf16.mxu0 %v8521_v1 }
0x1400   : > { %8038 = vmatmul.mubr.msk.f32.vlgmr.msra.gmra.mxu0 %vm649_vm2, %v4058_v15 }
0x1401   : > { %8047 = vmatprep.mubr.msk.bf16.mxu0 %vm8522_vm0, %v8521_v1  ;;  %8046 = vmatpush3.bf16.msra.mxu0 %v4227_v4 }
0x1402   : > { %8061 = vmatprep.subr.bf16.mxu0 %v8521_v1 }
0x14b4   : > { %v4051_v31 = vpop.f32.mrf.mxu1 }
0x14b6   : > { %v8033_v37 = vpop.f32.mrf.mxu1 }
0x14b8   : > { %v4005_v32 = vpop.f32.mrf.mxu0  ;;  %v4054_v33 = vpop.f32.mrf.mxu1 }
0x14b9   : > { %v4052_v6 = vadd.f32 %v4051_v31, %v4005_v32 }
0x14ba   : > { %v8027_v8 = vpop.f32.mrf.mxu0  ;;  %v8034_v34 = vpop.f32.mrf.mxu1 }
0x14bc   : > { %v4008_v35 = vpop.f32.mrf.mxu0 }
0x14be   : > { %v8028_v38 = vpop.f32.mrf.mxu0 }
0x14c0   : > { %v4131_v46 = vpop.f32.mrf.mxu0 }
0x14c1   : > { %v4135_v47 = vsel %vm649_vm2, %v4131_v46, -inf }
0x14c2   : > { %4136 = vmax.xlane.f32.xlu0 %v4135_v47  ;;  %v8039_v50 = vpop.f32.mrf.mxu0 }
0x14c3   : > { %v7043_v50 = vld [vmem:[%s10263_s7 + $0x180] sm:$0xff] }
0x14d8   : > { %4146 = vrot.lane.b32.xlu0 %v9461_v45, %s10315_s24  ;;  %s7502_s24 = sshll.u32 %s8655_s15, 4 }
0x14dc   : > { %4270 = vrot.lane.b32.xlu0 %v9468_v49, %s10316_s21  ;;  %s566_s21 = scalar_lea.vmem [#allocation3], %s565_s1 }
0x154b   : > { %v4137_v52 = vpop.xlane.xlu0 %4136 }
0x154c   : > { %v4138_v53 = vsub.f32 %v4131_v46, %v4137_v52  ;;  %v7051_v52 = vld [vmem:[%s10263_s7 + $0x1c0] sm:$0xff] }
0x154e   : > { %v4139_v54 = vmul.f32 1.442695, %v4138_v53  ;;  %v7078_v53 = vcombine.high %v7043_v50, %v7051_v52 }
0x154f   : > { %v4147_v55 = vpop.permute.xlu0 %4146 }
0x1550   : > { %8446 = vpow2.f32 %v4139_v54  ;;  %8041 = vmatpush3.msra.mxu1 %v4147_v55  ;;  %v7052_v54 = vld [vmem:[%s10263_s7 + $0x1c8] sm:$0xff]  ;;  %v7077_v55 = vcombine.low %v7043_v50, %v7051_v52 }
0x1551   : > { %8051 = vmatprep.subr.mxu1 %v8521_v1 }
0x1553   : > { %v4271_v2 = vpop.permute.xlu0 %4270 }
0x155d   : > { %v8447_v56 = vpop.eup %8446 }
0x155e   : > { %v4141_v59 = vsel %vm649_vm2, %v8447_v56, 0.0 }
0x155f   : > { %4142 = vadd.xlane.f32.xlu1 %v4141_v59 }
0x1570   : > { %4272 = vrot.lane.b32.xlu1 %v9461_v45, %s10317_s22  ;;  %s6738_s22 = sshll.u32 %s566_s21, 4  ;;  %s10217_s22 = int_to_ptr.vmem [resolvable:$true] %s6738_s22 }
0x1571   : > { %s8459_s15 = scalar_lea.vmem %s10217_s22, 16  ;;  %p8466_p0 = scmp.lt.s32.totalorder %s10217_s22, %s8464_s29 }
0x1572   : > { %p8460_p11 = scmp.ne.s32.totalorder %s10217_s22, %s8459_s15  ;;  %p8467_p1 = scmp.lt.s32.totalorder %s8465_s26, %s8459_s15 }
0x1574   : > { %p8461_p12 = pnand %p8460_p11, %p8672_p5  ;;  %p8468_p2 = por %p8467_p1, %p8466_p0 }
0x1576   : > { %p8462_p13 = pneg %p8461_p12 }
0x1578   : > { %p8469_p3 = pnand %p8468_p2, %p8462_p13 }
0x15e8   : > { %v4143_v60 = vpop.xlane.xlu1 %4142 }
0x15e9   : > { %8448 = vrcp.f32 %v4143_v60  ;;  %v7027_v60 = vld [vmem:[%s10263_s7 + $0x100] sm:$0xff] }
0x15ec   : > { %v4273_v49 = vpop.permute.xlu1 %4272 }
0x15f6   : > { %v8449_v61 = vpop.eup %8448 }
0x15f7   : > { %v4145_v62 = vmul.f32 %v8449_v61, %v8447_v56  ;;  %v7035_v61 = vld [vmem:[%s10263_s7 + $0x140] sm:$0xff] }
0x15f8   : > { %v7061_v3 = vcombine.low %v7027_v60, %v7035_v61 }
0x15f9   : > { %8043 = vmatmul.mubr.msk.f32.vlgmr.msra.gmra.mxu1 %vm649_vm2, %v4145_v62  ;;  %v7028_v62 = vld [vmem:[%s10263_s7 + $0x108] sm:$0xff] }
0x15fa   : > { %8052 = vmatpush3.xpose.msk.msra.mxu1 %vm649_vm2, %v4273_v49  ;;  %8053 = vmatprep.mubr.msk.f32.mxu1 %vm8522_vm0, %v8521_v1  ;;  %v7062_v49 = vcombine.high %v7027_v60, %v7035_v61 }
0x15fb   : > { %8056 = vmatprep.subr.mxu1 %v8521_v1 }
0x15fd   : > { %8054 = vmatmul.mubr.msk.f32.vlgmr.msra.gmra.mxu1 %vm649_vm2, %v4271_v2  ;;  %v7036_v2 = vld [vmem:[%s10263_s7 + $0x148] sm:$0xff] }
0x15fe   : > { %8058 = vmatprep.mubr.msk.f32.mxu1 %vm8522_vm0, %v8521_v1  ;;  %v7063_v4 = vcombine.low %v7028_v62, %v7036_v2 }
0x16b9   : > { %v4218_v39 = vpop.f32.mrf.mxu1 }
0x16ba   : > { %v4222_v9 = vpack.c.bf16 %v4218_v39, %v4218_v39  ;;  %v7064_v39 = vcombine.high %v7028_v62, %v7036_v2  ;;  %v7033_v62 = vld [vmem:[%s10263_s7 + $0x130] sm:$0xff]  ;;  %v7034_v2 = vld [vmem:[%s10263_s7 + $0x138] sm:$0xff] }
0x16bb   : > { %v8044_v11 = vpop.f32.mrf.mxu1 }
0x16bc   : > { %8048 = vmatmul.mubr.msk.bf16.vlgmr.msra.gmra.mxu0 %vm649_vm2, %v4222_v9  ;;  %v7045_v9 = vld [vmem:[%s10263_s7 + $0x190] sm:$0xff] }
0x16bd   : > { %v4344_v12 = vpop.f32.mrf.mxu1  ;;  %8063 = vmatprep.mubr.msk.bf16.mxu0 %vm8522_vm0, %v8521_v1  ;;  %v7053_v11 = vld [vmem:[%s10263_s7 + $0x1d0] sm:$0xff] }
0x16be   : > { %v4348_v13 = vsel %vm649_vm2, %v4344_v12, -inf }
0x16bf   : > { %4349 = vmax.xlane.f32.xlu1 %v4348_v13  ;;  %v8055_v16 = vpop.f32.mrf.mxu1  ;;  %v7081_v13 = vcombine.low %v7045_v9, %v7053_v11 }
0x16c0   : > { %v7082_v16 = vcombine.high %v7045_v9, %v7053_v11 }
0x1748   : > { %v4350_v17 = vpop.xlane.xlu1 %4349 }
0x1749   : > { %v4351_v18 = vsub.f32 %v4344_v12, %v4350_v17  ;;  %v7046_v12 = vld [vmem:[%s10263_s7 + $0x198] sm:$0xff] }
0x174a   : > { %v7054_v17 = vld [vmem:[%s10263_s7 + $0x1d8] sm:$0xff] }
0x174b   : > { %v4352_v19 = vmul.f32 1.442695, %v4351_v18  ;;  %v7083_v18 = vcombine.low %v7046_v12, %v7054_v17 }
0x174d   : > { %8450 = vpow2.f32 %v4352_v19  ;;  %v7084_v19 = vcombine.high %v7046_v12, %v7054_v17  ;;  %v8281_v17 = vld [vmem:[%s10265_s9 + $0x4f8] sm:$0xff]  }
0x175a   : > { %v8451_v51 = vpop.eup %8450 }
0x175b   : > { %v4354_v20 = vsel %vm649_vm2, %v8451_v51, 0.0 }
0x175c   : > { %4355 = vadd.xlane.f32.xlu0 %v4354_v20 }
0x1772   : > { %4359 = vrot.lane.b32.xlu0 %v9461_v45, %s10318_s25  ;;  %v4440_v45 = vsel %vm982_vm3, %v7004_v29, 0  ;;  %v7038_v29 = vld [vmem:[%s10263_s7 + $0x158] sm:$0xff]  ;;  %s10215_s25 = scalar_lea.hbm %s10274_s18, %s7502_s24 }
0x1773   : > { %8062 = vmatpush3.bf16.msra.mxu0 %v4440_v45 }
0x177c   : > { %v4263_v21 = vpop.f32.mrf.mxu0 }
0x177d   : > { %v4269_v42 = vadd.f32 %v4263_v21, %v4052_v6 }
0x177e   : > { %v8049_v22 = vpop.f32.mrf.mxu0 }
0x177f   : > { %v7025_v22 = vld [vmem:[%s10261_s5 + $0x1] ss:$0 sm:$0xff] }
0x1780   : > { %v4266_v0 = vpop.f32.mrf.mxu0 }
0x1782   : > { %v8050_v23 = vpop.f32.mrf.mxu0 }
0x1783   : > { %v7026_v23 = vld [vmem:[%s10262_s6 + $0x1] ss:$0 sm:$0xff] }
0x17e5   : > { %v4356_v24 = vpop.xlane.xlu0 %4355 }
0x17e6   : > { %8452 = vrcp.f32 %v4356_v24 }
0x17e9   : > { %v4360_v25 = vpop.permute.xlu0 %4359 }
0x17ea   : > { %8057 = vmatpush3.msra.mxu1 %v4360_v25  ;;  %v7029_v25 = vld [vmem:[%s10263_s7 + $0x110] sm:$0xff] }
0x17eb   : > { %4818 = vmatprep.subr.bf16.mxu1 %v7078_v53  ;;  %v7057_v53 = vld [vmem:[%s10263_s7 + $0x1f0] sm:$0xff] }
0x17f3   : > { %v8453_v26 = vpop.eup %8452 }
0x17f4   : > { %v4358_v27 = vmul.f32 %v8453_v26, %v8451_v51  ;;  %v7037_v26 = vld [vmem:[%s10263_s7 + $0x150] sm:$0xff] }
0x17f6   : > { %8059 = vmatmul.mubr.msk.f32.vlgmr.msra.gmra.mxu1 %vm649_vm2, %v4358_v27  ;;  %v7030_v27 = vld [vmem:[%s10263_s7 + $0x118] sm:$0xff] }
0x17f7   : > { %4838 = vmatprep.mubr.bf16.mxu1 %v8534_v10  ;;  %4819 = vmatpush1.bf16.msra.mxu1 %v7077_v55  ;;  %v7058_v55 = vld [vmem:[%s10263_s7 + $0x1f8] sm:$0xff] }
0x17f8   : > { %4820 = vmatprep.subr.bf16.mxu1 %v7062_v49  ;;  %v7041_v49 = vld [vmem:[%s10263_s7 + $0x170] sm:$0xff] }
0x17f9   : > { %v7074_v9 = vcombine.high %v7033_v62, %v7041_v49  ;;  %v7073_v12 = vcombine.low %v7033_v62, %v7041_v49 }
0x17fb   : > { %4821 = vmatpush1.bf16.msra.mxu1 %v7061_v3  ;;  %v7042_v3 = vld [vmem:[%s10263_s7 + $0x178] sm:$0xff] }
0x17fc   : > { %4900 = vmatprep.subr.bf16.mxu1 %v7082_v16  ;;  %v7076_v11 = vcombine.high %v7034_v2, %v7042_v3  ;;  %v8280_v16 = vld [vmem:[%s10265_s9 + $0x478] sm:$0xff]  }
0x18b6   : > { %v4431_v30 = vpop.f32.mrf.mxu1 }
0x18b7   : > { %v4435_v5 = vpack.c.bf16 %v4431_v30, %v4431_v30 }
0x18b8   : > { %v8060_v14 = vpop.f32.mrf.mxu1 }
0x18b9   : > { %8064 = vmatmul.mubr.msk.bf16.vlgmr.msra.gmra.mxu0 %vm649_vm2, %v4435_v5  ;;  %v7066_v5 = vcombine.high %v7029_v25, %v7037_v26  ;;  %v7068_v14 = vcombine.high %v7030_v27, %v7038_v29 }
0x18ba   : > { %4879 = vmatprep.mubr.bf16.mxu0 %v8534_v10 }
0x1979   : > { %v4476_v36 = vpop.f32.mrf.mxu0 }
0x197a   : > { %v4482_v15 = vadd.f32 %v4476_v36, %v4269_v42  ;;  %v7047_v36 = vld [vmem:[%s10263_s7 + $0x1a0] sm:$0xff] }
0x197b   : > { %v8065_v31 = vpop.f32.mrf.mxu0 }
0x197c   : > { %v4491_v37 = vadd.f32 %v7022_v28, %v4482_v15  ;;  %v7055_v28 = vld [vmem:[%s10263_s7 + $0x1e0] sm:$0xff]  ;;  %v7048_v15 = vld [vmem:[%s10263_s7 + $0x1a8] sm:$0xff] }
0x197d   : > { %v4479_v32 = vpop.f32.mrf.mxu0  ;;  %v7056_v31 = vld [vmem:[%s10263_s7 + $0x1e8] sm:$0xff] }
0x197e   : > { %v4492_v33 = vadd.f32 %v4491_v37, %v9451_v7  ;;  %v7044_v7 = vld [vmem:[%s10263_s7 + $0x188] sm:$0xff]  ;;  %v7065_v37 = vcombine.low %v7029_v25, %v7037_v26  ;;  %v7067_v32 = vcombine.low %v7030_v27, %v7038_v29  ;;  %v8293_v25 = vld [vmem:[%s10265_s9 + $0x4e0] sm:$0xff]   ;;  %v8296_v29 = vld [vmem:[%s10265_s9 + $0x458] sm:$0xff]  }
0x197f   : > { %v8066_v6 = vpop.f32.mrf.mxu0  ;;  %v7079_v56 = vcombine.low %v7044_v7, %v7052_v54  ;;  %v7080_v59 = vcombine.high %v7044_v7, %v7052_v54  ;;  %v7049_v7 = vld [vmem:[%s10263_s7 + $0x1b0] sm:$0xff]  ;;  %v7050_v54 = vld [vmem:[%s10263_s7 + $0x1b8] sm:$0xff]  ;;  %v8294_v26 = vld [vmem:[%s10265_s9 + $0x420] sm:$0xff]  }
0x1980   : > { %v4497_v8 = vsel %vm597_vm1, %v4492_v33, 0.0  ;;  %v7088_v6 = vcombine.high %v7048_v15, %v7056_v31  ;;  %v7090_v60 = vcombine.high %v7049_v7, %v7057_v53  ;;  %v7092_v61 = vcombine.high %v7050_v54, %v7058_v55  ;;  %v8295_v27 = vld [vmem:[%s10265_s9 + $0x4a0] sm:$0xff]  }
0x1981   : > { %4498 = vadd.xlane.f32.xlu1 %v4497_v8  ;;  %4859 = vmatprep.subr.bf16.mxu0 %v7080_v59  ;;  %v7031_v8 = vld [vmem:[%s10263_s7 + $0x120] sm:$0xff] }
0x1982   : > { %4860 = vmatpush1.bf16.msra.mxu0 %v7079_v56 }
0x1983   : > { %4861 = vmatprep.subr.bf16.mxu0 %v7064_v39  ;;  %v7091_v39 = vcombine.low %v7050_v54, %v7058_v55 }
0x1986   : > { %4862 = vmatpush1.bf16.msra.mxu0 %v7063_v4  ;;  %v7089_v4 = vcombine.low %v7049_v7, %v7057_v53 }
0x1987   : > { %4941 = vmatprep.subr.bf16.mxu0 %v7084_v19  ;;  %v8283_v19 = vld [vmem:[%s10265_s9 + $0x4b8] sm:$0xff]  }
0x1a0a   : > { %v4499_v34 = vpop.xlane.xlu1 %4498 }
0x1a0b   : > { %v4500_v35 = vmul.f32 0.03125, %v4499_v34  ;;  %v7039_v34 = vld [vmem:[%s10263_s7 + $0x160] sm:$0xff] }
0x1a0c   : > { %v7070_v50 = vcombine.high %v7031_v8, %v7039_v34  ;;  %v7069_v56 = vcombine.low %v7031_v8, %v7039_v34  ;;  %v8308_v8 = vld [vmem:[%s10265_s9 + $0x440] sm:$0xff]  }
0x1a0d   : > { %v4501_v38 = vsub.f32 %v4492_v33, %v4500_v35  ;;  %v7086_v33 = vcombine.high %v7047_v36, %v7055_v28  ;;  %v7032_v35 = vld [vmem:[%s10263_s7 + $0x128] sm:$0xff]  ;;  %v8309_v34 = vld [vmem:[%s10265_s9 + $0x4c0] sm:$0xff]  }
0x1a0f   : > { %v4502_v46 = vmul.f32 %v4501_v38, %v4501_v38 }
0x1a11   : > { %v4503_v47 = vsel %vm597_vm1, %v4502_v46, 0.0  ;;  %v7085_v46 = vcombine.low %v7047_v36, %v7055_v28  ;;  %v8300_v36 = vld [vmem:[%s10265_s9 + $0x450] sm:$0xff]  }
0x1a12   : > { %4504 = vadd.xlane.f32.xlu1 %v4503_v47  ;;  %v7087_v47 = vcombine.low %v7048_v15, %v7056_v31  ;;  %v8301_v28 = vld [vmem:[%s10265_s9 + $0x4d0] sm:$0xff]  }
0x1a13   : > { %v8302_v15 = vld [vmem:[%s10265_s9 + $0x410] sm:$0xff]  }
0x1a14   : > { %v8303_v31 = vld [vmem:[%s10265_s9 + $0x490] sm:$0xff]  }
0x1a9b   : > { %v4505_v51 = vpop.xlane.xlu1 %4504 }
0x1a9c   : > { %v4506_v20 = vmul.f32 0.03125, %v4505_v51  ;;  %v8284_v51 = vld [vmem:[%s10265_s9 + $0x470] sm:$0xff]  }
0x1a9e   : > { %v4507_v21 = vadd.f32 1e-05, %v4506_v20  ;;  %v8286_v20 = vld [vmem:[%s10265_s9 + $0x430] sm:$0xff]  }
0x1aa0   : > { %8454 = vrsqrt.f32 %v4507_v21  ;;  %v8287_v21 = vld [vmem:[%s10265_s9 + $0x4b0] sm:$0xff]  }
0x1aad   : > { %v8455_v42 = vpop.eup %8454 }
0x1aae   : > { %v4509_v0 = vmul.f32 %v8455_v42, %v4501_v38  ;;  %v7040_v38 = vld [vmem:[%s10263_s7 + $0x168] sm:$0xff] }
0x1aaf   : > { %v7072_v52 = vcombine.high %v7032_v35, %v7040_v38  ;;  %v7071_v59 = vcombine.low %v7032_v35, %v7040_v38  ;;  %v8288_v42 = vld [vmem:[%s10265_s9 + $0x468] sm:$0xff]   ;;  %v8310_v35 = vld [vmem:[%s10265_s9 + $0x400] sm:$0xff]  }
0x1ab0   : > { %v4516_v24 = vmul.f32 %v7025_v22, %v4509_v0  ;;  %v8289_v22 = vld [vmem:[%s10265_s9 + $0x4e8] sm:$0xff]   ;;  %v8311_v38 = vld [vmem:[%s10265_s9 + $0x480] sm:$0xff]  }
0x1ab1   : > { %v8290_v0 = vld [vmem:[%s10265_s9 + $0x428] sm:$0xff]  }
0x1ab2   : > { %v9621_v45 = vadd.f32 %v7026_v23, %v4516_v24  ;;  %v8291_v23 = vld [vmem:[%s10265_s9 + $0x4a8] sm:$0xff]   ;;  %v8292_v24 = vld [vmem:[%s10265_s9 + $0x460] sm:$0xff]  }
0x1ab4   : > { %v9625_v30 = vpack.c.bf16 %v9621_v45, %v9621_v45 }
0x1ab6   : > { %7093 = vmatmul.mubr.msk.bf16.vlgmr.msra.gmra.mxu1 %vm597_vm1, %v9625_v30  ;;  %7094 = vmatmul.mubr.msk.bf16.vlgmr.msra.gmra.mxu0 %vm597_vm1, %v9625_v30 }
0x1ab7   : > { %4901 = vmatpush1.bf16.msra.mxu1 %v7081_v13  ;;  %4942 = vmatpush1.bf16.msra.mxu0 %v7083_v18  ;;  %v7075_v13 = vcombine.low %v7034_v2, %v7042_v3  ;;  %v8282_v18 = vld [vmem:[%s10265_s9 + $0x438] sm:$0xff]  }
0x1ab8   : > { %4902 = vmatprep.subr.bf16.mxu1 %v7066_v5  ;;  %4943 = vmatprep.subr.bf16.mxu0 %v7068_v14  ;;  %v8298_v5 = vld [vmem:[%s10265_s9 + $0x418] sm:$0xff]  }
0x1ab9   : > { %4920 = vmatprep.mubr.bf16.mxu1 %v8534_v10  ;;  %4961 = vmatprep.mubr.bf16.mxu0 %v8534_v10  ;;  %v8299_v14 = vld [vmem:[%s10265_s9 + $0x498] sm:$0xff]  }
0x1abb   : > { %4903 = vmatpush1.bf16.msra.mxu1 %v7065_v37  ;;  %4944 = vmatpush1.bf16.msra.mxu0 %v7067_v32  ;;  %v8304_v37 = vld [vmem:[%s10265_s9 + $0x448] sm:$0xff]  }
0x1abc   : > { %4982 = vmatprep.subr.bf16.mxu1 %v7086_v33  ;;  %5023 = vmatprep.subr.bf16.mxu0 %v7088_v6  ;;  %v8305_v32 = vld [vmem:[%s10265_s9 + $0x4c8] sm:$0xff]  }
0x1abd   : > { %v8306_v33 = vld [vmem:[%s10265_s9 + $0x408] sm:$0xff]  }
0x1abe   : > { %7095 = vmatmul.mubr.msk.bf16.vlgmr.msra.gmra.mxu1 %vm597_vm1, %v9625_v30  ;;  %7096 = vmatmul.mubr.msk.bf16.vlgmr.msra.gmra.mxu0 %vm597_vm1, %v9625_v30  ;;  %v8307_v6 = vld [vmem:[%s10265_s9 + $0x488] sm:$0xff]  }
0x1abf   : > { %4983 = vmatpush1.bf16.msra.mxu1 %v7085_v46  ;;  %5024 = vmatpush1.bf16.msra.mxu0 %v7087_v47  ;;  %v8312_v46 = vld [vmem:[%s10265_s9 + $0x578] sm:$0xff]  }
0x1ac0   : > { %4984 = vmatprep.subr.bf16.mxu1 %v7070_v50  ;;  %5025 = vmatprep.subr.bf16.mxu0 %v7072_v52  ;;  %v8313_v47 = vld [vmem:[%s10265_s9 + $0x5f8] sm:$0xff]   ;;  %v9802_v50 = vld [vmem:[%s10264_s8 + $0x10] sm:$0xff] }
0x1ac1   : > { %5002 = vmatprep.mubr.bf16.mxu1 %v8534_v10  ;;  %5043 = vmatprep.mubr.bf16.mxu0 %v8534_v10  ;;  %v4566_v52 = vrot.slane %v9802_v50, %v9054_v40  ;;  %v4574_v7 = vrot.slane %v9802_v50, %v9057_v41  ;;  %v4570_v53 = vrot.slane %v9802_v50, %v9065_v43 }
0x1ac2   : > { %v4578_v54 = vrot.slane %v9802_v50, %v9068_v44 }
0x1ac3   : > { %4985 = vmatpush1.bf16.msra.mxu1 %v7069_v56  ;;  %5026 = vmatpush1.bf16.msra.mxu0 %v7071_v59 }
0x1ac4   : > { %5064 = vmatprep.subr.bf16.mxu1 %v7090_v60  ;;  %5105 = vmatprep.subr.bf16.mxu0 %v7092_v61 }
0x1ac6   : > { %7097 = vmatmul.mubr.msk.bf16.vlgmr.msra.gmra.mxu1 %vm597_vm1, %v9625_v30  ;;  %7098 = vmatmul.mubr.msk.bf16.vlgmr.msra.gmra.mxu0 %vm597_vm1, %v9625_v30 }
0x1ac7   : > { %5065 = vmatpush1.bf16.msra.mxu1 %v7089_v4  ;;  %5106 = vmatpush1.bf16.msra.mxu0 %v7091_v39 }
0x1ac8   : > { %5066 = vmatprep.subr.bf16.mxu1 %v7074_v9  ;;  %5107 = vmatprep.subr.bf16.mxu0 %v7076_v11 }
0x1ac9   : > { %5084 = vmatprep.mubr.bf16.mxu1 %v8534_v10  ;;  %5125 = vmatprep.mubr.bf16.mxu0 %v8534_v10  ;;  %v8285_v10 = vld [vmem:[%s10265_s9 + $0x4f0] sm:$0xff]  }
0x1acb   : > { %5067 = vmatpush1.bf16.msra.mxu1 %v7073_v12  ;;  %5108 = vmatpush1.bf16.msra.mxu0 %v7075_v13 }
0x1acc   : > { %7735 = vmatprep.subr.bf16.mxu1 %v8280_v16  ;;  %7757 = vmatprep.subr.bf16.mxu0 %v8281_v17 }
0x1ace   : > { %7099 = vmatmul.mubr.msk.bf16.vlgmr.msra.gmra.mxu1 %vm597_vm1, %v9625_v30  ;;  %7100 = vmatmul.mubr.msk.bf16.vlgmr.msra.gmra.mxu0 %vm597_vm1, %v9625_v30  ;;  %v8297_v30 = vld [vmem:[%s10265_s9 + $0x4d8] sm:$0xff]  }
0x1acf   : > { %7736 = vmatpush3.bf16.msra.mxu1 %v8282_v18  ;;  %7758 = vmatpush3.bf16.msra.mxu0 %v8283_v19  ;;  %v4586_v19 = vrot.slane %v9802_v50, %v9079_v57 }
0x1ad0   : > { %7737 = vmatprep.subr.bf16.mxu1 %v8284_v51  ;;  %7759 = vmatprep.subr.bf16.mxu0 %v8285_v10  ;;  %v4594_v51 = vrot.slane %v9802_v50, %v9082_v58  ;;  %v8314_v10 = vld [vmem:[%s10265_s9 + $0x538] sm:$0xff]  }
0x1ad3   : > { %7738 = vmatpush3.bf16.msra.mxu1 %v8286_v20  ;;  %7760 = vmatpush3.bf16.msra.mxu0 %v8287_v21  ;;  %v8315_v20 = vld [vmem:[%s10265_s9 + $0x5b8] sm:$0xff]  }
0x1ad4   : > { %7739 = vmatprep.subr.bf16.mxu1 %v8288_v42  ;;  %7761 = vmatprep.subr.bf16.mxu0 %v8289_v22 }
0x1ad7   : > { %7740 = vmatpush3.bf16.msra.mxu1 %v8290_v0  ;;  %7762 = vmatpush3.bf16.msra.mxu0 %v8291_v23  ;;  %v8316_v23 = vld [vmem:[%s10265_s9 + $0x570] sm:$0xff]  }
0x1ad8   : > { %7741 = vmatprep.subr.bf16.mxu1 %v8292_v24  ;;  %7763 = vmatprep.subr.bf16.mxu0 %v8293_v25  ;;  %v8317_v24 = vld [vmem:[%s10265_s9 + $0x5f0] sm:$0xff]  }
0x1adb   : > { %7742 = vmatpush3.bf16.msra.mxu1 %v8294_v26  ;;  %7764 = vmatpush3.bf16.msra.mxu0 %v8295_v27 }
0x1adc   : > { %7743 = vmatprep.subr.bf16.mxu1 %v8296_v29  ;;  %7765 = vmatprep.subr.bf16.mxu0 %v8297_v30  ;;  %v8318_v30 = vld [vmem:[%s10265_s9 + $0x530] sm:$0xff]  }
0x1adf   : > { %7744 = vmatpush3.bf16.msra.mxu1 %v8298_v5  ;;  %7766 = vmatpush3.bf16.msra.mxu0 %v8299_v14  ;;  %v8319_v5 = vld [vmem:[%s10265_s9 + $0x5b0] sm:$0xff]  }
0x1ae0   : > { %7745 = vmatprep.subr.bf16.mxu1 %v8300_v36  ;;  %7767 = vmatprep.subr.bf16.mxu0 %v8301_v28  ;;  %v8320_v28 = vld [vmem:[%s10265_s9 + $0x568] sm:$0xff]  }
0x1ae3   : > { %7746 = vmatpush3.bf16.msra.mxu1 %v8302_v15  ;;  %7768 = vmatpush3.bf16.msra.mxu0 %v8303_v31  ;;  %v8321_v15 = vld [vmem:[%s10265_s9 + $0x5e8] sm:$0xff]  }
0x1ae4   : > { %7747 = vmatprep.subr.bf16.mxu1 %v8304_v37  ;;  %7769 = vmatprep.subr.bf16.mxu0 %v8305_v32 }
0x1ae7   : > { %7748 = vmatpush3.bf16.msra.mxu1 %v8306_v33  ;;  %7770 = vmatpush3.bf16.msra.mxu0 %v8307_v6 }
0x1ae8   : > { %7749 = vmatprep.subr.bf16.mxu1 %v8308_v8  ;;  %7771 = vmatprep.subr.bf16.mxu0 %v8309_v34  ;;  %v8322_v34 = vld [vmem:[%s10265_s9 + $0x528] sm:$0xff]  }
0x1aeb   : > { %7750 = vmatpush3.bf16.msra.mxu1 %v8310_v35  ;;  %7772 = vmatpush3.bf16.msra.mxu0 %v8311_v38  ;;  %v8323_v35 = vld [vmem:[%s10265_s9 + $0x5a8] sm:$0xff]  }
0x1aec   : > { %7779 = vmatprep.subr.bf16.mxu1 %v8312_v46  ;;  %7801 = vmatprep.subr.bf16.mxu0 %v8313_v47  ;;  %v8324_v47 = vld [vmem:[%s10265_s9 + $0x560] sm:$0xff]  }
0x1b76   : > { %v4840_v55 = vpop.f32.mrf.mxu1  ;;  %v4881_v56 = vpop.f32.mrf.mxu0 }
0x1b77   : > { %v4841_v59 = vadd.f32 %v4840_v55, %v4566_v52  ;;  %v4882_v60 = vadd.f32 %v4881_v56, %v4574_v7  ;;  %v8325_v52 = vld [vmem:[%s10265_s9 + $0x5e0] sm:$0xff]   ;;  %v9869_v56 = vld [vmem:[%s10264_s8 + $0x18] sm:$0xff] }
0x1b78   : > { %v4842_v61 = vpop.f32.mrf.mxu1  ;;  %v4883_v62 = vpop.f32.mrf.mxu0  ;;  %v8327_v55 = vld [vmem:[%s10265_s9 + $0x5a0] sm:$0xff]  }
0x1b79   : > { %v4843_v49 = vadd.f32 %v4842_v61, %v4570_v53  ;;  %v4884_v2 = vadd.f32 %v4883_v62, %v4578_v54  ;;  %v5134_v3 = vmax.f32 %v4841_v59, 0.0  ;;  %v5136_v4 = vmax.f32 %v4882_v60, 0.0  ;;  %v8326_v54 = vld [vmem:[%s10265_s9 + $0x520] sm:$0xff]   ;;  %v8328_v61 = vld [vmem:[%s10265_s9 + $0x558] sm:$0xff]  }
0x1b7a   : > { %v4844_v39 = vpop.f32.mrf.mxu1  ;;  %v4885_v9 = vpop.f32.mrf.mxu0  ;;  %v8329_v62 = vld [vmem:[%s10265_s9 + $0x5d8] sm:$0xff]  }
0x1b7b   : > { %v5135_v11 = vmax.f32 %v4843_v49, 0.0  ;;  %v5137_v12 = vmax.f32 %v4884_v2, 0.0  ;;  %v5407_v21 = vpack.c.bf16 %v5134_v3, %v5134_v3  ;;  %v5409_v42 = vpack.c.bf16 %v5136_v4, %v5136_v4  ;;  %v8330_v4 = vld [vmem:[%s10265_s9 + $0x518] sm:$0xff]  }
0x1b7c   : > { %v4845_v13 = vpop.f32.mrf.mxu1  ;;  %v4886_v16 = vpop.f32.mrf.mxu0  ;;  %v4622_v49 = vrot.slane %v9869_v56, %v9133_v48  ;;  %v8331_v39 = vld [vmem:[%s10265_s9 + $0x598] sm:$0xff]  }
0x1b7d   : > { %v5408_v17 = vpack.c.bf16 %v5135_v11, %v5135_v11  ;;  %v5410_v18 = vpack.c.bf16 %v5137_v12, %v5137_v12  ;;  %v8332_v12 = vld [vmem:[%s10265_s9 + $0x550] sm:$0xff]  }
0x1b7e   : > { %v9822_v22 = vpop.f32.mrf.mxu1  ;;  %v9824_v0 = vpop.f32.mrf.mxu0  ;;  %v8333_v13 = vld [vmem:[%s10265_s9 + $0x5d0] sm:$0xff]  }
0x1b7f   : > { %6231 = vmatprep.mubr.bf16.mxu1 %v5408_v17  ;;  %6271 = vmatprep.mubr.bf16.mxu0 %v5410_v18 }
0x1b80   : > { %v4924_v25 = vpop.f32.mrf.mxu1  ;;  %v4965_v26 = vpop.f32.mrf.mxu0  ;;  %6232 = vmatmul.mubr.bf16.vlgmr.msra.gmra.mxu1 %v5407_v21  ;;  %6272 = vmatmul.mubr.bf16.vlgmr.msra.gmra.mxu0 %v5409_v42 }
0x1b81   : > { %v4925_v27 = vadd.f32 %v4924_v25, %v4586_v19  ;;  %v4966_v29 = vadd.f32 %v4965_v26, %v4594_v51  ;;  %7780 = vmatpush3.bf16.msra.mxu1 %v8314_v10  ;;  %7802 = vmatpush3.bf16.msra.mxu0 %v8315_v20  ;;  %v8334_v19 = vld [vmem:[%s10265_s9 + $0x510] sm:$0xff]   ;;  %v4582_v10 = vrot.slane %v9802_v50, %v9161_v63 }
0x1b82   : > { %v4926_v14 = vpop.f32.mrf.mxu1  ;;  %v4967_v36 = vpop.f32.mrf.mxu0  ;;  %7781 = vmatprep.subr.bf16.mxu1 %v8316_v23  ;;  %7803 = vmatprep.subr.bf16.mxu0 %v8317_v24  ;;  %v8335_v51 = vld [vmem:[%s10265_s9 + $0x590] sm:$0xff]   ;;  %v4590_v20 = vrot.slane %v9802_v50, %v9133_v48  ;;  %v8336_v23 = vld [vmem:[%s10265_s9 + $0x548] sm:$0xff]   ;;  %v4602_v25 = vrot.slane %v9869_v56, %v9065_v43  ;;  %v4610_v26 = vrot.slane %v9869_v56, %v9068_v44  ;;  %v8340_v43 = vld [vmem:[%s10265_s9 + $0x540] sm:$0xff]  }
0x1b83   : > { %v5139_v31 = vmax.f32 %v4925_v27, 0.0  ;;  %v5141_v37 = vmax.f32 %v4966_v29, 0.0  ;;  %v8337_v24 = vld [vmem:[%s10265_s9 + $0x5c8] sm:$0xff]   ;;  %v8341_v44 = vld [vmem:[%s10265_s9 + $0x5c0] sm:$0xff]  }
0x1b84   : > { %v4927_v32 = vpop.f32.mrf.mxu1  ;;  %v4968_v33 = vpop.f32.mrf.mxu0  ;;  %v8338_v50 = vld [vmem:[%s10265_s9 + $0x508] sm:$0xff]  }
0x1b85   : > { %v5412_v6 = vpack.c.bf16 %v5139_v31, %v5139_v31  ;;  %v5414_v8 = vpack.c.bf16 %v5141_v37, %v5141_v37  ;;  %7782 = vmatpush3.bf16.msra.mxu1 %v8318_v30  ;;  %7804 = vmatpush3.bf16.msra.mxu0 %v8319_v5  ;;  %v8339_v29 = vld [vmem:[%s10265_s9 + $0x588] sm:$0xff]   ;;  %v4923_v30 = vadd.f32 %v9822_v22, %v4582_v10  ;;  %v8342_v22 = vld [vmem:[%s10265_s9 + $0x500] sm:$0xff]   ;;  %v8344_v31 = vld [vmem:[%s10265_s9 + $0x678] sm:$0xff]  }
0x1b86   : > { %v9850_v38 = vpop.f32.mrf.mxu1  ;;  %v9852_v46 = vpop.f32.mrf.mxu0  ;;  %7783 = vmatprep.subr.bf16.mxu1 %v8320_v28  ;;  %7805 = vmatprep.subr.bf16.mxu0 %v8321_v15  ;;  %v4964_v5 = vadd.f32 %v9824_v0, %v4590_v20  ;;  %v8343_v0 = vld [vmem:[%s10265_s9 + $0x580] sm:$0xff]   ;;  %v8345_v37 = vld [vmem:[%s10265_s9 + $0x6f8] sm:$0xff]   ;;  %v8366_v10 = vld [vmem:[%s10265_s9 + $0x610] sm:$0xff]   ;;  %v4598_v20 = vrot.slane %v9869_v56, %v9054_v40  ;;  %v4618_v40 = vrot.slane %v9869_v56, %v9079_v57 }
0x1b87   : > { %6311 = vmatprep.mubr.bf16.mxu1 %v5412_v6  ;;  %6351 = vmatprep.mubr.bf16.mxu0 %v5414_v8  ;;  %v5138_v28 = vmax.f32 %v4923_v30, 0.0  ;;  %v8346_v6 = vld [vmem:[%s10265_s9 + $0x638] sm:$0xff]   ;;  %v8372_v57 = vld [vmem:[%s10265_s9 + $0x640] sm:$0xff]  }
0x1b88   : > { %v5006_v7 = vpop.f32.mrf.mxu1  ;;  %v5047_v53 = vpop.f32.mrf.mxu0  ;;  %v5140_v15 = vmax.f32 %v4964_v5, 0.0  ;;  %v8376_v5 = vld [vmem:[%s10265_s9 + $0x778] sm:$0xff]  }
0x1b89   : > { %7784 = vmatpush3.bf16.msra.mxu1 %v8322_v34  ;;  %7806 = vmatpush3.bf16.msra.mxu0 %v8323_v35  ;;  %v5007_v14 = vadd.f32 %v5006_v7, %v4602_v25  ;;  %v5048_v36 = vadd.f32 %v5047_v53, %v4610_v26  ;;  %v5411_v8 = vpack.c.bf16 %v5138_v28, %v5138_v28  ;;  %v8347_v35 = vld [vmem:[%s10265_s9 + $0x6b8] sm:$0xff]   ;;  %v8349_v7 = vld [vmem:[%s10265_s9 + $0x6f0] sm:$0xff]   ;;  %v8370_v26 = vld [vmem:[%s10265_s9 + $0x608] sm:$0xff]  }
0x1b8a   : > { %v5008_v59 = vpop.f32.mrf.mxu1  ;;  %v5049_v60 = vpop.f32.mrf.mxu0  ;;  %7785 = vmatprep.subr.bf16.mxu1 %v8324_v47  ;;  %7807 = vmatprep.subr.bf16.mxu0 %v8325_v52  ;;  %v5413_v34 = vpack.c.bf16 %v5140_v15, %v5140_v15  ;;  %v8348_v52 = vld [vmem:[%s10265_s9 + $0x670] sm:$0xff]   ;;  %v4626_v25 = vrot.slane %v9869_v56, %v9082_v58  ;;  %v8373_v58 = vld [vmem:[%s10265_s9 + $0x6c0] sm:$0xff]  }
0x1b8b   : > { %v5143_v32 = vmax.f32 %v5007_v14, 0.0  ;;  %v5145_v33 = vmax.f32 %v5048_v36, 0.0  ;;  %v8352_v59 = vld [vmem:[%s10265_s9 + $0x668] sm:$0xff]   ;;  %v8378_v14 = vld [vmem:[%s10265_s9 + $0x738] sm:$0xff]   ;;  %v8380_v28 = vld [vmem:[%s10265_s9 + $0x770] sm:$0xff]  }
0x1b8c   : > { %v5009_v2 = vpop.f32.mrf.mxu1  ;;  %v5050_v3 = vpop.f32.mrf.mxu0  ;;  %v8353_v60 = vld [vmem:[%s10265_s9 + $0x6e8] sm:$0xff]  }
0x1b8d   : > { %7786 = vmatpush3.bf16.msra.mxu1 %v8326_v54  ;;  %7808 = vmatpush3.bf16.msra.mxu0 %v8327_v55  ;;  %v5416_v47 = vpack.c.bf16 %v5143_v32, %v5143_v32  ;;  %v5418_v53 = vpack.c.bf16 %v5145_v33, %v5145_v33  ;;  %v8350_v54 = vld [vmem:[%s10265_s9 + $0x630] sm:$0xff]   ;;  %v8357_v2 = vld [vmem:[%s10265_s9 + $0x6e0] sm:$0xff]  }
0x1b8e   : > { %v9885_v9 = vpop.f32.mrf.mxu1  ;;  %v5127_v11 = vpop.f32.mrf.mxu0  ;;  %7787 = vmatprep.subr.bf16.mxu1 %v8328_v61  ;;  %7809 = vmatprep.subr.bf16.mxu0 %v8329_v62  ;;  %v8351_v55 = vld [vmem:[%s10265_s9 + $0x6b0] sm:$0xff]   ;;  %v8354_v61 = vld [vmem:[%s10265_s9 + $0x628] sm:$0xff]   ;;  %v8358_v3 = vld [vmem:[%s10265_s9 + $0x620] sm:$0xff]  }
0x1b8f   : > { %v9893_v16 = vadd.f32 %v5127_v11, %v4622_v49  ;;  %v8355_v62 = vld [vmem:[%s10265_s9 + $0x6a8] sm:$0xff]   ;;  %v8356_v49 = vld [vmem:[%s10265_s9 + $0x660] sm:$0xff]   ;;  %v8361_v11 = vld [vmem:[%s10265_s9 + $0x6d8] sm:$0xff]  }
0x1b90   : > { %v9895_v17 = vpop.f32.mrf.mxu1  ;;  %v9897_v18 = vpop.f32.mrf.mxu0  ;;  %v8382_v32 = vld [vmem:[%s10265_s9 + $0x730] sm:$0xff]  }
0x1b91   : > { %7788 = vmatpush3.bf16.msra.mxu1 %v8330_v4  ;;  %7810 = vmatpush3.bf16.msra.mxu0 %v8331_v39  ;;  %v8359_v4 = vld [vmem:[%s10265_s9 + $0x6a0] sm:$0xff]   ;;  %v8360_v39 = vld [vmem:[%s10265_s9 + $0x658] sm:$0xff]   ;;  %v8383_v33 = vld [vmem:[%s10265_s9 + $0x7b0] sm:$0xff]  }
0x1b92   : > { %v5090_v21 = vpop.f32.mrf.mxu1  ;;  %v5131_v42 = vpop.f32.mrf.mxu0  ;;  %7789 = vmatprep.subr.bf16.mxu1 %v8332_v12  ;;  %7811 = vmatprep.subr.bf16.mxu0 %v8333_v13  ;;  %v8362_v12 = vld [vmem:[%s10265_s9 + $0x618] sm:$0xff]  }
0x1b93   : > { %v8363_v13 = vld [vmem:[%s10265_s9 + $0x698] sm:$0xff]   ;;  %v8367_v21 = vld [vmem:[%s10265_s9 + $0x690] sm:$0xff]   ;;  %v8368_v42 = vld [vmem:[%s10265_s9 + $0x648] sm:$0xff]  }
0x1b94   : > { %v5091_v27 = vpop.f32.mrf.mxu1  ;;  %v5132_v48 = vpop.f32.mrf.mxu0 }
0x1b95   : > { %7790 = vmatpush3.bf16.msra.mxu1 %v8334_v19  ;;  %7812 = vmatpush3.bf16.msra.mxu0 %v8335_v51  ;;  %v8364_v19 = vld [vmem:[%s10265_s9 + $0x650] sm:$0xff]   ;;  %v5005_v27 = vadd.f32 %v9850_v38, %v4598_v20  ;;  %v5130_v38 = vadd.f32 %v9897_v18, %v4626_v25 }
0x1b96   : > { %7791 = vmatprep.subr.bf16.mxu1 %v8336_v23  ;;  %7813 = vmatprep.subr.bf16.mxu0 %v8337_v24  ;;  %v8365_v51 = vld [vmem:[%s10265_s9 + $0x6d0] sm:$0xff]   ;;  %v4606_v23 = vrot.slane %v9869_v56, %v9057_v41  ;;  %v8369_v24 = vld [vmem:[%s10265_s9 + $0x6c8] sm:$0xff]  }
0x1b97   : > { %v8371_v41 = vld [vmem:[%s10265_s9 + $0x688] sm:$0xff]   ;;  %v5142_v30 = vmax.f32 %v5005_v27, 0.0 }
0x1b98   : > { %v5046_v48 = vadd.f32 %v9852_v46, %v4606_v23  ;;  %v8375_v46 = vld [vmem:[%s10265_s9 + $0x680] sm:$0xff]  }
0x1b99   : > { %7792 = vmatpush3.bf16.msra.mxu1 %v8338_v50  ;;  %7814 = vmatpush3.bf16.msra.mxu0 %v8339_v29  ;;  %v5089_v50 = vadd.f32 %v9895_v17, %v4618_v40  ;;  %v8374_v29 = vld [vmem:[%s10265_s9 + $0x600] sm:$0xff]   ;;  %v8377_v17 = vld [vmem:[%s10265_s9 + $0x7f8] sm:$0xff]   ;;  %v5415_v36 = vpack.c.bf16 %v5142_v30, %v5142_v30 }
0x1b9a   : > { %7793 = vmatprep.subr.bf16.mxu1 %v8340_v43  ;;  %7815 = vmatprep.subr.bf16.mxu0 %v8341_v44  ;;  %v5144_v43 = vmax.f32 %v5046_v48, 0.0  ;;  %v5149_v44 = vmax.f32 %v5130_v38, 0.0 }
0x1b9b   : > { %v5147_v18 = vmax.f32 %v5089_v50, 0.0 }
0x1b9d   : > { %7794 = vmatpush3.bf16.msra.mxu1 %v8342_v22  ;;  %7816 = vmatpush3.bf16.msra.mxu0 %v8343_v0  ;;  %v8379_v22 = vld [vmem:[%s10265_s9 + $0x7b8] sm:$0xff]   ;;  %v5417_v0 = vpack.c.bf16 %v5144_v43, %v5144_v43  ;;  %v5420_v15 = vpack.c.bf16 %v5147_v18, %v5147_v18 }
0x1b9e   : > { %7823 = vmatprep.subr.bf16.mxu1 %v8344_v31  ;;  %7845 = vmatprep.subr.bf16.mxu0 %v8345_v37  ;;  %v8381_v31 = vld [vmem:[%s10265_s9 + $0x7f0] sm:$0xff]   ;;  %v5422_v37 = vpack.c.bf16 %v5149_v44, %v5149_v44 }
0x1ba0   : > { %6312 = vmatmul.mubr.bf16.vlgmr.msra.gmra.mxu1 %v5411_v8  ;;  %6352 = vmatmul.mubr.bf16.vlgmr.msra.gmra.mxu0 %v5413_v34  ;;  %v8385_v8 = vld [vmem:[%s10265_s9 + $0x7e8] sm:$0xff]  }
0x1ba1   : > { %7824 = vmatpush3.bf16.msra.mxu1 %v8346_v6  ;;  %6391 = vmatprep.mubr.bf16.mxu1 %v5416_v47  ;;  %v8384_v6 = vld [vmem:[%s10265_s9 + $0x768] sm:$0xff]   ;;  %v8388_v47 = vld [vmem:[%s10265_s9 + $0x760] sm:$0xff]  }
0x1ba2   : > { %7846 = vmatpush3.bf16.msra.mxu0 %v8347_v35  ;;  %6431 = vmatprep.mubr.bf16.mxu0 %v5418_v53  ;;  %v8386_v34 = vld [vmem:[%s10265_s9 + $0x728] sm:$0xff]   ;;  %v8391_v53 = vld [vmem:[%s10265_s9 + $0x7a0] sm:$0xff]  }
0x1ba3   : > { %7825 = vmatprep.subr.bf16.mxu1 %v8348_v52  ;;  %7847 = vmatprep.subr.bf16.mxu0 %v8349_v7  ;;  %v8387_v35 = vld [vmem:[%s10265_s9 + $0x7a8] sm:$0xff]   ;;  %v8389_v52 = vld [vmem:[%s10265_s9 + $0x7e0] sm:$0xff]  }
0x1ba4   : > { %v8390_v7 = vld [vmem:[%s10265_s9 + $0x720] sm:$0xff]  }
0x1ba5   : > { %7826 = vmatpush3.bf16.msra.mxu1 %v8350_v54  ;;  %v8392_v54 = vld [vmem:[%s10265_s9 + $0x758] sm:$0xff]  }
0x1ba6   : > { %7848 = vmatpush3.bf16.msra.mxu0 %v8351_v55  ;;  %7827 = vmatprep.subr.bf16.mxu1 %v8352_v59  ;;  %v8393_v55 = vld [vmem:[%s10265_s9 + $0x7d8] sm:$0xff]  }
0x1ba7   : > { %7849 = vmatprep.subr.bf16.mxu0 %v8353_v60  ;;  %v8394_v59 = vld [vmem:[%s10265_s9 + $0x718] sm:$0xff]  }
0x1ba8   : > { %v8395_v60 = vld [vmem:[%s10265_s9 + $0x798] sm:$0xff]  }
0x1ba9   : > { %7828 = vmatpush3.bf16.msra.mxu1 %v8354_v61  ;;  %v8396_v61 = vld [vmem:[%s10265_s9 + $0x750] sm:$0xff]  }
0x1baa   : > { %7850 = vmatpush3.bf16.msra.mxu0 %v8355_v62  ;;  %7829 = vmatprep.subr.bf16.mxu1 %v8356_v49  ;;  %v8397_v62 = vld [vmem:[%s10265_s9 + $0x7d0] sm:$0xff]  }
0x1bab   : > { %7851 = vmatprep.subr.bf16.mxu0 %v8357_v2  ;;  %v8398_v49 = vld [vmem:[%s10265_s9 + $0x710] sm:$0xff]   ;;  %v4614_v2 = vrot.slane %v9869_v56, %v9161_v63  ;;  %v8402_v63 = vld [vmem:[%s10265_s9 + $0x708] sm:$0xff]  }
0x1bad   : > { %7830 = vmatpush3.bf16.msra.mxu1 %v8358_v3  ;;  %v8399_v3 = vld [vmem:[%s10265_s9 + $0x790] sm:$0xff]   ;;  %v5087_v56 = vadd.f32 %v9885_v9, %v4614_v2  ;;  %v8406_v9 = vld [vmem:[%s10265_s9 + $0x700] sm:$0xff]  }
0x1bae   : > { %7852 = vmatpush3.bf16.msra.mxu0 %v8359_v4  ;;  %7831 = vmatprep.subr.bf16.mxu1 %v8360_v39  ;;  %v8400_v4 = vld [vmem:[%s10265_s9 + $0x748] sm:$0xff]  }
0x1baf   : > { %7853 = vmatprep.subr.bf16.mxu0 %v8361_v11  ;;  %v8401_v39 = vld [vmem:[%s10265_s9 + $0x7c8] sm:$0xff]  }
0x1bb0   : > { %v8403_v11 = vld [vmem:[%s10265_s9 + $0x788] sm:$0xff]  }
0x1bb1   : > { %7832 = vmatpush3.bf16.msra.mxu1 %v8362_v12  ;;  %v8404_v12 = vld [vmem:[%s10265_s9 + $0x740] sm:$0xff]  }
0x1bb2   : > { %7854 = vmatpush3.bf16.msra.mxu0 %v8363_v13  ;;  %7833 = vmatprep.subr.bf16.mxu1 %v8364_v19  ;;  %v8405_v13 = vld [vmem:[%s10265_s9 + $0x7c0] sm:$0xff]   ;;  %v5146_v19 = vmax.f32 %v5087_v56, 0.0 }
0x1bb3   : > { %7855 = vmatprep.subr.bf16.mxu0 %v8365_v51  ;;  %v8407_v51 = vld [vmem:[%s10265_s9 + $0x780] sm:$0xff]  }
0x1bb4   : > { %v5419_v20 = vpack.c.bf16 %v5146_v19, %v5146_v19  ;;  %v8409_v19 = vld [vmem:[%s10269_s13] sm:$0xff]  }
0x1bb5   : > { %7834 = vmatpush3.bf16.msra.mxu1 %v8366_v10  ;;  %v5148_v10 = vmax.f32 %v9893_v16, 0.0  ;;  %v7358_v16 = vld [vmem:[%s10266_s10 + $0x1] ss:$0 sm:$0xff] }
0x1bb6   : > { %7856 = vmatpush3.bf16.msra.mxu0 %v8367_v21  ;;  %7835 = vmatprep.subr.bf16.mxu1 %v8368_v42 }
0x1bb7   : > { %7857 = vmatprep.subr.bf16.mxu0 %v8369_v24  ;;  %v5421_v21 = vpack.c.bf16 %v5148_v10, %v5148_v10  ;;  %v8412_v10 = vld [vmem:[%s10272_s16 + $0x28] sm:$0xff]  }
0x1bb9   : > { %7836 = vmatpush3.bf16.msra.mxu1 %v8370_v26 }
0x1bba   : > { %7858 = vmatpush3.bf16.msra.mxu0 %v8371_v41  ;;  %7837 = vmatprep.subr.bf16.mxu1 %v8372_v57 }
0x1bbb   : > { %7859 = vmatprep.subr.bf16.mxu0 %v8373_v58 }
0x1bbd   : > { %7838 = vmatpush3.bf16.msra.mxu1 %v8374_v29 }
0x1bbe   : > { %7860 = vmatpush3.bf16.msra.mxu0 %v8375_v46  ;;  %7867 = vmatprep.subr.bf16.mxu1 %v8376_v5 }
0x1bbf   : > { %7889 = vmatprep.subr.bf16.mxu0 %v8377_v17 }
0x1bc0   : > { %6392 = vmatmul.mubr.bf16.vlgmr.msra.gmra.mxu1 %v5415_v36 }
0x1bc1   : > { %6432 = vmatmul.mubr.bf16.vlgmr.msra.gmra.mxu0 %v5417_v0  ;;  %7868 = vmatpush3.bf16.msra.mxu1 %v8378_v14 }
0x1bc2   : > { %6471 = vmatprep.mubr.bf16.mxu1 %v5420_v15  ;;  %7890 = vmatpush3.bf16.msra.mxu0 %v8379_v22 }
0x1bc3   : > { %6511 = vmatprep.mubr.bf16.mxu0 %v5422_v37  ;;  %7869 = vmatprep.subr.bf16.mxu1 %v8380_v28 }
0x1bc4   : > { %7891 = vmatprep.subr.bf16.mxu0 %v8381_v31 }
0x1bc5   : > { %7870 = vmatpush3.bf16.msra.mxu1 %v8382_v32 }
0x1bc6   : > { %7892 = vmatpush3.bf16.msra.mxu0 %v8383_v33  ;;  %7871 = vmatprep.subr.bf16.mxu1 %v8384_v6 }
0x1bc7   : > { %7893 = vmatprep.subr.bf16.mxu0 %v8385_v8 }
0x1bc9   : > { %7872 = vmatpush3.bf16.msra.mxu1 %v8386_v34 }
0x1bca   : > { %7894 = vmatpush3.bf16.msra.mxu0 %v8387_v35  ;;  %7873 = vmatprep.subr.bf16.mxu1 %v8388_v47 }
0x1bcb   : > { %7895 = vmatprep.subr.bf16.mxu0 %v8389_v52 }
0x1bcd   : > { %7874 = vmatpush3.bf16.msra.mxu1 %v8390_v7 }
0x1bce   : > { %7896 = vmatpush3.bf16.msra.mxu0 %v8391_v53  ;;  %7875 = vmatprep.subr.bf16.mxu1 %v8392_v54 }
0x1bcf   : > { %7897 = vmatprep.subr.bf16.mxu0 %v8393_v55 }
0x1bd1   : > { %7876 = vmatpush3.bf16.msra.mxu1 %v8394_v59 }
0x1bd2   : > { %7898 = vmatpush3.bf16.msra.mxu0 %v8395_v60  ;;  %7877 = vmatprep.subr.bf16.mxu1 %v8396_v61 }
0x1bd3   : > { %7899 = vmatprep.subr.bf16.mxu0 %v8397_v62 }
0x1bd5   : > { %7878 = vmatpush3.bf16.msra.mxu1 %v8398_v49 }
0x1bd6   : > { %7900 = vmatpush3.bf16.msra.mxu0 %v8399_v3  ;;  %7879 = vmatprep.subr.bf16.mxu1 %v8400_v4 }
0x1bd7   : > { %7901 = vmatprep.subr.bf16.mxu0 %v8401_v39 }
0x1bd9   : > { %7880 = vmatpush3.bf16.msra.mxu1 %v8402_v63 }
0x1bda   : > { %7902 = vmatpush3.bf16.msra.mxu0 %v8403_v11  ;;  %7881 = vmatprep.subr.bf16.mxu1 %v8404_v12 }
0x1bdb   : > { %7903 = vmatprep.subr.bf16.mxu0 %v8405_v13 }
0x1bdd   : > { %7882 = vmatpush3.bf16.msra.mxu1 %v8406_v9  ;;  %v8408_v9 = vld [vmem:[%s10269_s13 + $0x8] sm:$0xff]  }
0x1bde   : > { %7904 = vmatpush3.bf16.msra.mxu0 %v8407_v51  ;;  %8067 = vmatprep.subr.bf16.mxu1 %v8521_v1  ;;  %v8411_v51 = vld [vmem:[%s10272_s16 + $0x30] sm:$0xff]  }
0x1bdf   : > { %8075 = vmatprep.subr.bf16.mxu0 %v8521_v1 }
0x1be0   : > { %6472 = vmatmul.mubr.bf16.vlgmr.msra.gmra.mxu1 %v5419_v20  ;;  %v8413_v20 = vld [vmem:[%s10272_s16 + $0x20] sm:$0xff]  }
0x1be1   : > { %6512 = vmatmul.mubr.bf16.vlgmr.msra.gmra.mxu0 %v5421_v21  ;;  %8071 = vmatprep.mubr.msk.bf16.mxu1 %vm8522_vm0, %v8521_v1  ;;  %v8414_v21 = vld [vmem:[%s10272_s16 + $0x18] sm:$0xff]  }
0x1be2   : > { %8091 = vmatprep.mubr.msk.bf16.mxu0 %vm8522_vm0, %v8521_v1  ;;  %8068 = vmatpush3.bf16.msra.mxu1 %v8408_v9 }
0x1be3   : > { %8069 = vmatprep.subr.bf16.mxu1 %v8521_v1 }
0x1be6   : > { %8070 = vmatpush3.bf16.msra.mxu1 %v8409_v19 }
0x1c40   : > { %v7751_v42 = vpop.f32.mrf.mxu1  ;;  %v7773_v23 = vpop.f32.mrf.mxu0 }
0x1c42   : > { %v7752_v24 = vpop.f32.mrf.mxu1  ;;  %v7774_v40 = vpop.f32.mrf.mxu0 }
0x1c43   : > { %v7753_v25 = vadd.f32 %v7752_v24, %v7751_v42  ;;  %v7775_v26 = vadd.f32 %v7774_v40, %v7773_v23  ;;  %v8415_v42 = vld [vmem:[%s10272_s16 + $0x10] sm:$0xff]  }
0x1c44   : > { %v7754_v27 = vpop.f32.mrf.mxu1  ;;  %v7776_v41 = vpop.f32.mrf.mxu0 }
0x1c45   : > { %v6234_v57 = vadd.f32 %v7753_v25, %v7358_v16  ;;  %v7489_v25 = vld [vmem:[%s10267_s11 + $0x1] ss:$0 sm:$0xff] }
0x1c46   : > { %v7755_v48 = vpop.f32.mrf.mxu1  ;;  %v7777_v58 = vpop.f32.mrf.mxu0  ;;  %v7490_v27 = vld [vmem:[%s10268_s12 + $0x1] ss:$0 sm:$0xff] }
0x1c47   : > { %v6274_v50 = vadd.f32 %v7775_v26, %v6234_v57  ;;  %v8416_v58 = vld [vmem:[%s10272_s16 + $0x8] sm:$0xff]  }
0x1c60   : > { %v7795_v38 = vpop.f32.mrf.mxu1  ;;  %v7817_v29 = vpop.f32.mrf.mxu0 }
0x1c62   : > { %v7796_v30 = vpop.f32.mrf.mxu1  ;;  %v7818_v46 = vpop.f32.mrf.mxu0 }
0x1c63   : > { %v7797_v37 = vadd.f32 %v7796_v30, %v7795_v38  ;;  %v7819_v33 = vadd.f32 %v7818_v46, %v7817_v29  ;;  %v6556_v38 = vld [vmem:[%s10270_s14] sm:$0x1]  ;;  %v6614_v30 = vstv %s6612_s2 }
0x1c64   : > { %v7798_v5 = vpop.f32.mrf.mxu1  ;;  %v7820_v43 = vpop.f32.mrf.mxu0 }
0x1c65   : > { %v6314_v32 = vadd.f32 %v7797_v37, %v6274_v50  ;;  %v8417_v50 = vld [vmem:[%s10272_s16] sm:$0xff]  }
0x1c66   : > { %v7799_v17 = vpop.f32.mrf.mxu1  ;;  %v7821_v18 = vpop.f32.mrf.mxu0 }
0x1c67   : > { %v6354_v8 = vadd.f32 %v7819_v33, %v6314_v32 }
0x1c80   : > { %v7839_v44 = vpop.f32.mrf.mxu1 }
0x1c81   : > { %v7861_v14 = vpop.f32.mrf.mxu0 }
0x1c82   : > { %v7840_v36 = vpop.f32.mrf.mxu1 }
0x1c83   : > { %v7862_v22 = vpop.f32.mrf.mxu0  ;;  %v7841_v6 = vadd.f32 %v7840_v36, %v7839_v44 }
0x1c84   : > { %v7842_v0 = vpop.f32.mrf.mxu1  ;;  %v7863_v47 = vadd.f32 %v7862_v22, %v7861_v14  ;;  %v6634_v14 = vld [vmem:[%s10273_s17] sm:$0x1] }
0x1c85   : > { %v7864_v28 = vpop.f32.mrf.mxu0  ;;  %v6394_v34 = vadd.f32 %v7841_v6, %v6354_v8 }
0x1c86   : > { %v7843_v15 = vpop.f32.mrf.mxu1 }
0x1c87   : > { %v7865_v31 = vpop.f32.mrf.mxu0  ;;  %v6434_v53 = vadd.f32 %v7863_v47, %v6394_v34 }
0x1ca0   : > { %v7883_v35 = vpop.f32.mrf.mxu1 }
0x1ca1   : > { %v7905_v52 = vpop.f32.mrf.mxu0 }
0x1ca2   : > { %v7884_v7 = vpop.f32.mrf.mxu1 }
0x1ca3   : > { %v7885_v54 = vadd.f32 %v7884_v7, %v7883_v35  ;;  %v7906_v55 = vpop.f32.mrf.mxu0 }
0x1ca4   : > { %v7886_v59 = vpop.f32.mrf.mxu1  ;;  %v7907_v61 = vadd.f32 %v7906_v55, %v7905_v52 }
0x1ca5   : > { %v6474_v60 = vadd.f32 %v7885_v54, %v6434_v53  ;;  %v7908_v62 = vpop.f32.mrf.mxu0 }
0x1ca6   : > { %v7887_v49 = vpop.f32.mrf.mxu1 }
0x1ca7   : > { %v6514_v2 = vadd.f32 %v7907_v61, %v6474_v60  ;;  %v7909_v3 = vpop.f32.mrf.mxu0 }
0x1ca9   : > { %v6519_v4 = vadd.f32 %v6514_v2, %v9621_v45  ;;  %v8410_v45 = vld [vmem:[%s10272_s16 + $0x38] sm:$0xff]  }
0x1caa   : > { %8076 = vmatpush3.bf16.msra.mxu0 %v8410_v45 }
0x1cab   : > { %v6524_v39 = vsel %vm597_vm1, %v6519_v4, 0.0  ;;  %8077 = vmatprep.subr.bf16.mxu0 %v8521_v1 }
0x1cac   : > { %6525 = vadd.xlane.f32.xlu1 %v6524_v39 }
0x1cae   : > { %8078 = vmatpush3.bf16.msra.mxu0 %v8411_v51 }
0x1caf   : > { %8079 = vmatprep.subr.bf16.mxu0 %v8521_v1 }
0x1cb2   : > { %8080 = vmatpush3.bf16.msra.mxu0 %v8412_v10 }
0x1cb3   : > { %8081 = vmatprep.subr.bf16.mxu0 %v8521_v1 }
0x1cb6   : > { %8082 = vmatpush3.bf16.msra.mxu0 %v8413_v20 }
0x1cb7   : > { %8083 = vmatprep.subr.bf16.mxu0 %v8521_v1 }
0x1cba   : > { %8084 = vmatpush3.bf16.msra.mxu0 %v8414_v21 }
0x1cbb   : > { %8085 = vmatprep.subr.bf16.mxu0 %v8521_v1 }
0x1cbe   : > { %8086 = vmatpush3.bf16.msra.mxu0 %v8415_v42 }
0x1cbf   : > { %8087 = vmatprep.subr.bf16.mxu0 %v8521_v1 }
0x1cc2   : > { %8088 = vmatpush3.bf16.msra.mxu0 %v8416_v58 }
0x1cc3   : > { %8089 = vmatprep.subr.bf16.mxu0 %v8521_v1 }
0x1cc6   : > { %8090 = vmatpush3.bf16.msra.mxu0 %v8417_v50 }
0x1d35   : > { %v6526_v63 = vpop.xlane.xlu1 %6525 }
0x1d36   : > { %v6527_v56 = vmul.f32 0.03125, %v6526_v63 }
0x1d38   : > { %v6528_v11 = vsub.f32 %v6519_v4, %v6527_v56 }
0x1d3a   : > { %v6529_v12 = vmul.f32 %v6528_v11, %v6528_v11 }
0x1d3c   : > { %v6530_v13 = vsel %vm597_vm1, %v6529_v12, 0.0 }
0x1d3d   : > { %6531 = vadd.xlane.f32.xlu1 %v6530_v13 }
0x1dc6   : > { %v6532_v23 = vpop.xlane.xlu1 %6531 }
0x1dc7   : > { %v6533_v16 = vmul.f32 0.03125, %v6532_v23 }
0x1dc9   : > { %v6534_v24 = vadd.f32 1e-05, %v6533_v16 }
0x1dcb   : > { %8456 = vrsqrt.f32 %v6534_v24 }
0x1dd8   : > { %v8457_v40 = vpop.eup %8456 }
0x1dd9   : > { %v6536_v26 = vmul.f32 %v8457_v40, %v6528_v11 }
0x1ddb   : > { %v6543_v41 = vmul.f32 %v7489_v25, %v6536_v26 }
0x1ddd   : > { %v6550_v57 = vadd.f32 %v7490_v27, %v6543_v41 }
0x1ddf   : > { %v6555_v48 = vpack.c.bf16 %v6550_v57, %v6550_v57 }
0x1de1   : > { %8072 = vmatmul.mubr.msk.bf16.vlgmr.msra.gmra.mxu1 %vm597_vm1, %v6555_v48 }
0x1ea1   : > { %v6606_v29 = vpop.f32.mrf.mxu1 }
0x1ea2   : > { %v6607_v46 = vadd.f32 %v6606_v29, %v6556_v38 }
0x1ea3   : > { %v8073_v5 = vpop.f32.mrf.mxu1 }
0x1ea4   : > { %vm6613_vm4 = vcmp.gt.f32.partialorder %v6607_v46, 0.0  ;;  %v6615_v43 = vmul.f32 %v6614_v30, %v6607_v46 }
0x1ea5   : > { %v6609_v17 = vpop.f32.mrf.mxu1 }
0x1ea6   : > { %v6616_v1 = vsel %vm6613_vm4, %v6607_v46, %v6615_v43 }
0x1ea7   : > { %v6633_v18 = vpack.c.bf16 %v6616_v1, %v6616_v1  ;;  %v8074_v44 = vpop.f32.mrf.mxu1 }
0x1ea9   : > { %8092 = vmatmul.mubr.bf16.vlgmr.msra.gmra.mxu0 %v6633_v18 }
0x1f69   : > { %v6717_v36 = vpop.f32.mrf.mxu0 }
0x1f6a   : > { %v6718_v22 = vadd.f32 %v6717_v36, %v6634_v14 }
0x1f6b   : > { %v8093_v0 = vpop.f32.mrf.mxu0 }
0x1f6c   : > { %6724 = vst.msk [vmem:[%s566_s21] sm:$0x1] %vm6723_vm5, %v6718_v22 }
0x1f6d   : > { %v6720_v28 = vpop.f32.mrf.mxu0 }
0x1f6e   : > { %8472 = shalt.err (!%p8469_p3)
}
0x1f6f   : > { %s8473_s24 = scalar_lea.hbm %s10215_s25, 16  ;;  %s8477_s2 = scalar_lea.hbm %s10274_s18, 32 }
0x1f70   : > { %p8474_p4 = scmp.ne.s32.totalorder %s10215_s25, %s8473_s24  ;;  %p8478_p9 = scmp.lt.s32.totalorder %s10215_s25, %s10274_s18 }
0x1f71   : > { %p8479_p10 = scmp.lt.s32.totalorder %s8477_s2, %s8473_s24 }
0x1f72   : > { %p8475_p7 = pnand %p8474_p4, %p8672_p5 }
0x1f73   : > { %p8480_p11 = por %p8479_p10, %p8478_p9 }
0x1f74   : > { %p8476_p8 = pneg %p8475_p7 }
0x1f76   : > { %p8481_p12 = pnand %p8480_p11, %p8476_p8 }
0x1f78   : > { %8484 = shalt.err (!%p8481_p12)
}
0x1f79   : > { %8095 = dma.vmem_to_hbm [thread:$0]  (%p8672_p5), %s10217_s22, 16, %s10215_s25, %s6726_s28   ;;  %v8094_v15 = vpop.f32.mrf.mxu0 }
0x1f7a PF: > { %s10319_s15 = sld [smem:[#allocation6_spill]]  ;;  %p8101_p13 = scmp.ge.s32.totalorder %s8519_s19, 2 }
0x1f7c   : > { %p8098_p0 = pnand %p8101_p13, %p8676_p6 }
0x1f7e   : > { %p8099_p1 = pneg %p8098_p0 }
0x1f80   : > { %s6750_s26 = sand.u32 1, %s10319_s15  }
0x1f81   : > { %s6751_s3 = scalar_lea.sflag [#allocation4], %s6750_s26 }
0x1f82   : > { %8502 = dma.done.wait (%p8099_p1), %s6751_s3, 16  }
0x1f83   : > { %8504 = vsyncadd (%p8099_p1), %s6751_s3, 4294967280  ;;  %s10321_s19 = sld [smem:[#allocation8_spill]]  ;;  %s10324_s29 = smov %s8511_s30 }
0x1f84   : > { %s10322_s24 = sld [smem:[#allocation7_spill]] }
0x1f85   : > { %s10323_s0 = sld [smem:[#allocation9_spill]] }
0x1f89   : > { %p29_p2 = scmp.ge.s32.totalorder %s10321_s19, 4  }
0x1f8a   : > { %s10325_s30 = smov %s10322_s24 }
0x1f8b   :  { %31 = sbr.rel (!%p29_p2) target bundleno = 9 (0x9), region = 139 }
0x1f90   :  { %6755 = vsyncpa [#allocation4], 1 }
0x1f91   :  { %6757 = vsyncpa [#allocation4 + $0x1], 1 }

</bundles_post_ra>
